<compile_context>
chip_gen: v6e
topology: v6e:2x2x1
jax: 0.10.0
libtpu: 0.0.40
codegen_flags: <defaults>
</compile_context>

<pallas_src>
import functools

import jax
import jax.numpy as jnp
from jax import lax
from jax.experimental import pallas as pl
from jax.experimental.pallas import tpu as pltpu


def _round_up(x, m):
    return (x + m - 1) // m * m


# ----------------------------------------------------------------------------
# Pallas kernels
# ----------------------------------------------------------------------------
def _mm_bias_relu_kernel(x_ref, w_ref, b_ref, o_ref):
    """out = relu(x @ w + b), single shot (whole operands resident in VMEM)."""
    r = jnp.dot(x_ref[...], w_ref[...], preferred_element_type=jnp.float32)
    r = jnp.maximum(r + b_ref[...], 0.0)
    o_ref[...] = r.astype(o_ref.dtype)


def _mm2_bias_relu_kernel(x_ref, w2_ref, b2_ref, w3_ref, b3_ref, o_ref):
    """Fused conv2 + conv3(1x1): out = relu(relu(x@w2+b2) @ w3 + b3)."""
    h = jnp.dot(x_ref[...], w2_ref[...], preferred_element_type=jnp.float32)
    h = jnp.maximum(h + b2_ref[...], 0.0)
    r = jnp.dot(h, w3_ref[...], preferred_element_type=jnp.float32)
    r = jnp.maximum(r + b3_ref[...], 0.0)
    o_ref[...] = r.astype(o_ref.dtype)


def _fc_head_kernel(x_ref, w1_ref, b1_ref, w2_ref, b2_ref, o_ref, acc_ref):
    """Fused fc1 (K-tiled accumulation) + ReLU + fc2 in the epilogue."""
    k = pl.program_id(0)

    @pl.when(k == 0)
    def _():
        acc_ref[...] = jnp.zeros_like(acc_ref)

    acc_ref[...] += jnp.dot(
        x_ref[...], w1_ref[...], preferred_element_type=jnp.float32
    )

    @pl.when(k == pl.num_programs(0) - 1)
    def _():
        h = jnp.maximum(acc_ref[...] + b1_ref[...], 0.0)
        r = jnp.dot(h, w2_ref[...], preferred_element_type=jnp.float32)
        o_ref[...] = (r + b2_ref[...]).astype(o_ref.dtype)


# ----------------------------------------------------------------------------
# pallas_call wrappers
# ----------------------------------------------------------------------------
def _conv1_matmul(patches, w, b):
    M, K = patches.shape
    _, N = w.shape
    return pl.pallas_call(
        _mm_bias_relu_kernel,
        out_shape=jax.ShapeDtypeStruct((M, N), patches.dtype),
        grid=(1,),
        in_specs=[
            pl.BlockSpec((M, K), lambda i: (0, 0)),
            pl.BlockSpec((K, N), lambda i: (0, 0)),
            pl.BlockSpec((1, N), lambda i: (0, 0)),
        ],
        out_specs=pl.BlockSpec((M, N), lambda i: (0, 0)),
        compiler_params=pltpu.CompilerParams(dimension_semantics=("arbitrary",)),
    )(patches, w, b)


def _conv23_matmul(patches, w2, b2, w3, b3):
    M, K = patches.shape
    _, H = w2.shape
    _, N = w3.shape
    return pl.pallas_call(
        _mm2_bias_relu_kernel,
        out_shape=jax.ShapeDtypeStruct((M, N), patches.dtype),
        grid=(1,),
        in_specs=[
            pl.BlockSpec((M, K), lambda i: (0, 0)),
            pl.BlockSpec((K, H), lambda i: (0, 0)),
            pl.BlockSpec((1, H), lambda i: (0, 0)),
            pl.BlockSpec((H, N), lambda i: (0, 0)),
            pl.BlockSpec((1, N), lambda i: (0, 0)),
        ],
        out_specs=pl.BlockSpec((M, N), lambda i: (0, 0)),
        compiler_params=pltpu.CompilerParams(dimension_semantics=("arbitrary",)),
    )(patches, w2, b2, w3, b3)


def _fc_head(x, w1, b1, w2, b2, *, tk=1664):
    Mp, K = x.shape
    _, H = w1.shape         # 512
    _, Np = w2.shape        # padded action dim (128)
    assert K % tk == 0, (K, tk)
    return pl.pallas_call(
        _fc_head_kernel,
        out_shape=jax.ShapeDtypeStruct((Mp, Np), x.dtype),
        grid=(K // tk,),
        in_specs=[
            pl.BlockSpec((Mp, tk), lambda k: (0, k)),
            pl.BlockSpec((tk, H), lambda k: (k, 0)),
            pl.BlockSpec((1, H), lambda k: (0, 0)),
            pl.BlockSpec((H, Np), lambda k: (0, 0)),
            pl.BlockSpec((1, Np), lambda k: (0, 0)),
        ],
        out_specs=pl.BlockSpec((Mp, Np), lambda k: (0, 0)),
        scratch_shapes=[pltpu.VMEM((Mp, H), jnp.float32)],
        compiler_params=pltpu.CompilerParams(dimension_semantics=("arbitrary",)),
    )(x, w1, b1, w2, b2)


# ----------------------------------------------------------------------------
# im2col glue (NHWC, tiny activations; feature order = (KH, KW, C))
# ----------------------------------------------------------------------------
def _im2col_nhwc(x, kh, kw, k_pad=0):
    n, h, w, c = x.shape
    ho, wo = h - kh + 1, w - kw + 1
    parts = [x[:, i:i + ho, j:j + wo, :] for i in range(kh) for j in range(kw)]
    if k_pad:
        parts.append(jnp.zeros((n, ho, wo, k_pad), x.dtype))
    patches = jnp.concatenate(parts, axis=-1)
    return patches.reshape(n * ho * wo, kh * kw * c + k_pad), (ho, wo)


# ----------------------------------------------------------------------------
# One-time parameter repacking (hoisted out of the forward pass)
# ----------------------------------------------------------------------------
def prepare_params(params, *, conv_out_hw):
    """Repack PyTorch-layout params into the kernel layout (run once)."""

    def conv_w2d(w):  # (Cout, Cin, KH, KW) -> (KH*KW*Cin, Cout)
        co, ci, kh, kw = w.shape
        return w.transpose(2, 3, 1, 0).reshape(kh * kw * ci, co)

    # conv1: pad K (208 -> 256) once here; patches are padded to match.
    w1 = conv_w2d(params["conv1_w"])
    k1, c1 = w1.shape
    k1p = _round_up(k1, 128)
    w1 = jnp.zeros((k1p, c1), w1.dtype).at[:k1].set(w1)

    w2 = conv_w2d(params["conv2_w"])                 # (256, 128)
    w3 = params["conv3_w"][:, :, 0, 0].T             # (Cin, Cout) for 1x1 conv

    # Fold PyTorch's NCHW flatten order into fc1's rows (we flatten NHWC):
    #   internal feature (h*W + w)*C + c  ->  torch feature c*H*W + (h*W + w)
    hf, wf = conv_out_hw
    cflat = params["conv3_w"].shape[0]
    hw = hf * wf
    perm = (jnp.arange(cflat)[None, :] * hw + jnp.arange(hw)[:, None]).reshape(-1)
    fc1_w = params["fc1_w"][perm, :]                 # (6656, 512)

    # fc2: pad the tiny output dim to a full 128-lane tile once here.
    act = params["fc2_w"].shape[1]
    npad = _round_up(act, 128)
    fc2_w = jnp.zeros((params["fc2_w"].shape[0], npad), jnp.float32)
    fc2_w = fc2_w.at[:, :act].set(params["fc2_w"])
    fc2_b = jnp.zeros((1, npad), jnp.float32).at[0, :act].set(params["fc2_b"])

    return {
        "conv1_w": w1, "conv1_b": params["conv1_b"][None, :],
        "conv2_w": w2, "conv2_b": params["conv2_b"][None, :],
        "conv3_w": w3, "conv3_b": params["conv3_b"][None, :],
        "fc1_w": fc1_w, "fc1_b": params["fc1_b"][None, :],
        "fc2_w": fc2_w, "fc2_b": fc2_b,
    }


# ----------------------------------------------------------------------------
# Qnet forward
# ----------------------------------------------------------------------------
def qnet_forward(state, packed, *, action_dim):
    """state: (N, 13, H, W) float32 NCHW -> (N, action_dim)."""
    n = state.shape[0]
    x = jnp.transpose(state, (0, 2, 3, 1))                    # NCHW -> NHWC

    # conv1 (k=4) + ReLU
    kpad1 = packed["conv1_w"].shape[0] - 4 * 4 * x.shape[3]   # static (=48)
    p1, (h1, w1s) = _im2col_nhwc(x, 4, 4, k_pad=kpad1)
    a1 = _conv1_matmul(p1, packed["conv1_w"], packed["conv1_b"])
    a1 = a1.reshape(n, h1, w1s, a1.shape[-1])                 # NHWC

    # conv2 (k=2) + ReLU, fused with conv3 (1x1) + ReLU
    p2, (h2, w2s) = _im2col_nhwc(a1, 2, 2)
    a3 = _conv23_matmul(p2, packed["conv2_w"], packed["conv2_b"],
                        packed["conv3_w"], packed["conv3_b"])  # (n*h2*w2, 128)

    # Flatten (NHWC order; NCHW ordering was folded into fc1_w at init).
    flat = a3.reshape(n, -1)                                   # (n, 6656)
    mp = _round_up(n, 8)
    flat_p = jnp.zeros((mp, flat.shape[1]), flat.dtype).at[:n, :].set(flat)

    # fc1 + ReLU + fc2, single fused K-tiled kernel.
    out = _fc_head(flat_p, packed["fc1_w"], packed["fc1_b"],
                   packed["fc2_w"], packed["fc2_b"], tk=1664)
    return out[:n, :action_dim]


# ----------------------------------------------------------------------------
# Pure-JAX reference (mirrors the PyTorch module) and parameter init
# ----------------------------------------------------------------------------
def qnet_reference(state, params):
    def conv(x, w, b):
        y = lax.conv_general_dilated(
            x, w, window_strides=(1, 1), padding="VALID",
            dimension_numbers=("NCHW", "OIHW", "NCHW"),
            precision=lax.Precision.HIGHEST)
        return jnp.maximum(y + b[None, :, None, None], 0.0)

    x = conv(state, params["conv1_w"], params["conv1_b"])
    x = conv(x, params["conv2_w"], params["conv2_b"])
    x = conv(x, params["conv3_w"], params["conv3_b"])
    flat = x.reshape(x.shape[0], -1)
    h = jnp.dot(flat, params["fc1_w"], precision=lax.Precision.HIGHEST)
    h = jnp.maximum(h + params["fc1_b"], 0.0)
    return jnp.dot(h, params["fc2_w"], precision=lax.Precision.HIGHEST) + params["fc2_b"]


def init_params(key, hidden_dim=64, action_dim=6):
    ks = jax.random.split(key, 10)
    scale = 0.02

    def nrm(k, shape):
        return scale * jax.random.normal(k, shape, dtype=jnp.float32)

    return {
        # nn.Conv2d(13, hidden_dim, kernel_size=4)
        "conv1_w": nrm(ks[0], (hidden_dim, 13, 4, 4)),
        "conv1_b": nrm(ks[1], (hidden_dim,)),
        # nn.Conv2d(hidden_dim, hidden_dim*2, kernel_size=2)
        "conv2_w": nrm(ks[2], (hidden_dim * 2, hidden_dim, 2, 2)),
        "conv2_b": nrm(ks[3], (hidden_dim * 2,)),
        # nn.Conv2d(hidden_dim*2, hidden_dim*2, kernel_size=1)
        "conv3_w": nrm(ks[4], (hidden_dim * 2, hidden_dim * 2, 1, 1)),
        "conv3_b": nrm(ks[5], (hidden_dim * 2,)),
        # nn.Linear(6656, 512)  (stored as (in, out) for x @ w)
        "fc1_w": nrm(ks[6], (6656, 512)),
        "fc1_b": nrm(ks[7], (512,)),
        # nn.Linear(512, action_dim)
        "fc2_w": nrm(ks[8], (512, action_dim)),
        "fc2_b": nrm(ks[9], (action_dim,)),
    }


if __name__ == "__main__":
    key = jax.random.PRNGKey(0)
    k_param, k_in = jax.random.split(key)

    hidden_dim, action_dim = 64, 6
    # Spatial (8, 17): after k=4,2,1 valid convs -> (4, 13);
    # flatten = 2*hidden_dim * 4 * 13 = 6656, matching nn.Linear(6656, 512).
    batch, H, W = 2, 8, 17

    params = init_params(k_param, hidden_dim=hidden_dim, action_dim=action_dim)
    packed = prepare_params(params, conv_out_hw=(H - 4, W - 4))   # one-time repack
    state = jax.random.normal(k_in, (batch, 13, H, W), dtype=jnp.float32)

    fwd = jax.jit(functools.partial(qnet_forward, action_dim=action_dim))
    out = jax.block_until_ready(fwd(state, packed))

    assert out.shape == (batch, action_dim), out.shape
    assert out.dtype == jnp.float32

    ref = qnet_reference(state, params)
    err = float(jnp.max(jnp.abs(out - ref)))
    assert err < 1e-3, f"max abs err vs reference: {err}"

    print("KERNEL_OK")
</pallas_src>

<mosaic_0001>
module attributes {stable_mosaic.version = 11 : i64} {
  func.func @_mm_bias_relu_kernel(%arg0: i32, %arg1: memref<140x256xf32, #tpu.memory_space<vmem>>, %arg2: memref<256x64xf32, #tpu.memory_space<vmem>>, %arg3: memref<1x64xf32, #tpu.memory_space<vmem>>, %arg4: memref<140x64xf32, #tpu.memory_space<vmem>>) attributes {dimension_semantics = [#tpu.dimension_semantics<arbitrary>], iteration_bounds = array<i64: 1>, scalar_prefetch = 0 : i64, scratch_operands = 0 : i64, tpu.core_type = #tpu.core_type<tc>, window_params = [{pipeline_mode = #tpu.pipeline_mode<synchronous>, transform_indices = @transform_0, window_bounds = array<i64: 140, 256>}, {pipeline_mode = #tpu.pipeline_mode<synchronous>, transform_indices = @transform_1, window_bounds = array<i64: 256, 64>}, {pipeline_mode = #tpu.pipeline_mode<synchronous>, transform_indices = @transform_2, window_bounds = array<i64: 1, 64>}, {pipeline_mode = #tpu.pipeline_mode<synchronous>, transform_indices = @transform_3, window_bounds = array<i64: 140, 64>}]} {
    %c0 = arith.constant 0 : index
    %c0_0 = arith.constant 0 : index
    %0 = vector.load %arg1[%c0, %c0_0] : memref<140x256xf32, #tpu.memory_space<vmem>>, vector<140x256xf32>
    %c0_1 = arith.constant 0 : index
    %c0_2 = arith.constant 0 : index
    %1 = vector.load %arg2[%c0_1, %c0_2] : memref<256x64xf32, #tpu.memory_space<vmem>>, vector<256x64xf32>
    %cst = arith.constant dense<0.000000e+00> : vector<140x64xf32>
    %2 = tpu.matmul %0, %1, %cst {dimension_numbers = #tpu.dot_dimension_numbers<[1], [0], [0], [1], [0, 0, 1, 1], [], []>} : vector<140x256xf32>, vector<256x64xf32>, vector<140x64xf32> -> vector<140x64xf32>
    %c0_3 = arith.constant 0 : index
    %c0_4 = arith.constant 0 : index
    %3 = vector.load %arg3[%c0_3, %c0_4] : memref<1x64xf32, #tpu.memory_space<vmem>>, vector<1x64xf32>
    %4 = vector.broadcast %3 : vector<1x64xf32> to vector<140x64xf32>
    %5 = arith.addf %2, %4 : vector<140x64xf32>
    %cst_5 = arith.constant 0.000000e+00 : f32
    %6 = vector.broadcast %cst_5 : f32 to vector<140x64xf32>
    %7 = arith.maximumf %5, %6 : vector<140x64xf32>
    %c0_6 = arith.constant 0 : index
    %c0_7 = arith.constant 0 : index
    %8 = vector.load %arg4[%c0_6, %c0_7] : memref<140x64xf32, #tpu.memory_space<vmem>>, vector<140x64xf32>
    tpu.vector_store %arg4[%c0_6, %c0_7], %7 {strides = array<i32>} : memref<140x64xf32, #tpu.memory_space<vmem>>, vector<140x64xf32>,
    return
  }
  func.func @transform_0(%arg0: i32) -> (i32, i32) {
    %c0_i32 = arith.constant 0 : i32
    %c0_i32_0 = arith.constant 0 : i32
    %c0_i32_1 = arith.constant 0 : i32
    return %c0_i32, %c0_i32_0 : i32, i32
  }
  func.func @transform_1(%arg0: i32) -> (i32, i32) {
    %c0_i32 = arith.constant 0 : i32
    %c0_i32_0 = arith.constant 0 : i32
    %c0_i32_1 = arith.constant 0 : i32
    return %c0_i32, %c0_i32_0 : i32, i32
  }
  func.func @transform_2(%arg0: i32) -> (i32, i32) {
    %c0_i32 = arith.constant 0 : i32
    %c0_i32_0 = arith.constant 0 : i32
    %c0_i32_1 = arith.constant 0 : i32
    return %c0_i32, %c0_i32_0 : i32, i32
  }
  func.func @transform_3(%arg0: i32) -> (i32, i32) {
    %c0_i32 = arith.constant 0 : i32
    %c0_i32_0 = arith.constant 0 : i32
    %c0_i32_1 = arith.constant 0 : i32
    return %c0_i32, %c0_i32_0 : i32, i32
  }
}

module attributes {stable_mosaic.version = 11 : i64} {
  func.func @_mm2_bias_relu_kernel(%arg0: i32, %arg1: memref<104x256xf32, #tpu.memory_space<vmem>>, %arg2: memref<256x128xf32, #tpu.memory_space<vmem>>, %arg3: memref<1x128xf32, #tpu.memory_space<vmem>>, %arg4: memref<128x128xf32, #tpu.memory_space<vmem>>, %arg5: memref<1x128xf32, #tpu.memory_space<vmem>>, %arg6: memref<104x128xf32, #tpu.memory_space<vmem>>) attributes {dimension_semantics = [#tpu.dimension_semantics<arbitrary>], iteration_bounds = array<i64: 1>, scalar_prefetch = 0 : i64, scratch_operands = 0 : i64, tpu.core_type = #tpu.core_type<tc>, window_params = [{pipeline_mode = #tpu.pipeline_mode<synchronous>, transform_indices = @transform_0, window_bounds = array<i64: 104, 256>}, {pipeline_mode = #tpu.pipeline_mode<synchronous>, transform_indices = @transform_1, window_bounds = array<i64: 256, 128>}, {pipeline_mode = #tpu.pipeline_mode<synchronous>, transform_indices = @transform_2, window_bounds = array<i64: 1, 128>}, {pipeline_mode = #tpu.pipeline_mode<synchronous>, transform_indices = @transform_3, window_bounds = array<i64: 128, 128>}, {pipeline_mode = #tpu.pipeline_mode<synchronous>, transform_indices = @transform_4, window_bounds = array<i64: 1, 128>}, {pipeline_mode = #tpu.pipeline_mode<synchronous>, transform_indices = @transform_5, window_bounds = array<i64: 104, 128>}]} {
    %c0 = arith.constant 0 : index
    %c0_0 = arith.constant 0 : index
    %0 = vector.load %arg1[%c0, %c0_0] : memref<104x256xf32, #tpu.memory_space<vmem>>, vector<104x256xf32>
    %c0_1 = arith.constant 0 : index
    %c0_2 = arith.constant 0 : index
    %1 = vector.load %arg2[%c0_1, %c0_2] : memref<256x128xf32, #tpu.memory_space<vmem>>, vector<256x128xf32>
    %cst = arith.constant dense<0.000000e+00> : vector<104x128xf32>
    %2 = tpu.matmul %0, %1, %cst {dimension_numbers = #tpu.dot_dimension_numbers<[1], [0], [0], [1], [0, 0, 1, 1], [], []>} : vector<104x256xf32>, vector<256x128xf32>, vector<104x128xf32> -> vector<104x128xf32>
    %c0_3 = arith.constant 0 : index
    %c0_4 = arith.constant 0 : index
    %3 = vector.load %arg3[%c0_3, %c0_4] : memref<1x128xf32, #tpu.memory_space<vmem>>, vector<1x128xf32>
    %4 = vector.broadcast %3 : vector<1x128xf32> to vector<104x128xf32>
    %5 = arith.addf %2, %4 : vector<104x128xf32>
    %cst_5 = arith.constant 0.000000e+00 : f32
    %6 = vector.broadcast %cst_5 : f32 to vector<104x128xf32>
    %7 = arith.maximumf %5, %6 : vector<104x128xf32>
    %c0_6 = arith.constant 0 : index
    %c0_7 = arith.constant 0 : index
    %8 = vector.load %arg4[%c0_6, %c0_7] : memref<128x128xf32, #tpu.memory_space<vmem>>, vector<128x128xf32>
    %cst_8 = arith.constant dense<0.000000e+00> : vector<104x128xf32>
    %9 = tpu.matmul %7, %8, %cst_8 {dimension_numbers = #tpu.dot_dimension_numbers<[1], [0], [0], [1], [0, 0, 1, 1], [], []>} : vector<104x128xf32>, vector<128x128xf32>, vector<104x128xf32> -> vector<104x128xf32>
    %c0_9 = arith.constant 0 : index
    %c0_10 = arith.constant 0 : index
    %10 = vector.load %arg5[%c0_9, %c0_10] : memref<1x128xf32, #tpu.memory_space<vmem>>, vector<1x128xf32>
    %11 = vector.broadcast %10 : vector<1x128xf32> to vector<104x128xf32>
    %12 = arith.addf %9, %11 : vector<104x128xf32>
    %cst_11 = arith.constant 0.000000e+00 : f32
    %13 = vector.broadcast %cst_11 : f32 to vector<104x128xf32>
    %14 = arith.maximumf %12, %13 : vector<104x128xf32>
    %c0_12 = arith.constant 0 : index
    %c0_13 = arith.constant 0 : index
    %15 = vector.load %arg6[%c0_12, %c0_13] : memref<104x128xf32, #tpu.memory_space<vmem>>, vector<104x128xf32>
    tpu.vector_store %arg6[%c0_12, %c0_13], %14 {strides = array<i32>} : memref<104x128xf32, #tpu.memory_space<vmem>>, vector<104x128xf32>,
    return
  }
  func.func @transform_0(%arg0: i32) -> (i32, i32) {
    %c0_i32 = arith.constant 0 : i32
    %c0_i32_0 = arith.constant 0 : i32
    %c0_i32_1 = arith.constant 0 : i32
    return %c0_i32, %c0_i32_0 : i32, i32
  }
  func.func @transform_1(%arg0: i32) -> (i32, i32) {
    %c0_i32 = arith.constant 0 : i32
    %c0_i32_0 = arith.constant 0 : i32
    %c0_i32_1 = arith.constant 0 : i32
    return %c0_i32, %c0_i32_0 : i32, i32
  }
  func.func @transform_2(%arg0: i32) -> (i32, i32) {
    %c0_i32 = arith.constant 0 : i32
    %c0_i32_0 = arith.constant 0 : i32
    %c0_i32_1 = arith.constant 0 : i32
    return %c0_i32, %c0_i32_0 : i32, i32
  }
  func.func @transform_3(%arg0: i32) -> (i32, i32) {
    %c0_i32 = arith.constant 0 : i32
    %c0_i32_0 = arith.constant 0 : i32
    %c0_i32_1 = arith.constant 0 : i32
    return %c0_i32, %c0_i32_0 : i32, i32
  }
  func.func @transform_4(%arg0: i32) -> (i32, i32) {
    %c0_i32 = arith.constant 0 : i32
    %c0_i32_0 = arith.constant 0 : i32
    %c0_i32_1 = arith.constant 0 : i32
    return %c0_i32, %c0_i32_0 : i32, i32
  }
  func.func @transform_5(%arg0: i32) -> (i32, i32) {
    %c0_i32 = arith.constant 0 : i32
    %c0_i32_0 = arith.constant 0 : i32
    %c0_i32_1 = arith.constant 0 : i32
    return %c0_i32, %c0_i32_0 : i32, i32
  }
}

module attributes {stable_mosaic.version = 11 : i64} {
  func.func @_fc_head_kernel(%arg0: i32, %arg1: memref<8x1664xf32, #tpu.memory_space<vmem>>, %arg2: memref<1664x512xf32, #tpu.memory_space<vmem>>, %arg3: memref<1x512xf32, #tpu.memory_space<vmem>>, %arg4: memref<512x128xf32, #tpu.memory_space<vmem>>, %arg5: memref<1x128xf32, #tpu.memory_space<vmem>>, %arg6: memref<8x128xf32, #tpu.memory_space<vmem>>, %arg7: memref<8x512xf32, #tpu.memory_space<vmem>>) attributes {dimension_semantics = [#tpu.dimension_semantics<arbitrary>], iteration_bounds = array<i64: 4>, scalar_prefetch = 0 : i64, scratch_operands = 1 : i64, tpu.core_type = #tpu.core_type<tc>, window_params = [{transform_indices = @transform_0, window_bounds = array<i64: 8, 1664>}, {transform_indices = @transform_1, window_bounds = array<i64: 1664, 512>}, {pipeline_mode = #tpu.pipeline_mode<synchronous>, transform_indices = @transform_2, window_bounds = array<i64: 1, 512>}, {pipeline_mode = #tpu.pipeline_mode<synchronous>, transform_indices = @transform_3, window_bounds = array<i64: 512, 128>}, {pipeline_mode = #tpu.pipeline_mode<synchronous>, transform_indices = @transform_4, window_bounds = array<i64: 1, 128>}, {pipeline_mode = #tpu.pipeline_mode<synchronous>, transform_indices = @transform_5, window_bounds = array<i64: 8, 128>}]} {
    %c0_i32 = arith.constant 0 : i32
    %0 = arith.cmpi eq, %arg0, %c0_i32 : i32
    %1 = arith.extui %0 : i1 to i32
    %c0_i32_0 = arith.constant 0 : i32
    %2 = arith.cmpi ne, %1, %c0_i32_0 : i32
    scf.if %2 {
      %cst_9 = arith.constant 0.000000e+00 : f32
      %12 = vector.broadcast %cst_9 : f32 to vector<8x512xf32>
      %c0_10 = arith.constant 0 : index
      %c0_11 = arith.constant 0 : index
      %13 = vector.load %arg7[%c0_10, %c0_11] : memref<8x512xf32, #tpu.memory_space<vmem>>, vector<8x512xf32>
      tpu.vector_store %arg7[%c0_10, %c0_11], %12 {strides = array<i32>} : memref<8x512xf32, #tpu.memory_space<vmem>>, vector<8x512xf32>,
    } else {
    }
    %c0 = arith.constant 0 : index
    %c0_1 = arith.constant 0 : index
    %3 = vector.load %arg7[%c0, %c0_1] : memref<8x512xf32, #tpu.memory_space<vmem>>, vector<8x512xf32>
    %c0_2 = arith.constant 0 : index
    %c0_3 = arith.constant 0 : index
    %4 = vector.load %arg1[%c0_2, %c0_3] : memref<8x1664xf32, #tpu.memory_space<vmem>>, vector<8x1664xf32>
    %c0_4 = arith.constant 0 : index
    %c0_5 = arith.constant 0 : index
    %5 = vector.load %arg2[%c0_4, %c0_5] : memref<1664x512xf32, #tpu.memory_space<vmem>>, vector<1664x512xf32>
    %cst = arith.constant dense<0.000000e+00> : vector<8x512xf32>
    %6 = tpu.matmul %4, %5, %cst {dimension_numbers = #tpu.dot_dimension_numbers<[1], [0], [0], [1], [0, 0, 1, 1], [], []>} : vector<8x1664xf32>, vector<1664x512xf32>, vector<8x512xf32> -> vector<8x512xf32>
    %7 = arith.addf %3, %6 : vector<8x512xf32>
    %c0_6 = arith.constant 0 : index
    %c0_7 = arith.constant 0 : index
    %8 = vector.load %arg7[%c0_6, %c0_7] : memref<8x512xf32, #tpu.memory_space<vmem>>, vector<8x512xf32>
    tpu.vector_store %arg7[%c0_6, %c0_7], %7 {strides = array<i32>} : memref<8x512xf32, #tpu.memory_space<vmem>>, vector<8x512xf32>,
    %c3_i32 = arith.constant 3 : i32
    %9 = arith.cmpi eq, %arg0, %c3_i32 : i32
    %10 = arith.extui %9 : i1 to i32
    %c0_i32_8 = arith.constant 0 : i32
    %11 = arith.cmpi ne, %10, %c0_i32_8 : i32
    scf.if %11 {
      %c0_9 = arith.constant 0 : index
      %c0_10 = arith.constant 0 : index
      %12 = vector.load %arg7[%c0_9, %c0_10] : memref<8x512xf32, #tpu.memory_space<vmem>>, vector<8x512xf32>
      %c0_11 = arith.constant 0 : index
      %c0_12 = arith.constant 0 : index
      %13 = vector.load %arg3[%c0_11, %c0_12] : memref<1x512xf32, #tpu.memory_space<vmem>>, vector<1x512xf32>
      %14 = vector.broadcast %13 : vector<1x512xf32> to vector<8x512xf32>
      %15 = arith.addf %12, %14 : vector<8x512xf32>
      %cst_13 = arith.constant 0.000000e+00 : f32
      %16 = vector.broadcast %cst_13 : f32 to vector<8x512xf32>
      %17 = arith.maximumf %15, %16 : vector<8x512xf32>
      %c0_14 = arith.constant 0 : index
      %c0_15 = arith.constant 0 : index
      %18 = vector.load %arg4[%c0_14, %c0_15] : memref<512x128xf32, #tpu.memory_space<vmem>>, vector<512x128xf32>
      %cst_16 = arith.constant dense<0.000000e+00> : vector<8x128xf32>
      %19 = tpu.matmul %17, %18, %cst_16 {dimension_numbers = #tpu.dot_dimension_numbers<[1], [0], [0], [1], [0, 0, 1, 1], [], []>} : vector<8x512xf32>, vector<512x128xf32>, vector<8x128xf32> -> vector<8x128xf32>
      %c0_17 = arith.constant 0 : index
      %c0_18 = arith.constant 0 : index
      %20 = vector.load %arg5[%c0_17, %c0_18] : memref<1x128xf32, #tpu.memory_space<vmem>>, vector<1x128xf32>
      %21 = vector.broadcast %20 : vector<1x128xf32> to vector<8x128xf32>
      %22 = arith.addf %19, %21 : vector<8x128xf32>
      %c0_19 = arith.constant 0 : index
      %c0_20 = arith.constant 0 : index
      %23 = vector.load %arg6[%c0_19, %c0_20] : memref<8x128xf32, #tpu.memory_space<vmem>>, vector<8x128xf32>
      tpu.vector_store %arg6[%c0_19, %c0_20], %22 {strides = array<i32>} : memref<8x128xf32, #tpu.memory_space<vmem>>, vector<8x128xf32>,
    } else {
    }
    return
  }
  func.func @transform_0(%arg0: i32) -> (i32, i32) {
    %c0_i32 = arith.constant 0 : i32
    %c0_i32_0 = arith.constant 0 : i32
    return %c0_i32, %arg0 : i32, i32
  }
  func.func @transform_1(%arg0: i32) -> (i32, i32) {
    %c0_i32 = arith.constant 0 : i32
    %c0_i32_0 = arith.constant 0 : i32
    return %arg0, %c0_i32 : i32, i32
  }
  func.func @transform_2(%arg0: i32) -> (i32, i32) {
    %c0_i32 = arith.constant 0 : i32
    %c0_i32_0 = arith.constant 0 : i32
    %c0_i32_1 = arith.constant 0 : i32
    return %c0_i32, %c0_i32_0 : i32, i32
  }
  func.func @transform_3(%arg0: i32) -> (i32, i32) {
    %c0_i32 = arith.constant 0 : i32
    %c0_i32_0 = arith.constant 0 : i32
    %c0_i32_1 = arith.constant 0 : i32
    return %c0_i32, %c0_i32_0 : i32, i32
  }
  func.func @transform_4(%arg0: i32) -> (i32, i32) {
    %c0_i32 = arith.constant 0 : i32
    %c0_i32_0 = arith.constant 0 : i32
    %c0_i32_1 = arith.constant 0 : i32
    return %c0_i32, %c0_i32_0 : i32, i32
  }
  func.func @transform_5(%arg0: i32) -> (i32, i32) {
    %c0_i32 = arith.constant 0 : i32
    %c0_i32_0 = arith.constant 0 : i32
    %c0_i32_1 = arith.constant 0 : i32
    return %c0_i32, %c0_i32_0 : i32, i32
  }
}

</mosaic_0001>

<bundles_post_ra>
// kernel: qnet_forward.3
= control target key start
LH: loop header
LB: loop body
LE: loop exit
PB: predicated region body
PF: predicated region fallthrough
CT: control target
= control target key end

     0   :  { %8 = vsyncpa [#allocation3], 0  ;;  %s388_s12 = smov [#allocation2]   ;;  %s772_s0 = inlined_call_operand.vmem [shape: f32[140,256], index: 0, kind: input, shape index: {}]   ;;  %s773_s1 = inlined_call_operand.vmem [shape: f32[256,64], index: 1, kind: input, shape index: {}]   ;;  %s774_s2 = inlined_call_operand.hbm [shape: f32[1,64], index: 2, kind: input, shape index: {}]   ;;  %s775_s3 = inlined_call_operand.vmem [shape: f32[140,64], index: 3, kind: output, shape index: {}]  }
   0x1   :  { %s19_s13 = sshll.u32 %s388_s12, 4  ;;  %s20_s13 = int_to_ptr.vmem [resolvable:$true] %s19_s13 }
   0x2   :  { %s374_s14 = scalar_lea.vmem %s20_s13, 16  ;;  %s378_s15 = scalar_lea.vmem %s20_s13, 32 }
   0x3   :  { %p375_p0 = scmp.ne.s32.totalorder %s20_s13, %s374_s14  ;;  %p379_p1 = scmp.lt.s32.totalorder %s20_s13, %s20_s13 }
   0x4   :  { %p380_p2 = scmp.lt.s32.totalorder %s378_s15, %s374_s14 }
   0x6   :  { %p381_p3 = por %p380_p2, %p379_p1 }
   0x8   :  { %p382_p4 = pnand %p381_p3, %p375_p0 }
   0xa   :  { %385 = shalt.err (!%p382_p4)
}
   0xb   :  { %22 = dma.hbm_to_vmem [thread:$0]  %s774_s2, 16, %s20_s13, [#allocation3]  }
   0xc   :  { %386 = dma.done.wait [#allocation3], 16  }
   0xd   :  { %387 = vsyncadd [#allocation3], 4294967280  ;;  %v389_v0 = vmov 0.0   ;;  %v77_v1 = vld [vmem:[%s773_s1 + $0x78] sm:$0xff]  ;;  %v76_v2 = vld [vmem:[%s773_s1 + $0x70] sm:$0xff]  ;;  %vm274_vm0 = vcmask 523264  }
   0xe   :  { %101 = vmatprep.subr.mxu0 %v389_v0  ;;  %300 = vmatprep.subr.mxu1 %v389_v0  ;;  %v75_v3 = vld [vmem:[%s773_s1 + $0x68] sm:$0xff]  ;;  %v74_v4 = vld [vmem:[%s773_s1 + $0x60] sm:$0xff]  ;;  %v73_v5 = vld [vmem:[%s773_s1 + $0x58] sm:$0xff]  ;;  %vm292_vm1 = vcmask 519168  }
   0xf   :  { %102 = vmatpush1.msra.mxu0 %v77_v1  ;;  %332 = vmatpush1.msra.mxu1 %v77_v1  ;;  %v72_v6 = vld [vmem:[%s773_s1 + $0x50] sm:$0xff]  ;;  %v71_v7 = vld [vmem:[%s773_s1 + $0x48] sm:$0xff]  ;;  %v70_v8 = vld [vmem:[%s773_s1 + $0x40] sm:$0xff] }
  0x10   :  { %103 = vmatprep.subr.mxu0 %v389_v0  ;;  %301 = vmatprep.subr.mxu1 %v389_v0  ;;  %v69_v9 = vld [vmem:[%s773_s1 + $0x38] sm:$0xff]  ;;  %v68_v10 = vld [vmem:[%s773_s1 + $0x30] sm:$0xff]  ;;  %v67_v11 = vld [vmem:[%s773_s1 + $0x28] sm:$0xff] }
  0x11   :  { %104 = vmatpush1.msra.mxu0 %v76_v2  ;;  %333 = vmatpush1.msra.mxu1 %v76_v2  ;;  %v66_v12 = vld [vmem:[%s773_s1 + $0x20] sm:$0xff]  ;;  %v65_v13 = vld [vmem:[%s773_s1 + $0x18] sm:$0xff]  ;;  %v64_v14 = vld [vmem:[%s773_s1 + $0x10] sm:$0xff] }
  0x12   :  { %105 = vmatprep.subr.mxu0 %v389_v0  ;;  %302 = vmatprep.subr.mxu1 %v389_v0  ;;  %v63_v15 = vld [vmem:[%s773_s1 + $0x8] sm:$0xff]  ;;  %v62_v16 = vld [vmem:[%s773_s1] sm:$0xff]  ;;  %v93_v17 = vld [vmem:[%s773_s1 + $0xf8] sm:$0xff] }
  0x13   :  { %106 = vmatpush1.msra.mxu0 %v75_v3  ;;  %334 = vmatpush1.msra.mxu1 %v75_v3  ;;  %v92_v18 = vld [vmem:[%s773_s1 + $0xf0] sm:$0xff]  ;;  %v91_v19 = vld [vmem:[%s773_s1 + $0xe8] sm:$0xff]  ;;  %v90_v20 = vld [vmem:[%s773_s1 + $0xe0] sm:$0xff] }
  0x14   :  { %107 = vmatprep.subr.mxu0 %v389_v0  ;;  %303 = vmatprep.subr.mxu1 %v389_v0  ;;  %v89_v21 = vld [vmem:[%s773_s1 + $0xd8] sm:$0xff]  ;;  %v88_v22 = vld [vmem:[%s773_s1 + $0xd0] sm:$0xff]  ;;  %v87_v23 = vld [vmem:[%s773_s1 + $0xc8] sm:$0xff] }
  0x15   :  { %108 = vmatpush1.msra.mxu0 %v74_v4  ;;  %335 = vmatpush1.msra.mxu1 %v74_v4  ;;  %v86_v24 = vld [vmem:[%s773_s1 + $0xc0] sm:$0xff]  ;;  %v85_v25 = vld [vmem:[%s773_s1 + $0xb8] sm:$0xff]  ;;  %v84_v26 = vld [vmem:[%s773_s1 + $0xb0] sm:$0xff] }
  0x16   :  { %109 = vmatprep.subr.mxu0 %v389_v0  ;;  %304 = vmatprep.subr.mxu1 %v389_v0  ;;  %v83_v27 = vld [vmem:[%s773_s1 + $0xa8] sm:$0xff]  ;;  %v82_v28 = vld [vmem:[%s773_s1 + $0xa0] sm:$0xff]  ;;  %v81_v29 = vld [vmem:[%s773_s1 + $0x98] sm:$0xff] }
  0x17   :  { %110 = vmatpush1.msra.mxu0 %v73_v5  ;;  %336 = vmatpush1.msra.mxu1 %v73_v5  ;;  %v80_v30 = vld [vmem:[%s773_s1 + $0x90] sm:$0xff]  ;;  %v79_v31 = vld [vmem:[%s773_s1 + $0x88] sm:$0xff]  ;;  %v78_v32 = vld [vmem:[%s773_s1 + $0x80] sm:$0xff] }
  0x18   :  { %111 = vmatprep.subr.mxu0 %v389_v0  ;;  %305 = vmatprep.subr.mxu1 %v389_v0  ;;  %v27_v33 = vld [vmem:[%s772_s0 + $0x8] sm:$0xff]  ;;  %v45_v34 = vld [vmem:[%s772_s0 + $0x98] sm:$0xff]  ;;  %v26_v35 = vld [vmem:[%s772_s0] sm:$0xff] }
  0x19   :  { %112 = vmatpush1.msra.mxu0 %v72_v6  ;;  %337 = vmatpush1.msra.mxu1 %v72_v6  ;;  %v44_v36 = vld [vmem:[%s772_s0 + $0x90] sm:$0xff]  ;;  %v29_v37 = vld [vmem:[%s772_s0 + $0x18] sm:$0xff]  ;;  %v47_v38 = vld [vmem:[%s772_s0 + $0xa8] sm:$0xff] }
  0x1a   :  { %113 = vmatprep.subr.mxu0 %v389_v0  ;;  %306 = vmatprep.subr.mxu1 %v389_v0  ;;  %v28_v39 = vld [vmem:[%s772_s0 + $0x10] sm:$0xff]  ;;  %v46_v40 = vld [vmem:[%s772_s0 + $0xa0] sm:$0xff]  ;;  %v31_v41 = vld [vmem:[%s772_s0 + $0x28] sm:$0xff] }
  0x1b   :  { %114 = vmatpush1.msra.mxu0 %v71_v7  ;;  %338 = vmatpush1.msra.mxu1 %v71_v7  ;;  %v49_v42 = vld [vmem:[%s772_s0 + $0xb8] sm:$0xff]  ;;  %v30_v43 = vld [vmem:[%s772_s0 + $0x20] sm:$0xff]  ;;  %v48_v44 = vld [vmem:[%s772_s0 + $0xb0] sm:$0xff] }
  0x1c   :  { %115 = vmatprep.subr.mxu0 %v389_v0  ;;  %307 = vmatprep.subr.mxu1 %v389_v0  ;;  %v33_v45 = vld [vmem:[%s772_s0 + $0x38] sm:$0xff]  ;;  %v51_v46 = vld [vmem:[%s772_s0 + $0xc8] sm:$0xff]  ;;  %v32_v47 = vld [vmem:[%s772_s0 + $0x30] sm:$0xff] }
  0x1d   :  { %116 = vmatpush1.msra.mxu0 %v70_v8  ;;  %339 = vmatpush1.msra.mxu1 %v70_v8  ;;  %v50_v48 = vld [vmem:[%s772_s0 + $0xc0] sm:$0xff]  ;;  %v35_v49 = vld [vmem:[%s772_s0 + $0x48] sm:$0xff]  ;;  %v53_v50 = vld [vmem:[%s772_s0 + $0xd8] sm:$0xff] }
  0x1e   :  { %117 = vmatprep.subr.mxu0 %v389_v0  ;;  %308 = vmatprep.subr.mxu1 %v389_v0  ;;  %v34_v51 = vld [vmem:[%s772_s0 + $0x40] sm:$0xff]  ;;  %v52_v52 = vld [vmem:[%s772_s0 + $0xd0] sm:$0xff]  ;;  %v37_v53 = vld [vmem:[%s772_s0 + $0x58] sm:$0xff] }
  0x1f   :  { %118 = vmatpush1.msra.mxu0 %v69_v9  ;;  %340 = vmatpush1.msra.mxu1 %v69_v9  ;;  %v55_v54 = vld [vmem:[%s772_s0 + $0xe8] sm:$0xff]  ;;  %v36_v55 = vld [vmem:[%s772_s0 + $0x50] sm:$0xff]  ;;  %v54_v56 = vld [vmem:[%s772_s0 + $0xe0] sm:$0xff] }
  0x20   :  { %119 = vmatprep.subr.mxu0 %v389_v0  ;;  %309 = vmatprep.subr.mxu1 %v389_v0  ;;  %v39_v57 = vld [vmem:[%s772_s0 + $0x68] sm:$0xff]  ;;  %v57_v58 = vld [vmem:[%s772_s0 + $0xf8] sm:$0xff]  ;;  %v38_v59 = vld [vmem:[%s772_s0 + $0x60] sm:$0xff] }
  0x21   :  { %120 = vmatpush1.msra.mxu0 %v68_v10  ;;  %341 = vmatpush1.msra.mxu1 %v68_v10  ;;  %v56_v60 = vld [vmem:[%s772_s0 + $0xf0] sm:$0xff]  ;;  %v41_v61 = vld [vmem:[%s772_s0 + $0x78] sm:$0xff]  ;;  %v59_v62 = vld [vmem:[%s772_s0 + $0x108] sm:$0xff] }
  0x22   :  { %121 = vmatprep.subr.mxu0 %v389_v0  ;;  %310 = vmatprep.subr.mxu1 %v389_v0  ;;  %v40_v63 = vld [vmem:[%s772_s0 + $0x70] sm:$0xff]  ;;  %v43_v1 = vld [vmem:[%s772_s0 + $0x88] sm:$0xff]  ;;  %v61_v2 = vld [vmem:[%s772_s0 + $0x118] sm:$0xf] }
  0x23   :  { %122 = vmatpush1.msra.mxu0 %v67_v11  ;;  %342 = vmatpush1.msra.mxu1 %v67_v11  ;;  %v42_v3 = vld [vmem:[%s772_s0 + $0x80] sm:$0xff]  ;;  %v60_v4 = vld [vmem:[%s772_s0 + $0x110] sm:$0xf] }
  0x24   :  { %123 = vmatprep.subr.mxu0 %v389_v0  ;;  %311 = vmatprep.subr.mxu1 %v389_v0  ;;  %v681_v5 = vld [vmem:[#allocation2] ss:$0 sm:$0xff] }
  0x25   :  { %124 = vmatpush1.msra.mxu0 %v66_v12  ;;  %343 = vmatpush1.msra.mxu1 %v66_v12 }
  0x26   :  { %125 = vmatprep.subr.mxu0 %v389_v0  ;;  %312 = vmatprep.subr.mxu1 %v389_v0 }
  0x27   :  { %126 = vmatpush1.msra.mxu0 %v65_v13  ;;  %344 = vmatpush1.msra.mxu1 %v65_v13 }
  0x28   :  { %127 = vmatprep.subr.mxu0 %v389_v0  ;;  %313 = vmatprep.subr.mxu1 %v389_v0 }
  0x29   :  { %128 = vmatpush1.msra.mxu0 %v64_v14  ;;  %345 = vmatpush1.msra.mxu1 %v64_v14 }
  0x2a   :  { %129 = vmatprep.subr.mxu0 %v389_v0  ;;  %314 = vmatprep.subr.mxu1 %v389_v0 }
  0x2b   :  { %130 = vmatpush1.msra.mxu0 %v63_v15  ;;  %346 = vmatpush1.msra.mxu1 %v63_v15 }
  0x2c   :  { %131 = vmatprep.subr.mxu0 %v389_v0  ;;  %315 = vmatprep.subr.mxu1 %v389_v0 }
  0x2d   :  { %132 = vmatpush1.msra.mxu0 %v62_v16  ;;  %347 = vmatpush1.msra.mxu1 %v62_v16 }
  0x2e   :  { %133 = vmatprep.subr.mxu0 %v389_v0  ;;  %316 = vmatprep.subr.mxu1 %v389_v0 }
  0x2f   :  { %134 = vmatpush2.msra.mxu0 %v93_v17  ;;  %348 = vmatpush2.msra.mxu1 %v93_v17 }
  0x30   :  { %135 = vmatprep.subr.mxu0 %v389_v0  ;;  %317 = vmatprep.subr.mxu1 %v389_v0 }
  0x31   :  { %136 = vmatpush2.msra.mxu0 %v92_v18  ;;  %349 = vmatpush2.msra.mxu1 %v92_v18 }
  0x32   :  { %137 = vmatprep.subr.mxu0 %v389_v0  ;;  %318 = vmatprep.subr.mxu1 %v389_v0 }
  0x33   :  { %138 = vmatpush2.msra.mxu0 %v91_v19  ;;  %350 = vmatpush2.msra.mxu1 %v91_v19 }
  0x34   :  { %139 = vmatprep.subr.mxu0 %v389_v0  ;;  %319 = vmatprep.subr.mxu1 %v389_v0 }
  0x35   :  { %140 = vmatpush2.msra.mxu0 %v90_v20  ;;  %351 = vmatpush2.msra.mxu1 %v90_v20 }
  0x36   :  { %141 = vmatprep.subr.mxu0 %v389_v0  ;;  %320 = vmatprep.subr.mxu1 %v389_v0 }
  0x37   :  { %142 = vmatpush2.msra.mxu0 %v89_v21  ;;  %352 = vmatpush2.msra.mxu1 %v89_v21 }
  0x38   :  { %143 = vmatprep.subr.mxu0 %v389_v0  ;;  %321 = vmatprep.subr.mxu1 %v389_v0 }
  0x39   :  { %144 = vmatpush2.msra.mxu0 %v88_v22  ;;  %353 = vmatpush2.msra.mxu1 %v88_v22 }
  0x3a   :  { %145 = vmatprep.subr.mxu0 %v389_v0  ;;  %322 = vmatprep.subr.mxu1 %v389_v0 }
  0x3b   :  { %146 = vmatpush2.msra.mxu0 %v87_v23  ;;  %354 = vmatpush2.msra.mxu1 %v87_v23 }
  0x3c   :  { %147 = vmatprep.subr.mxu0 %v389_v0  ;;  %323 = vmatprep.subr.mxu1 %v389_v0 }
  0x3d   :  { %148 = vmatpush2.msra.mxu0 %v86_v24  ;;  %355 = vmatpush2.msra.mxu1 %v86_v24 }
  0x3e   :  { %149 = vmatprep.subr.mxu0 %v389_v0  ;;  %324 = vmatprep.subr.mxu1 %v389_v0 }
  0x3f   :  { %150 = vmatpush2.msra.mxu0 %v85_v25  ;;  %356 = vmatpush2.msra.mxu1 %v85_v25 }
  0x40   :  { %151 = vmatprep.subr.mxu0 %v389_v0  ;;  %325 = vmatprep.subr.mxu1 %v389_v0 }
  0x41   :  { %152 = vmatpush2.msra.mxu0 %v84_v26  ;;  %357 = vmatpush2.msra.mxu1 %v84_v26 }
  0x42   :  { %153 = vmatprep.subr.mxu0 %v389_v0  ;;  %326 = vmatprep.subr.mxu1 %v389_v0 }
  0x43   :  { %154 = vmatpush2.msra.mxu0 %v83_v27  ;;  %358 = vmatpush2.msra.mxu1 %v83_v27 }
  0x44   :  { %155 = vmatprep.subr.mxu0 %v389_v0  ;;  %327 = vmatprep.subr.mxu1 %v389_v0 }
  0x45   :  { %156 = vmatpush2.msra.mxu0 %v82_v28  ;;  %359 = vmatpush2.msra.mxu1 %v82_v28 }
  0x46   :  { %157 = vmatprep.subr.mxu0 %v389_v0  ;;  %328 = vmatprep.subr.mxu1 %v389_v0 }
  0x47   :  { %158 = vmatpush2.msra.mxu0 %v81_v29  ;;  %360 = vmatpush2.msra.mxu1 %v81_v29 }
  0x48   :  { %159 = vmatprep.subr.mxu0 %v389_v0  ;;  %329 = vmatprep.subr.mxu1 %v389_v0 }
  0x49   :  { %160 = vmatpush2.msra.mxu0 %v80_v30  ;;  %361 = vmatpush2.msra.mxu1 %v80_v30 }
  0x4a   :  { %161 = vmatprep.subr.mxu0 %v389_v0  ;;  %330 = vmatprep.subr.mxu1 %v389_v0 }
  0x4b   :  { %162 = vmatpush2.msra.mxu0 %v79_v31  ;;  %362 = vmatpush2.msra.mxu1 %v79_v31 }
  0x4c   :  { %163 = vmatprep.subr.mxu0 %v389_v0  ;;  %331 = vmatprep.subr.mxu1 %v389_v0  ;;  %v58_v0 = vld [vmem:[%s772_s0 + $0x100] sm:$0xff] }
  0x4d   :  { %164 = vmatpush2.msra.mxu0 %v78_v32  ;;  %363 = vmatpush2.msra.mxu1 %v78_v32 }
  0x4e   :  { %165 = vmatprep.mubr.f32.mxu0 %v27_v33  ;;  %210 = vmatprep.mubr.f32.mxu1 %v45_v34 }
  0x4f   :  { %166 = vmatmul.mubr.f32.vlgmr.msra.gmra.mxu0 %v26_v35  ;;  %211 = vmatmul.mubr.f32.vlgmr.msra.gmra.mxu1 %v44_v36 }
  0x50   :  { %170 = vmatprep.mubr.f32.mxu0 %v29_v37  ;;  %215 = vmatprep.mubr.f32.mxu1 %v47_v38 }
  0x53   :  { %171 = vmatmul.mubr.f32.gmra.mxu0 %v28_v39  ;;  %216 = vmatmul.mubr.f32.gmra.mxu1 %v46_v40 }
  0x54   :  { %175 = vmatprep.mubr.f32.mxu0 %v31_v41  ;;  %220 = vmatprep.mubr.f32.mxu1 %v49_v42 }
  0x57   :  { %176 = vmatmul.mubr.f32.gmra.mxu0 %v30_v43  ;;  %221 = vmatmul.mubr.f32.gmra.mxu1 %v48_v44 }
  0x58   :  { %180 = vmatprep.mubr.f32.mxu0 %v33_v45  ;;  %225 = vmatprep.mubr.f32.mxu1 %v51_v46 }
  0x5b   :  { %181 = vmatmul.mubr.f32.gmra.mxu0 %v32_v47  ;;  %226 = vmatmul.mubr.f32.gmra.mxu1 %v50_v48 }
  0x5c   :  { %185 = vmatprep.mubr.f32.mxu0 %v35_v49  ;;  %230 = vmatprep.mubr.f32.mxu1 %v53_v50 }
  0x5f   :  { %186 = vmatmul.mubr.f32.gmra.mxu0 %v34_v51  ;;  %231 = vmatmul.mubr.f32.gmra.mxu1 %v52_v52 }
  0x60   :  { %190 = vmatprep.mubr.f32.mxu0 %v37_v53  ;;  %235 = vmatprep.mubr.f32.mxu1 %v55_v54 }
  0x63   :  { %191 = vmatmul.mubr.f32.gmra.mxu0 %v36_v55  ;;  %236 = vmatmul.mubr.f32.gmra.mxu1 %v54_v56 }
  0x64   :  { %195 = vmatprep.mubr.f32.mxu0 %v39_v57  ;;  %240 = vmatprep.mubr.f32.mxu1 %v57_v58 }
  0x67   :  { %196 = vmatmul.mubr.f32.gmra.mxu0 %v38_v59  ;;  %241 = vmatmul.mubr.f32.gmra.mxu1 %v56_v60 }
  0x68   :  { %200 = vmatprep.mubr.f32.mxu0 %v41_v61  ;;  %245 = vmatprep.mubr.f32.mxu1 %v59_v62 }
  0x6b   :  { %201 = vmatmul.mubr.f32.gmra.mxu0 %v40_v63  ;;  %246 = vmatmul.mubr.f32.gmra.mxu1 %v58_v0 }
  0x6c   :  { %205 = vmatprep.mubr.f32.mxu0 %v43_v1  ;;  %250 = vmatprep.mubr.f32.mxu1 %v61_v2 }
  0x6f   :  { %206 = vmatmul.mubr.f32.gmra.mxu0 %v42_v3  ;;  %251 = vmatmul.mubr.f32.gmra.mxu1 %v60_v4 }
 0x10f   :  { %v167_v6 = vpop.f32.mrf.mxu0  ;;  %v212_v7 = vpop.f32.mrf.mxu1 }
 0x110   :  { %v168_v8 = vadd.f32 %v681_v5, %v167_v6  ;;  %v213_v9 = vadd.f32 %v681_v5, %v212_v7 }
 0x111   :  { %v169_v10 = vpop.f32.mrf.mxu0  ;;  %v214_v11 = vpop.f32.mrf.mxu1 }
 0x112   :  { %v256_v12 = vmax.f32 %v168_v8, 0.0  ;;  %v265_v13 = vmax.f32 %v213_v9, 0.0 }
 0x113   :  { %v172_v14 = vpop.f32.mrf.mxu0  ;;  %v217_v15 = vpop.f32.mrf.mxu1 }
 0x114   :  { %275 = vst.msk [vmem:[%s775_s3] sm:$0xff] %vm274_vm0, %v256_v12  ;;  %284 = vst.msk [vmem:[%s775_s3 + $0x48] sm:$0xff] %vm274_vm0, %v265_v13  ;;  %v173_v16 = vadd.f32 %v681_v5, %v172_v14  ;;  %v218_v17 = vadd.f32 %v681_v5, %v217_v15 }
 0x115   :  { %v174_v18 = vpop.f32.mrf.mxu0  ;;  %v219_v19 = vpop.f32.mrf.mxu1 }
 0x116   :  { %v257_v20 = vmax.f32 %v173_v16, 0.0  ;;  %v266_v21 = vmax.f32 %v218_v17, 0.0 }
 0x117   :  { %v177_v22 = vpop.f32.mrf.mxu0  ;;  %v222_v23 = vpop.f32.mrf.mxu1 }
 0x118   :  { %276 = vst.msk [vmem:[%s775_s3 + $0x8] sm:$0xff] %vm274_vm0, %v257_v20  ;;  %285 = vst.msk [vmem:[%s775_s3 + $0x50] sm:$0xff] %vm274_vm0, %v266_v21  ;;  %v178_v24 = vadd.f32 %v681_v5, %v177_v22  ;;  %v223_v25 = vadd.f32 %v681_v5, %v222_v23 }
 0x119   :  { %v179_v26 = vpop.f32.mrf.mxu0  ;;  %v224_v27 = vpop.f32.mrf.mxu1 }
 0x11a   :  { %v258_v28 = vmax.f32 %v178_v24, 0.0  ;;  %v267_v29 = vmax.f32 %v223_v25, 0.0 }
 0x11b   :  { %v182_v30 = vpop.f32.mrf.mxu0  ;;  %v227_v31 = vpop.f32.mrf.mxu1 }
 0x11c   :  { %277 = vst.msk [vmem:[%s775_s3 + $0x10] sm:$0xff] %vm274_vm0, %v258_v28  ;;  %286 = vst.msk [vmem:[%s775_s3 + $0x58] sm:$0xff] %vm274_vm0, %v267_v29  ;;  %v183_v32 = vadd.f32 %v681_v5, %v182_v30  ;;  %v228_v33 = vadd.f32 %v681_v5, %v227_v31 }
 0x11d   :  { %v184_v34 = vpop.f32.mrf.mxu0  ;;  %v229_v35 = vpop.f32.mrf.mxu1 }
 0x11e   :  { %v259_v36 = vmax.f32 %v183_v32, 0.0  ;;  %v268_v37 = vmax.f32 %v228_v33, 0.0 }
 0x11f   :  { %v187_v38 = vpop.f32.mrf.mxu0  ;;  %v232_v39 = vpop.f32.mrf.mxu1 }
 0x120   :  { %278 = vst.msk [vmem:[%s775_s3 + $0x18] sm:$0xff] %vm274_vm0, %v259_v36  ;;  %287 = vst.msk [vmem:[%s775_s3 + $0x60] sm:$0xff] %vm274_vm0, %v268_v37  ;;  %v188_v40 = vadd.f32 %v681_v5, %v187_v38  ;;  %v233_v41 = vadd.f32 %v681_v5, %v232_v39 }
 0x121   :  { %v189_v42 = vpop.f32.mrf.mxu0  ;;  %v234_v43 = vpop.f32.mrf.mxu1 }
 0x122   :  { %v260_v44 = vmax.f32 %v188_v40, 0.0  ;;  %v269_v45 = vmax.f32 %v233_v41, 0.0 }
 0x123   :  { %v192_v46 = vpop.f32.mrf.mxu0  ;;  %v237_v47 = vpop.f32.mrf.mxu1 }
 0x124   :  { %279 = vst.msk [vmem:[%s775_s3 + $0x20] sm:$0xff] %vm274_vm0, %v260_v44  ;;  %288 = vst.msk [vmem:[%s775_s3 + $0x68] sm:$0xff] %vm274_vm0, %v269_v45  ;;  %v193_v48 = vadd.f32 %v681_v5, %v192_v46  ;;  %v238_v49 = vadd.f32 %v681_v5, %v237_v47 }
 0x125   :  { %v194_v50 = vpop.f32.mrf.mxu0  ;;  %v239_v51 = vpop.f32.mrf.mxu1 }
 0x126   :  { %v261_v52 = vmax.f32 %v193_v48, 0.0  ;;  %v270_v53 = vmax.f32 %v238_v49, 0.0 }
 0x127   :  { %v197_v54 = vpop.f32.mrf.mxu0  ;;  %v242_v55 = vpop.f32.mrf.mxu1 }
 0x128   :  { %280 = vst.msk [vmem:[%s775_s3 + $0x28] sm:$0xff] %vm274_vm0, %v261_v52  ;;  %289 = vst.msk [vmem:[%s775_s3 + $0x70] sm:$0xff] %vm274_vm0, %v270_v53  ;;  %v198_v56 = vadd.f32 %v681_v5, %v197_v54  ;;  %v243_v57 = vadd.f32 %v681_v5, %v242_v55 }
 0x129   :  { %v199_v58 = vpop.f32.mrf.mxu0  ;;  %v244_v59 = vpop.f32.mrf.mxu1 }
 0x12a   :  { %v262_v60 = vmax.f32 %v198_v56, 0.0  ;;  %v271_v61 = vmax.f32 %v243_v57, 0.0 }
 0x12b   :  { %v202_v62 = vpop.f32.mrf.mxu0  ;;  %v247_v63 = vpop.f32.mrf.mxu1 }
 0x12c   :  { %281 = vst.msk [vmem:[%s775_s3 + $0x30] sm:$0xff] %vm274_vm0, %v262_v60  ;;  %290 = vst.msk [vmem:[%s775_s3 + $0x78] sm:$0xff] %vm274_vm0, %v271_v61  ;;  %v203_v0 = vadd.f32 %v681_v5, %v202_v62  ;;  %v248_v1 = vadd.f32 %v681_v5, %v247_v63 }
 0x12d   :  { %v204_v2 = vpop.f32.mrf.mxu0  ;;  %v249_v3 = vpop.f32.mrf.mxu1 }
 0x12e   :  { %v263_v4 = vmax.f32 %v203_v0, 0.0  ;;  %v272_v6 = vmax.f32 %v248_v1, 0.0 }
 0x12f   :  { %v207_v7 = vpop.f32.mrf.mxu0  ;;  %v252_v8 = vpop.f32.mrf.mxu1 }
 0x130   :  { %282 = vst.msk [vmem:[%s775_s3 + $0x38] sm:$0xff] %vm274_vm0, %v263_v4  ;;  %291 = vst.msk [vmem:[%s775_s3 + $0x80] sm:$0xff] %vm274_vm0, %v272_v6  ;;  %v208_v9 = vadd.f32 %v681_v5, %v207_v7  ;;  %v253_v10 = vadd.f32 %v681_v5, %v252_v8 }
 0x131   :  { %v209_v11 = vpop.f32.mrf.mxu0  ;;  %v254_v12 = vpop.f32.mrf.mxu1 }
 0x132   :  { %v264_v13 = vmax.f32 %v208_v9, 0.0  ;;  %v273_v14 = vmax.f32 %v253_v10, 0.0 }
 0x134   :  { %283 = vst.msk [vmem:[%s775_s3 + $0x40] sm:$0xff] %vm274_vm0, %v264_v13 }
 0x135   :  { %293 = vst.msk [vmem:[%s775_s3 + $0x88] sm:$0xf] %vm292_vm1, %v273_v14 }
 0x136   :  { %298 = vsyncpa [#allocation3], 1 }

// kernel: qnet_forward.4
= control target key start
LH: loop header
LB: loop body
LE: loop exit
PB: predicated region body
PF: predicated region fallthrough
CT: control target
= control target key end

     0   :  { %10 = vsyncpa [#allocation3], 0  ;;  %s956_s0 = inlined_call_operand.vmem [shape: f32[104,256], index: 0, kind: input, shape index: {}]   ;;  %s957_s1 = inlined_call_operand.hbm [shape: f32[256,128], index: 1, kind: input, shape index: {}]   ;;  %s958_s2 = inlined_call_operand.hbm [shape: f32[1,128], index: 2, kind: input, shape index: {}]   ;;  %s959_s3 = inlined_call_operand.hbm [shape: f32[128,128], index: 3, kind: input, shape index: {}]   ;;  %s960_s4 = inlined_call_operand.hbm [shape: f32[1,128], index: 4, kind: input, shape index: {}]   ;;  %s961_s5 = inlined_call_operand.vmem [shape: f32[104,128], index: 5, kind: output, shape index: {}]  }
   0x1   :  { %11 = vsyncpa [#allocation5], 0 }
   0x2   :  { %12 = vsyncpa [#allocation8], 0  ;;  %s732_s18 = smov [#allocation4]   ;;  %s733_s20 = smov [#allocation2]  }
   0x3   :  { %s33_s19 = sshll.u32 %s732_s18, 4  ;;  %s20_s21 = sshll.u32 %s733_s20, 4  ;;  %s34_s19 = int_to_ptr.vmem [resolvable:$true] %s33_s19  ;;  %s21_s21 = int_to_ptr.vmem [resolvable:$true] %s20_s21 }
   0x4   :  { %s654_s22 = scalar_lea.vmem %s34_s19, 16  ;;  %s658_s23 = scalar_lea.vmem %s34_s19, 32 }
   0x5   :  { %p655_p0 = scmp.ne.s32.totalorder %s34_s19, %s654_s22  ;;  %p659_p1 = scmp.lt.s32.totalorder %s34_s19, %s34_s19 }
   0x6   :  { %p660_p2 = scmp.lt.s32.totalorder %s658_s23, %s654_s22 }
   0x8   :  { %p661_p3 = por %p660_p2, %p659_p1 }
   0xa   :  { %p662_p4 = pnand %p661_p3, %p655_p0 }
   0xc   :  { %665 = shalt.err (!%p662_p4)
}
   0xd   :  { %36 = dma.hbm_to_vmem [thread:$0]  %s958_s2, 16, %s34_s19, [#allocation5]  }
   0xe   :  { %s674_s26 = scalar_lea.vmem %s21_s21, 4096  ;;  %p679_p6 = scmp.lt.s32.totalorder %s21_s21, %s21_s21 }
   0xf   :  { %p675_p5 = scmp.ne.s32.totalorder %s21_s21, %s674_s26  ;;  %p680_p7 = scmp.lt.s32.totalorder %s674_s26, %s674_s26 }
  0x11   :  { %p681_p8 = por %p680_p7, %p679_p6 }
  0x13   :  { %p682_p9 = pnand %p681_p8, %p675_p5 }
  0x15   :  { %685 = shalt.err (!%p682_p9)
}
  0x16   :  { %s734_s27 = smov 128   ;;  %s735_s28 = smov 8  }
  0x17   :  { %26 = dma.hbm_to_vmem [thread:$0]  %s957_s1, 4096, %s21_s21, [#allocation3], %s734_s27, %s734_s27, %s735_s28  }
  0x18   :  { %s736_s6 = smov [#allocation6]   ;;  %s737_s8 = smov [#allocation7]  }
  0x19   :  { %s42_s7 = sshll.u32 %s736_s6, 4  ;;  %s55_s9 = sshll.u32 %s737_s8, 4  ;;  %s43_s7 = int_to_ptr.vmem [resolvable:$true] %s42_s7  ;;  %s56_s9 = int_to_ptr.vmem [resolvable:$true] %s55_s9 }
  0x1a   :  { %s694_s2 = scalar_lea.vmem %s43_s7, 2048  ;;  %p699_p11 = scmp.lt.s32.totalorder %s43_s7, %s43_s7 }
  0x1b   :  { %p695_p10 = scmp.ne.s32.totalorder %s43_s7, %s694_s2  ;;  %p700_p12 = scmp.lt.s32.totalorder %s694_s2, %s694_s2 }
  0x1d   :  { %p701_p13 = por %p700_p12, %p699_p11 }
  0x1f   :  { %p702_p0 = pnand %p701_p13, %p695_p10 }
  0x21   :  { %705 = shalt.err (!%p702_p0)
}
  0x22   :  { %48 = dma.hbm_to_vmem [thread:$0]  %s959_s3, 2048, %s43_s7, [#allocation5], %s734_s27, %s734_s27, %s735_s28  }
  0x23   :  { %s714_s12 = scalar_lea.vmem %s56_s9, 16  ;;  %s718_s1 = scalar_lea.vmem %s56_s9, 32 }
  0x24   :  { %p715_p1 = scmp.ne.s32.totalorder %s56_s9, %s714_s12  ;;  %p719_p2 = scmp.lt.s32.totalorder %s56_s9, %s56_s9 }
  0x25   :  { %p720_p3 = scmp.lt.s32.totalorder %s718_s1, %s714_s12 }
  0x27   :  { %p721_p4 = por %p720_p3, %p719_p2 }
  0x29   :  { %p722_p5 = pnand %p721_p4, %p715_p1 }
  0x2b   :  { %725 = shalt.err (!%p722_p5)
}
  0x2c   :  { %58 = dma.hbm_to_vmem [thread:$0]  %s960_s4, 16, %s56_s9, [#allocation8]  }
  0x2d   :  { %726 = dma.done.wait [#allocation3], 4096  }
  0x2e   :  { %727 = vsyncadd [#allocation3], 4294963200 }
  0x2f   :  { %728 = dma.done.wait [#allocation5], 2064  }
  0x30   :  { %729 = vsyncadd [#allocation5], 4294965232 }
  0x31   :  { %730 = dma.done.wait [#allocation8], 16  }
  0x32   :  { %731 = vsyncadd [#allocation8], 4294967280  ;;  %v738_v0 = vmov 0.0   ;;  %v128_v1 = vld [vmem:[#allocation2 + $0xf8] sm:$0xff]  ;;  %v127_v3 = vld [vmem:[#allocation2 + $0xf0] sm:$0xff]  ;;  %vm739_vm0 = vmmov 0  }
  0x33   :  { %567 = vmatprep.subr.mxu1 %v738_v0  ;;  %v112_v2 = vld [vmem:[#allocation2 + $0x78] sm:$0xff]  ;;  %467 = vmatprep.subr.mxu0 %v128_v1  ;;  %v111_v4 = vld [vmem:[#allocation2 + $0x70] sm:$0xff]  ;;  %v126_v5 = vld [vmem:[#allocation2 + $0xe8] sm:$0xff] }
  0x34   :  { %468 = vmatpush3.msra.mxu0 %v112_v2  ;;  %v110_v6 = vld [vmem:[#allocation2 + $0x68] sm:$0xff]  ;;  %v125_v7 = vld [vmem:[#allocation2 + $0xe0] sm:$0xff]  ;;  %v124_v9 = vld [vmem:[#allocation2 + $0xd8] sm:$0xff]  ;;  %599 = vmatprep.mubr.msk.f32.mxu1 %vm739_vm0, %v738_v0 }
  0x35   :  { %469 = vmatprep.subr.mxu0 %v127_v3  ;;  %v109_v8 = vld [vmem:[#allocation2 + $0x60] sm:$0xff]  ;;  %v108_v10 = vld [vmem:[#allocation2 + $0x58] sm:$0xff]  ;;  %v123_v11 = vld [vmem:[#allocation2 + $0xd0] sm:$0xff] }
  0x36   :  { %470 = vmatpush3.msra.mxu0 %v111_v4  ;;  %v107_v12 = vld [vmem:[#allocation2 + $0x50] sm:$0xff]  ;;  %v122_v13 = vld [vmem:[#allocation2 + $0xc8] sm:$0xff]  ;;  %v121_v16 = vld [vmem:[#allocation2 + $0xc0] sm:$0xff] }
  0x37   :  { %471 = vmatprep.subr.mxu0 %v126_v5  ;;  %v72_v14 = vld [vmem:[%s956_s0 + $0x8] sm:$0xff]  ;;  %v105_v17 = vld [vmem:[#allocation2 + $0x40] sm:$0xff]  ;;  %v120_v18 = vld [vmem:[#allocation2 + $0xb8] sm:$0xff] }
  0x38   :  { %472 = vmatpush3.msra.mxu0 %v110_v6  ;;  %v106_v15 = vld [vmem:[#allocation2 + $0x48] sm:$0xff]  ;;  %200 = vmatprep.mubr.f32.mxu0 %v72_v14  ;;  %v104_v19 = vld [vmem:[#allocation2 + $0x38] sm:$0xff]  ;;  %v119_v20 = vld [vmem:[#allocation2 + $0xb0] sm:$0xff] }
  0x39   :  { %473 = vmatprep.subr.mxu0 %v125_v7  ;;  %v103_v21 = vld [vmem:[#allocation2 + $0x30] sm:$0xff]  ;;  %v118_v22 = vld [vmem:[#allocation2 + $0xa8] sm:$0xff]  ;;  %v294_v24 = vld [vmem:[#allocation6 + $0x78] sm:$0xff] }
  0x3a   :  { %474 = vmatpush3.msra.mxu0 %v109_v8  ;;  %v102_v23 = vld [vmem:[#allocation2 + $0x28] sm:$0xff]  ;;  %v293_v25 = vld [vmem:[#allocation6 + $0x70] sm:$0xff]  ;;  %v117_v26 = vld [vmem:[#allocation2 + $0xa0] sm:$0xff]  ;;  %568 = vmatpush3.msra.mxu1 %v294_v24 }
  0x3b   :  { %475 = vmatprep.subr.mxu0 %v124_v9  ;;  %v101_v27 = vld [vmem:[#allocation2 + $0x20] sm:$0xff]  ;;  %569 = vmatprep.subr.mxu1 %v738_v0  ;;  %v292_v28 = vld [vmem:[#allocation6 + $0x68] sm:$0xff]  ;;  %v116_v29 = vld [vmem:[#allocation2 + $0x98] sm:$0xff] }
  0x3c   :  { %476 = vmatpush3.msra.mxu0 %v108_v10  ;;  %570 = vmatpush3.msra.mxu1 %v293_v25  ;;  %v100_v30 = vld [vmem:[#allocation2 + $0x18] sm:$0xff]  ;;  %v291_v31 = vld [vmem:[#allocation6 + $0x60] sm:$0xff]  ;;  %v115_v32 = vld [vmem:[#allocation2 + $0x90] sm:$0xff] }
  0x3d   :  { %477 = vmatprep.subr.mxu0 %v123_v11  ;;  %571 = vmatprep.subr.mxu1 %v738_v0  ;;  %v99_v33 = vld [vmem:[#allocation2 + $0x10] sm:$0xff]  ;;  %v290_v34 = vld [vmem:[#allocation6 + $0x58] sm:$0xff]  ;;  %v114_v35 = vld [vmem:[#allocation2 + $0x88] sm:$0xff] }
  0x3e   :  { %478 = vmatpush3.msra.mxu0 %v107_v12  ;;  %572 = vmatpush3.msra.mxu1 %v292_v28  ;;  %v98_v36 = vld [vmem:[#allocation2 + $0x8] sm:$0xff]  ;;  %v289_v37 = vld [vmem:[#allocation6 + $0x50] sm:$0xff]  ;;  %v113_v38 = vld [vmem:[#allocation2 + $0x80] sm:$0xff] }
  0x3f   :  { %479 = vmatprep.subr.mxu0 %v122_v13  ;;  %573 = vmatprep.subr.mxu1 %v738_v0  ;;  %v97_v39 = vld [vmem:[#allocation2] sm:$0xff]  ;;  %v288_v40 = vld [vmem:[#allocation6 + $0x48] sm:$0xff]  ;;  %v74_v42 = vld [vmem:[%s956_s0 + $0x18] sm:$0xff] }
  0x40   :  { %480 = vmatpush3.msra.mxu0 %v106_v15  ;;  %574 = vmatpush3.msra.mxu1 %v291_v31  ;;  %v71_v41 = vld [vmem:[%s956_s0] sm:$0xff]  ;;  %v73_v45 = vld [vmem:[%s956_s0 + $0x10] sm:$0xff]  ;;  %v76_v46 = vld [vmem:[%s956_s0 + $0x28] sm:$0xff] }
  0x41   :  { %481 = vmatprep.subr.mxu0 %v121_v16  ;;  %575 = vmatprep.subr.mxu1 %v738_v0  ;;  %v287_v43 = vld [vmem:[#allocation6 + $0x40] sm:$0xff]  ;;  %v286_v44 = vld [vmem:[#allocation6 + $0x38] sm:$0xff]  ;;  %v285_v47 = vld [vmem:[#allocation6 + $0x30] sm:$0xff] }
  0x42   :  { %482 = vmatpush3.msra.mxu0 %v105_v17  ;;  %576 = vmatpush3.msra.mxu1 %v290_v34  ;;  %v284_v48 = vld [vmem:[#allocation6 + $0x28] sm:$0xff]  ;;  %v75_v49 = vld [vmem:[%s956_s0 + $0x20] sm:$0xff]  ;;  %v78_v50 = vld [vmem:[%s956_s0 + $0x38] sm:$0xff] }
  0x43   :  { %483 = vmatprep.subr.mxu0 %v120_v18  ;;  %577 = vmatprep.subr.mxu1 %v738_v0  ;;  %v77_v51 = vld [vmem:[%s956_s0 + $0x30] sm:$0xff]  ;;  %v80_v52 = vld [vmem:[%s956_s0 + $0x48] sm:$0xff]  ;;  %v79_v53 = vld [vmem:[%s956_s0 + $0x40] sm:$0xff] }
  0x44   :  { %484 = vmatpush3.msra.mxu0 %v104_v19  ;;  %578 = vmatpush3.msra.mxu1 %v289_v37  ;;  %v82_v54 = vld [vmem:[%s956_s0 + $0x58] sm:$0xff]  ;;  %v81_v55 = vld [vmem:[%s956_s0 + $0x50] sm:$0xff]  ;;  %v84_v56 = vld [vmem:[%s956_s0 + $0x68] sm:$0xff] }
  0x45   :  { %485 = vmatprep.subr.mxu0 %v119_v20  ;;  %579 = vmatprep.subr.mxu1 %v738_v0  ;;  %v83_v57 = vld [vmem:[%s956_s0 + $0x60] sm:$0xff]  ;;  %v86_v58 = vld [vmem:[%s956_s0 + $0x78] sm:$0xff]  ;;  %v85_v59 = vld [vmem:[%s956_s0 + $0x70] sm:$0xff] }
  0x46   :  { %486 = vmatpush3.msra.mxu0 %v103_v21  ;;  %580 = vmatpush3.msra.mxu1 %v288_v40  ;;  %v88_v60 = vld [vmem:[%s956_s0 + $0x88] sm:$0xff]  ;;  %v87_v61 = vld [vmem:[%s956_s0 + $0x80] sm:$0xff]  ;;  %v90_v62 = vld [vmem:[%s956_s0 + $0x98] sm:$0xff] }
  0x47   :  { %487 = vmatprep.subr.mxu0 %v118_v22  ;;  %581 = vmatprep.subr.mxu1 %v738_v0  ;;  %v89_v63 = vld [vmem:[%s956_s0 + $0x90] sm:$0xff]  ;;  %v92_v1 = vld [vmem:[%s956_s0 + $0xa8] sm:$0xff]  ;;  %v91_v2 = vld [vmem:[%s956_s0 + $0xa0] sm:$0xff] }
  0x48   :  { %488 = vmatpush3.msra.mxu0 %v102_v23  ;;  %582 = vmatpush3.msra.mxu1 %v287_v43  ;;  %v94_v3 = vld [vmem:[%s956_s0 + $0xb8] sm:$0xff]  ;;  %v93_v4 = vld [vmem:[%s956_s0 + $0xb0] sm:$0xff]  ;;  %v96_v5 = vld [vmem:[%s956_s0 + $0xc8] sm:$0xff] }
  0x49   :  { %489 = vmatprep.subr.mxu0 %v117_v26  ;;  %583 = vmatprep.subr.mxu1 %v738_v0  ;;  %v95_v6 = vld [vmem:[%s956_s0 + $0xc0] sm:$0xff]  ;;  %v281_v9 = vld [vmem:[#allocation6 + $0x10] sm:$0xff]  ;;  %v280_v10 = vld [vmem:[#allocation6 + $0x8] sm:$0xff] }
  0x4a   :  { %490 = vmatpush3.msra.mxu0 %v101_v27  ;;  %584 = vmatpush3.msra.mxu1 %v286_v44  ;;  %v283_v7 = vld [vmem:[#allocation6 + $0x20] sm:$0xff]  ;;  %v282_v8 = vld [vmem:[#allocation6 + $0x18] sm:$0xff] }
  0x4b   :  { %491 = vmatprep.subr.mxu0 %v116_v29  ;;  %585 = vmatprep.subr.mxu1 %v738_v0  ;;  %v279_v11 = vld [vmem:[#allocation6] sm:$0xff]  ;;  %v878_v13 = vld [vmem:[#allocation4] ss:$0 sm:$0xff] }
  0x4c   :  { %492 = vmatpush3.msra.mxu0 %v100_v30  ;;  %586 = vmatpush3.msra.mxu1 %v285_v47 }
  0x4d   :  { %493 = vmatprep.subr.mxu0 %v115_v32  ;;  %587 = vmatprep.subr.mxu1 %v738_v0 }
  0x4e   :  { %494 = vmatpush3.msra.mxu0 %v99_v33  ;;  %588 = vmatpush3.msra.mxu1 %v284_v48 }
  0x4f   :  { %495 = vmatprep.subr.mxu0 %v114_v35  ;;  %589 = vmatprep.subr.mxu1 %v738_v0 }
  0x50   :  { %496 = vmatpush3.msra.mxu0 %v98_v36  ;;  %590 = vmatpush3.msra.mxu1 %v283_v7 }
  0x51   :  { %497 = vmatprep.subr.mxu0 %v113_v38  ;;  %591 = vmatprep.subr.mxu1 %v738_v0 }
  0x52   :  { %498 = vmatpush3.msra.mxu0 %v97_v39  ;;  %592 = vmatpush3.msra.mxu1 %v282_v8 }
  0x53   :  { %201 = vmatmul.mubr.f32.vlgmr.msra.gmra.mxu0 %v71_v41  ;;  %593 = vmatprep.subr.mxu1 %v738_v0 }
  0x54   :  { %205 = vmatprep.mubr.f32.mxu0 %v74_v42  ;;  %594 = vmatpush3.msra.mxu1 %v281_v9 }
  0x55   :  { %595 = vmatprep.subr.mxu1 %v738_v0 }
  0x56   :  { %596 = vmatpush3.msra.mxu1 %v280_v10 }
  0x57   :  { %206 = vmatmul.mubr.f32.gmra.mxu0 %v73_v45  ;;  %597 = vmatprep.subr.mxu1 %v738_v0 }
  0x58   :  { %210 = vmatprep.mubr.f32.mxu0 %v76_v46  ;;  %598 = vmatpush3.msra.mxu1 %v279_v11 }
  0x5b   :  { %211 = vmatmul.mubr.f32.gmra.mxu0 %v75_v49 }
  0x5c   :  { %215 = vmatprep.mubr.f32.mxu0 %v78_v50 }
  0x5f   :  { %216 = vmatmul.mubr.f32.gmra.mxu0 %v77_v51 }
  0x60   :  { %220 = vmatprep.mubr.f32.mxu0 %v80_v52 }
  0x63   :  { %221 = vmatmul.mubr.f32.gmra.mxu0 %v79_v53 }
  0x64   :  { %225 = vmatprep.mubr.f32.mxu0 %v82_v54 }
  0x67   :  { %226 = vmatmul.mubr.f32.gmra.mxu0 %v81_v55 }
  0x68   :  { %230 = vmatprep.mubr.f32.mxu0 %v84_v56 }
  0x6b   :  { %231 = vmatmul.mubr.f32.gmra.mxu0 %v83_v57 }
  0x6c   :  { %235 = vmatprep.mubr.f32.mxu0 %v86_v58 }
  0x6f   :  { %236 = vmatmul.mubr.f32.gmra.mxu0 %v85_v59 }
  0x70   :  { %240 = vmatprep.mubr.f32.mxu0 %v88_v60 }
  0x73   :  { %241 = vmatmul.mubr.f32.gmra.mxu0 %v87_v61 }
  0x74   :  { %245 = vmatprep.mubr.f32.mxu0 %v90_v62 }
  0x77   :  { %246 = vmatmul.mubr.f32.gmra.mxu0 %v89_v63 }
  0x78   :  { %250 = vmatprep.mubr.f32.mxu0 %v92_v1 }
  0x7b   :  { %251 = vmatmul.mubr.f32.gmra.mxu0 %v91_v2 }
  0x7c   :  { %255 = vmatprep.mubr.f32.mxu0 %v94_v3 }
  0x7f   :  { %256 = vmatmul.mubr.f32.gmra.mxu0 %v93_v4 }
  0x80   :  { %260 = vmatprep.mubr.f32.mxu0 %v96_v5 }
  0x83   :  { %261 = vmatmul.mubr.f32.gmra.mxu0 %v95_v6 }
 0x113   :  { %v499_v12 = vpop.f32.mrf.mxu0 }
 0x115   :  { %v500_v14 = vpop.f32.mrf.mxu0 }
 0x116   :  { %v501_v15 = vadd.f32 %v500_v14, %v499_v12 }
 0x117   :  { %v502_v16 = vpop.f32.mrf.mxu0 }
 0x118   :  { %v203_v17 = vadd.f32 %v501_v15, %v878_v13 }
 0x119   :  { %v503_v18 = vpop.f32.mrf.mxu0 }
 0x11a   :  { %v266_v19 = vmax.f32 %v203_v17, 0.0  ;;  %v504_v20 = vadd.f32 %v503_v18, %v502_v16  ;;  %v466_v16 = vld [vmem:[#allocation7] ss:$0 sm:$0xff] }
 0x11b   :  { %v505_v21 = vpop.f32.mrf.mxu0 }
 0x11c   :  { %v208_v22 = vadd.f32 %v504_v20, %v878_v13  ;;  %600 = vmatmul.mubr.f32.vlgmr.msra.gmra.mxu1 %v266_v19 }
 0x11d   :  { %v506_v23 = vpop.f32.mrf.mxu0  ;;  %602 = vmatprep.mubr.msk.f32.mxu1 %vm739_vm0, %v738_v0 }
 0x11e   :  { %v267_v24 = vmax.f32 %v208_v22, 0.0  ;;  %v507_v25 = vadd.f32 %v506_v23, %v505_v21 }
 0x11f   :  { %v508_v26 = vpop.f32.mrf.mxu0 }
 0x120   :  { %v213_v27 = vadd.f32 %v507_v25, %v878_v13  ;;  %603 = vmatmul.mubr.f32.gmra.mxu1 %v267_v24 }
 0x121   :  { %v509_v28 = vpop.f32.mrf.mxu0  ;;  %605 = vmatprep.mubr.msk.f32.mxu1 %vm739_vm0, %v738_v0 }
 0x122   :  { %v268_v29 = vmax.f32 %v213_v27, 0.0  ;;  %v510_v30 = vadd.f32 %v509_v28, %v508_v26 }
 0x123   :  { %v511_v31 = vpop.f32.mrf.mxu0 }
 0x124   :  { %v218_v32 = vadd.f32 %v510_v30, %v878_v13  ;;  %606 = vmatmul.mubr.f32.gmra.mxu1 %v268_v29 }
 0x125   :  { %v512_v33 = vpop.f32.mrf.mxu0  ;;  %608 = vmatprep.mubr.msk.f32.mxu1 %vm739_vm0, %v738_v0 }
 0x126   :  { %v269_v34 = vmax.f32 %v218_v32, 0.0  ;;  %v513_v35 = vadd.f32 %v512_v33, %v511_v31 }
 0x127   :  { %v514_v36 = vpop.f32.mrf.mxu0 }
 0x128   :  { %v223_v37 = vadd.f32 %v513_v35, %v878_v13  ;;  %609 = vmatmul.mubr.f32.gmra.mxu1 %v269_v34 }
 0x129   :  { %v515_v38 = vpop.f32.mrf.mxu0  ;;  %611 = vmatprep.mubr.msk.f32.mxu1 %vm739_vm0, %v738_v0 }
 0x12a   :  { %v270_v39 = vmax.f32 %v223_v37, 0.0  ;;  %v516_v40 = vadd.f32 %v515_v38, %v514_v36 }
 0x12b   :  { %v517_v41 = vpop.f32.mrf.mxu0 }
 0x12c   :  { %v228_v42 = vadd.f32 %v516_v40, %v878_v13  ;;  %612 = vmatmul.mubr.f32.gmra.mxu1 %v270_v39 }
 0x12d   :  { %v518_v43 = vpop.f32.mrf.mxu0  ;;  %614 = vmatprep.mubr.msk.f32.mxu1 %vm739_vm0, %v738_v0 }
 0x12e   :  { %v271_v44 = vmax.f32 %v228_v42, 0.0  ;;  %v519_v45 = vadd.f32 %v518_v43, %v517_v41 }
 0x12f   :  { %v520_v46 = vpop.f32.mrf.mxu0 }
 0x130   :  { %v233_v47 = vadd.f32 %v519_v45, %v878_v13  ;;  %615 = vmatmul.mubr.f32.gmra.mxu1 %v271_v44 }
 0x131   :  { %v521_v48 = vpop.f32.mrf.mxu0  ;;  %617 = vmatprep.mubr.msk.f32.mxu1 %vm739_vm0, %v738_v0 }
 0x132   :  { %v272_v49 = vmax.f32 %v233_v47, 0.0  ;;  %v522_v50 = vadd.f32 %v521_v48, %v520_v46 }
 0x133   :  { %v523_v51 = vpop.f32.mrf.mxu0 }
 0x134   :  { %v238_v52 = vadd.f32 %v522_v50, %v878_v13  ;;  %618 = vmatmul.mubr.f32.gmra.mxu1 %v272_v49 }
 0x135   :  { %v524_v53 = vpop.f32.mrf.mxu0  ;;  %620 = vmatprep.mubr.msk.f32.mxu1 %vm739_vm0, %v738_v0 }
 0x136   :  { %v273_v54 = vmax.f32 %v238_v52, 0.0  ;;  %v525_v55 = vadd.f32 %v524_v53, %v523_v51 }
 0x137   :  { %v526_v56 = vpop.f32.mrf.mxu0 }
 0x138   :  { %v243_v57 = vadd.f32 %v525_v55, %v878_v13  ;;  %621 = vmatmul.mubr.f32.gmra.mxu1 %v273_v54 }
 0x139   :  { %v527_v58 = vpop.f32.mrf.mxu0  ;;  %623 = vmatprep.mubr.msk.f32.mxu1 %vm739_vm0, %v738_v0 }
 0x13a   :  { %v274_v59 = vmax.f32 %v243_v57, 0.0  ;;  %v528_v60 = vadd.f32 %v527_v58, %v526_v56 }
 0x13b   :  { %v529_v61 = vpop.f32.mrf.mxu0 }
 0x13c   :  { %v248_v62 = vadd.f32 %v528_v60, %v878_v13  ;;  %624 = vmatmul.mubr.f32.gmra.mxu1 %v274_v59 }
 0x13d   :  { %v530_v63 = vpop.f32.mrf.mxu0  ;;  %626 = vmatprep.mubr.msk.f32.mxu1 %vm739_vm0, %v738_v0 }
 0x13e   :  { %v275_v1 = vmax.f32 %v248_v62, 0.0  ;;  %v531_v2 = vadd.f32 %v530_v63, %v529_v61 }
 0x13f   :  { %v532_v3 = vpop.f32.mrf.mxu0 }
 0x140   :  { %v253_v4 = vadd.f32 %v531_v2, %v878_v13  ;;  %627 = vmatmul.mubr.f32.gmra.mxu1 %v275_v1 }
 0x141   :  { %v533_v5 = vpop.f32.mrf.mxu0  ;;  %629 = vmatprep.mubr.msk.f32.mxu1 %vm739_vm0, %v738_v0 }
 0x142   :  { %v276_v6 = vmax.f32 %v253_v4, 0.0  ;;  %v534_v7 = vadd.f32 %v533_v5, %v532_v3 }
 0x143   :  { %v535_v8 = vpop.f32.mrf.mxu0 }
 0x144   :  { %v258_v9 = vadd.f32 %v534_v7, %v878_v13  ;;  %630 = vmatmul.mubr.f32.gmra.mxu1 %v276_v6 }
 0x145   :  { %v536_v10 = vpop.f32.mrf.mxu0  ;;  %632 = vmatprep.mubr.msk.f32.mxu1 %vm739_vm0, %v738_v0 }
 0x146   :  { %v277_v11 = vmax.f32 %v258_v9, 0.0  ;;  %v537_v12 = vadd.f32 %v536_v10, %v535_v8 }
 0x148   :  { %v263_v14 = vadd.f32 %v537_v12, %v878_v13  ;;  %633 = vmatmul.mubr.f32.gmra.mxu1 %v277_v11 }
 0x149   :  { %635 = vmatprep.mubr.msk.f32.mxu1 %vm739_vm0, %v738_v0 }
 0x14a   :  { %v278_v15 = vmax.f32 %v263_v14, 0.0 }
 0x14c   :  { %636 = vmatmul.mubr.f32.gmra.mxu1 %v278_v15 }
 0x1dc   :  { %v368_v17 = vpop.f32.mrf.mxu1 }
 0x1dd   :  { %v369_v18 = vadd.f32 %v466_v16, %v368_v17 }
 0x1de   :  { %v601_v19 = vpop.f32.mrf.mxu1 }
 0x1df   :  { %v432_v20 = vmax.f32 %v369_v18, 0.0 }
 0x1e0   :  { %v373_v21 = vpop.f32.mrf.mxu1 }
 0x1e1   :  { %445 = vst [vmem:[%s961_s5] sm:$0xff] %v432_v20  ;;  %v374_v22 = vadd.f32 %v466_v16, %v373_v21 }
 0x1e2   :  { %v604_v23 = vpop.f32.mrf.mxu1 }
 0x1e3   :  { %v433_v24 = vmax.f32 %v374_v22, 0.0 }
 0x1e4   :  { %v378_v13 = vpop.f32.mrf.mxu1 }
 0x1e5   :  { %446 = vst [vmem:[%s961_s5 + $0x8] sm:$0xff] %v433_v24  ;;  %v379_v0 = vadd.f32 %v466_v16, %v378_v13 }
 0x1e6   :  { %v607_v25 = vpop.f32.mrf.mxu1 }
 0x1e7   :  { %v434_v26 = vmax.f32 %v379_v0, 0.0 }
 0x1e8   :  { %v383_v27 = vpop.f32.mrf.mxu1 }
 0x1e9   :  { %447 = vst [vmem:[%s961_s5 + $0x10] sm:$0xff] %v434_v26  ;;  %v384_v28 = vadd.f32 %v466_v16, %v383_v27 }
 0x1ea   :  { %v610_v29 = vpop.f32.mrf.mxu1 }
 0x1eb   :  { %v435_v30 = vmax.f32 %v384_v28, 0.0 }
 0x1ec   :  { %v388_v31 = vpop.f32.mrf.mxu1 }
 0x1ed   :  { %448 = vst [vmem:[%s961_s5 + $0x18] sm:$0xff] %v435_v30  ;;  %v389_v32 = vadd.f32 %v466_v16, %v388_v31 }
 0x1ee   :  { %v613_v33 = vpop.f32.mrf.mxu1 }
 0x1ef   :  { %v436_v34 = vmax.f32 %v389_v32, 0.0 }
 0x1f0   :  { %v393_v35 = vpop.f32.mrf.mxu1 }
 0x1f1   :  { %449 = vst [vmem:[%s961_s5 + $0x20] sm:$0xff] %v436_v34  ;;  %v394_v36 = vadd.f32 %v466_v16, %v393_v35 }
 0x1f2   :  { %v616_v37 = vpop.f32.mrf.mxu1 }
 0x1f3   :  { %v437_v38 = vmax.f32 %v394_v36, 0.0 }
 0x1f4   :  { %v398_v39 = vpop.f32.mrf.mxu1 }
 0x1f5   :  { %450 = vst [vmem:[%s961_s5 + $0x28] sm:$0xff] %v437_v38  ;;  %v399_v40 = vadd.f32 %v466_v16, %v398_v39 }
 0x1f6   :  { %v619_v41 = vpop.f32.mrf.mxu1 }
 0x1f7   :  { %v438_v42 = vmax.f32 %v399_v40, 0.0 }
 0x1f8   :  { %v403_v43 = vpop.f32.mrf.mxu1 }
 0x1f9   :  { %451 = vst [vmem:[%s961_s5 + $0x30] sm:$0xff] %v438_v42  ;;  %v404_v44 = vadd.f32 %v466_v16, %v403_v43 }
 0x1fa   :  { %v622_v45 = vpop.f32.mrf.mxu1 }
 0x1fb   :  { %v439_v46 = vmax.f32 %v404_v44, 0.0 }
 0x1fc   :  { %v408_v47 = vpop.f32.mrf.mxu1 }
 0x1fd   :  { %452 = vst [vmem:[%s961_s5 + $0x38] sm:$0xff] %v439_v46  ;;  %v409_v48 = vadd.f32 %v466_v16, %v408_v47 }
 0x1fe   :  { %v625_v49 = vpop.f32.mrf.mxu1 }
 0x1ff   :  { %v440_v50 = vmax.f32 %v409_v48, 0.0 }
 0x200   :  { %v413_v51 = vpop.f32.mrf.mxu1 }
 0x201   :  { %453 = vst [vmem:[%s961_s5 + $0x40] sm:$0xff] %v440_v50  ;;  %v414_v52 = vadd.f32 %v466_v16, %v413_v51 }
 0x202   :  { %v628_v53 = vpop.f32.mrf.mxu1 }
 0x203   :  { %v441_v54 = vmax.f32 %v414_v52, 0.0 }
 0x204   :  { %v418_v55 = vpop.f32.mrf.mxu1 }
 0x205   :  { %454 = vst [vmem:[%s961_s5 + $0x48] sm:$0xff] %v441_v54  ;;  %v419_v56 = vadd.f32 %v466_v16, %v418_v55 }
 0x206   :  { %v631_v57 = vpop.f32.mrf.mxu1 }
 0x207   :  { %v442_v58 = vmax.f32 %v419_v56, 0.0 }
 0x208   :  { %v423_v59 = vpop.f32.mrf.mxu1 }
 0x209   :  { %455 = vst [vmem:[%s961_s5 + $0x50] sm:$0xff] %v442_v58  ;;  %v424_v60 = vadd.f32 %v466_v16, %v423_v59 }
 0x20a   :  { %v634_v61 = vpop.f32.mrf.mxu1 }
 0x20b   :  { %v443_v62 = vmax.f32 %v424_v60, 0.0 }
 0x20c   :  { %v428_v63 = vpop.f32.mrf.mxu1 }
 0x20d   :  { %456 = vst [vmem:[%s961_s5 + $0x58] sm:$0xff] %v443_v62  ;;  %v429_v1 = vadd.f32 %v466_v16, %v428_v63 }
 0x20e   :  { %v637_v2 = vpop.f32.mrf.mxu1 }
 0x20f   :  { %v444_v3 = vmax.f32 %v429_v1, 0.0 }
 0x211   :  { %457 = vst [vmem:[%s961_s5 + $0x60] sm:$0xff] %v444_v3 }
 0x212   :  { %462 = vsyncpa [#allocation3], 1 }
 0x213   :  { %463 = vsyncpa [#allocation5], 1 }
 0x214   :  { %464 = vsyncpa [#allocation8], 1 }

// kernel: qnet_forward.5
= control target key start
LH: loop header
LB: loop body
LE: loop exit
PB: predicated region body
PF: predicated region fallthrough
CT: control target
= control target key end

     0   :  { %10 = vsyncpa [#allocation4], 0  ;;  %s3874_s0 = inlined_call_operand.vmem [shape: f32[8,6656], index: 0, kind: input, shape index: {}]   ;;  %s3875_s1 = inlined_call_operand.hbm [shape: f32[6656,512], index: 1, kind: input, shape index: {}]   ;;  %s3876_s2 = inlined_call_operand.hbm [shape: f32[1,512], index: 2, kind: input, shape index: {}]   ;;  %s3877_s3 = inlined_call_operand.hbm [shape: f32[512,128], index: 3, kind: input, shape index: {}]   ;;  %s3878_s4 = inlined_call_operand.hbm [shape: f32[1,128], index: 4, kind: input, shape index: {}]   ;;  %s3879_s5 = inlined_call_operand.vmem [shape: f32[8,128], index: 5, kind: output, shape index: {}]  }
   0x1   :  { %12 = vsyncpa [#allocation4 + $0x1], 0 }
   0x2   :  { %13 = vsyncpa [#allocation6], 0 }
   0x3   :  { %14 = vsyncpa [#allocation9], 0  ;;  %s2855_s18 = smov 0   ;;  %s2857_s19 = smov 0  }
   0x4   :  { %s2859_s20 = smov 0   ;;  %s2861_s21 = smov 0  }
   0x5 LB: > { %s2874_s22 = sadd.s32 4294967295, %s2813_s21   ;;  %p66_p0 = scmp.ne.s32.totalorder %s2805_s19, %s2801_s18  ;;  %s2813_s21 = sphi %s2861_s21, %s3897_s21   ;;  %s2809_s20 = sphi %s2859_s20, %s3896_s20   ;;  %s2805_s19 = sphi %s2857_s19, %s3895_s19   ;;  %s2801_s18 = sphi %s2855_s18, %s3894_s18  }
   0x6   : > { %p3880_p1 = scmp.eq.s32.totalorder %s2874_s22, 0  ;;  %p2484_p2 = scmp.ge.s32.totalorder %s2813_s21, 1 }
   0x7   : > { %p161_p3 = scmp.lt.s32.totalorder %s2813_s21, 5  ;;  %s2815_s25 = smov [#allocation5]  }
   0x8   : > { %p2883_p5 = por %p3880_p1, %p66_p0  ;;  %s174_s26 = sshll.u32 %s2815_s25, 4  ;;  %s175_s26 = int_to_ptr.vmem [resolvable:$true] %s174_s26 }
   0x9   : > { %p2887_p6 = pnand %p2484_p2, %p161_p3  ;;  %s2816_s27 = smov [#allocation7]  }
   0xa   : > { %s3883_s23 = scalar_select %p2883_p5, 1, 0 }
   0xb   : > { %s3884_s24 = scalar_select %p2887_p6, 1, 0 }
   0xc   : > { %p2590_p7 = pneg %p2887_p6  ;;  %s184_s28 = sshll.u32 %s2816_s27, 4  ;;  %s185_s28 = int_to_ptr.vmem [resolvable:$true] %s184_s28 }
   0xd   : > { %s2817_s30 = smov [#allocation8]   ;;  %s2676_s7 = scalar_lea.vmem %s175_s26, 64 }
   0xe   : > { %p2895_p8 = pnand %p2590_p7, %p3880_p1  ;;  %s198_s6 = sshll.u32 %s2817_s30, 4  ;;  %s199_s6 = int_to_ptr.vmem [resolvable:$true] %s198_s6 }
   0xf   : > { %p2677_p10 = scmp.ne.s32.totalorder %s175_s26, %s2676_s7  ;;  %p2684_p13 = scmp.lt.s32.totalorder %s175_s26, %s175_s26 }
  0x10   : > { %p2667_p9 = pneg %p2895_p8  ;;  %p2685_p0 = scmp.lt.s32.totalorder %s2676_s7, %s2676_s7 }
  0x12   : > { %p2679_p11 = pnand %p2677_p10, %p2667_p9  ;;  %p2686_p2 = por %p2685_p0, %p2684_p13 }
  0x14   : > { %p2680_p12 = pneg %p2679_p11 }
  0x16   : > { %p2687_p3 = pnand %p2686_p2, %p2680_p12 }
  0x18   : > { %2690 = shalt.err (!%p2687_p3)
}
  0x19   : > { %2593 = dma.hbm_to_vmem [thread:$0]  (!%p2895_p8), %s3876_s2, 64, %s175_s26, [#allocation6]  }
  0x1a   : > { %s2702_s10 = scalar_lea.vmem %s185_s28, 8192  ;;  %p2710_p10 = scmp.lt.s32.totalorder %s185_s28, %s185_s28 }
  0x1b   : > { %p2703_p7 = scmp.ne.s32.totalorder %s185_s28, %s2702_s10  ;;  %p2711_p11 = scmp.lt.s32.totalorder %s2702_s10, %s2702_s10 }
  0x1d   : > { %p2705_p4 = pnand %p2703_p7, %p2667_p9  ;;  %p2712_p5 = por %p2711_p11, %p2710_p10 }
  0x1f   : > { %p2706_p1 = pneg %p2705_p4 }
  0x21   : > { %p2713_p6 = pnand %p2712_p5, %p2706_p1 }
  0x23   : > { %2716 = shalt.err (!%p2713_p6)
}
  0x24   : > { %s2818_s11 = smov 128   ;;  %s2819_s12 = smov 8  }
  0x25   : > { %2596 = dma.hbm_to_vmem [thread:$0]  (!%p2895_p8), %s3877_s3, 8192, %s185_s28, [#allocation6], %s2818_s11, %s2818_s11, %s2819_s12  }
  0x26   : > { %s2728_s15 = scalar_lea.vmem %s199_s6, 16  ;;  %s2735_s16 = scalar_lea.vmem %s199_s6, 32 }
  0x27   : > { %p2729_p12 = scmp.ne.s32.totalorder %s199_s6, %s2728_s15  ;;  %p2736_p0 = scmp.lt.s32.totalorder %s199_s6, %s199_s6 }
  0x28   : > { %p2737_p1 = scmp.lt.s32.totalorder %s2735_s16, %s2728_s15 }
  0x29   : > { %p2731_p4 = pnand %p2729_p12, %p2667_p9 }
  0x2a   : > { %p2738_p5 = por %p2737_p1, %p2736_p0 }
  0x2b   : > { %p2732_p13 = pneg %p2731_p4 }
  0x2d   : > { %p2739_p6 = pnand %p2738_p5, %p2732_p13 }
  0x2f   : > { %2742 = shalt.err (!%p2739_p6)
}
  0x30   : > { %2599 = dma.hbm_to_vmem [thread:$0]  (!%p2895_p8), %s3878_s4, 16, %s199_s6, [#allocation9]  }
  0x31   : > { %s2926_s25 = sadd.s32 1, %s2813_s21   ;;  %s53_s27 = sadd.s32 1, %s2809_s20 }
  0x32   : > { %s50_s26 = ssub.s32 %s2813_s21, %s2926_s25  ;;  %p60_p2 = scmp.ne.s32.totalorder %s2809_s20, %s2805_s19 }
  0x33   : > { %p51_p9 = scmp.eq.s32.totalorder %s50_s26, 0  ;;  %p61_p3 = scmp.eq.s32.totalorder %s2813_s21, 0 }
  0x34   : > { %p2607_p7 = scmp.lt.s32.totalorder %s2813_s21, 4  ;;  %s218_s29 = sand.u32 1, %s2809_s20  }
  0x35   : > { %s2936_s28 = scalar_select %p51_p9, %s2809_s20, %s53_s27  }
  0x36   : > { %p62_p10 = por %p61_p3, %p60_p2  ;;  %s2574_s30 = smul.u32 6656, %s218_s29 }
  0x37   : > { %s2503_s7 = smul.u32 106496, %s2813_s21  ;;  %s2951_s13 = scalar_lea.sflag [#allocation4], %s218_s29 }
  0x38   : > { %p2940_p11 = pnand %p2607_p7, %p62_p10  ;;  %s222_s11 = scalar_lea.vmem [#allocation3], %s2574_s30 }
  0x39   : > { %s2947_s10 = scalar_lea.hbm %s3875_s1, %s2503_s7  ;;  %s230_s12 = sshll.u32 %s222_s11, 4  ;;  %s2949_s12 = int_to_ptr.vmem [resolvable:$true] %s230_s12 }
  0x3a   : > { %s2743_s21 = scalar_lea.hbm %s2947_s10, 106496  ;;  %p2745_p12 = pneg %p2940_p11 }
  0x3b   : > { %p2744_p8 = scmp.ne.s32.totalorder %s2947_s10, %s2743_s21  ;;  %s2748_s16 = scalar_lea.hbm %s3875_s1, 425984 }
  0x3c   : > { %p2749_p0 = scmp.lt.s32.totalorder %s2947_s10, %s3875_s1  ;;  %p2750_p1 = scmp.lt.s32.totalorder %s2748_s16, %s2743_s21 }
  0x3d   : > { %p2746_p4 = pnand %p2745_p12, %p2744_p8 }
  0x3e   : > { %p2751_p5 = por %p2750_p1, %p2749_p0 }
  0x3f   : > { %p2747_p13 = pneg %p2746_p4 }
  0x41   : > { %p2752_p6 = pnand %p2751_p5, %p2747_p13 }
  0x43   : > { %2755 = shalt.err (!%p2752_p6)
}
  0x44   : > { %s2756_s26 = scalar_lea.vmem %s2949_s12, 106496  ;;  %s2820_s27 = smov [#allocation3]  }
  0x45   : > { %p2757_p9 = scmp.ne.s32.totalorder %s2949_s12, %s2756_s26  ;;  %s2761_s29 = sshll.u32 %s2820_s27, 4  ;;  %s2762_s29 = int_to_ptr.vmem [resolvable:$false] %s2761_s29 }
  0x46   : > { %s2763_s30 = scalar_lea.vmem %s2762_s29, 212992  ;;  %p2764_p7 = scmp.lt.s32.totalorder %s2949_s12, %s2762_s29 }
  0x47   : > { %p2759_p2 = pnand %p2757_p9, %p2745_p12  ;;  %p2765_p10 = scmp.lt.s32.totalorder %s2763_s30, %s2756_s26 }
  0x49   : > { %p2760_p3 = pneg %p2759_p2  ;;  %p2766_p8 = por %p2765_p10, %p2764_p7 }
  0x4b   : > { %p2767_p4 = pnand %p2766_p8, %p2760_p3 }
  0x4d   : > { %2770 = shalt.err (!%p2767_p4)
}
  0x4e   : > { %s2821_s7 = smov 512   ;;  %s2822_s6 = smov 32  }
  0x4f   : > { %2603 = dma.hbm_to_vmem [thread:$0]  (!%p2940_p11), %s2947_s10, 106496, %s2949_s12, %s2951_s13, %s2821_s7, %s2821_s7, %s2822_s6  }
  0x50   : > { %p3887_p12 = scmp.ne.s32.totalorder %s3884_s24, 0 }
  0x51   : > { %s244_s9 = sand.u32 (!%p3887_p12), 1, %s2805_s19   ;;  %p3888_p13 = scmp.ne.s32.totalorder (!%p3887_p12), %s3883_s23, 0 }
  0x52   : > { %242 = sbr.rel (%p3887_p12) target bundleno = 973 (0x3cd), region = 40  ;;  %s245_s21 = scalar_lea.sflag (!%p3887_p12), [#allocation4], %s244_s9 }
  0x53   : > { %s2575_s11 = smul.u32 (!%p3887_p12), 6656, %s244_s9 }
  0x55   : > { %s2975_s14 = scalar_lea.vmem (!%p3887_p12), [#allocation3], %s2575_s11 }
  0x57   : > { %2788 = dma.done.wait (%p3888_p13), %s245_s21, 106496  }
  0x58   : > { %2790 = vsyncadd (%p3888_p13), %s245_s21, 4294860800  ;;  %p3889_p0 = scmp.eq.s32.totalorder %s2874_s22, 0 }
  0x5a   : > { %2792 = dma.done.wait (%p3889_p0), [#allocation6], 8256   ;;  %p3890_p11 = pmov %p3889_p0 }
  0x5b   : > { %p3891_p1 = pmov %p3889_p0 }
  0x5c   : > { %2794 = vsyncadd (%p3890_p11), [#allocation6], 4294959040 }
  0x5d   : > { %2796 = dma.done.wait (%p3891_p1), [#allocation9], 16   ;;  %p3892_p5 = pmov %p3889_p0 }
  0x5e   : > { %s287_s24 = smul.u32 13, %s2874_s22  ;;  %p3893_p9 = scmp.ne.s32.totalorder %s2874_s22, 0 }
  0x5f   : > { %2798 = vsyncadd (%p3892_p5), [#allocation9], 4294967280 }
  0x60   : > { %p288_p6 = scmp.lt.s32.totalorder %s287_s24, 51  ;;  %297 = sbr.rel (%p3893_p9) target bundleno = 104 (0x68), region = 60 }
  0x62   : > { %s3899_s24 = smov (!%p288_p6, %s287_s24), 51 }
  0x63   : > { %s2495_s8 = sshll.u32 %s3899_s24, 3 }
  0x64   : > { %s2993_s12 = scalar_lea.vmem %s3874_s0, %s2495_s8 }
  0x65   : > { %v2823_v0 = vmov 0.0  }
  0x66   : > { %298 = vst [vmem:[#allocation2 + $0x10] sm:$0xff] %v2823_v0  ;;  %299 = vst [vmem:[#allocation2] sm:$0xff] %v2823_v0 }
  0x67   : > { %300 = vst [vmem:[#allocation2 + $0x18] sm:$0xff] %v2823_v0  ;;  %301 = vst [vmem:[#allocation2 + $0x8] sm:$0xff] %v2823_v0 }
  0x68 PF: > { %v380_v1 = vld [vmem:[%s2975_s14 + $0x1e8] sm:$0xff]  ;;  %v379_v3 = vld [vmem:[%s2975_s14 + $0x1e0] sm:$0xff]  ;;  %p2497_p2 = scmp.ne.s32.totalorder %s2874_s22, 3 }
  0x69   : > { %v508_v2 = vld [vmem:[%s2975_s14 + $0x5e8] sm:$0xff]  ;;  %1151 = vmatprep.subr.mxu0 %v380_v1  ;;  %v507_v4 = vld [vmem:[%s2975_s14 + $0x5e0] sm:$0xff] }
  0x6a   : > { %1222 = vmatprep.subr.mxu1 %v508_v2  ;;  %v376_v5 = vld [vmem:[%s2975_s14 + $0x1c8] sm:$0xff]  ;;  %1152 = vmatpush1.msra.mxu0 %v379_v3  ;;  %v375_v7 = vld [vmem:[%s2975_s14 + $0x1c0] sm:$0xff] }
  0x6b   : > { %v504_v6 = vld [vmem:[%s2975_s14 + $0x5c8] sm:$0xff]  ;;  %1223 = vmatpush1.msra.mxu1 %v507_v4  ;;  %v503_v8 = vld [vmem:[%s2975_s14 + $0x5c0] sm:$0xff]  ;;  %1153 = vmatprep.subr.mxu0 %v376_v5 }
  0x6c   : > { %v372_v9 = vld [vmem:[%s2975_s14 + $0x1a8] sm:$0xff]  ;;  %1224 = vmatprep.subr.mxu1 %v504_v6  ;;  %v371_v11 = vld [vmem:[%s2975_s14 + $0x1a0] sm:$0xff]  ;;  %1154 = vmatpush1.msra.mxu0 %v375_v7 }
  0x6d   : > { %v500_v10 = vld [vmem:[%s2975_s14 + $0x5a8] sm:$0xff]  ;;  %v499_v12 = vld [vmem:[%s2975_s14 + $0x5a0] sm:$0xff]  ;;  %1225 = vmatpush1.msra.mxu1 %v503_v8  ;;  %1155 = vmatprep.subr.mxu0 %v372_v9 }
  0x6e   : > { %v368_v13 = vld [vmem:[%s2975_s14 + $0x188] sm:$0xff]  ;;  %1226 = vmatprep.subr.mxu1 %v500_v10  ;;  %v367_v15 = vld [vmem:[%s2975_s14 + $0x180] sm:$0xff]  ;;  %1156 = vmatpush1.msra.mxu0 %v371_v11 }
  0x6f   : > { %v496_v14 = vld [vmem:[%s2975_s14 + $0x588] sm:$0xff]  ;;  %v495_v16 = vld [vmem:[%s2975_s14 + $0x580] sm:$0xff]  ;;  %1227 = vmatpush1.msra.mxu1 %v499_v12  ;;  %1157 = vmatprep.subr.mxu0 %v368_v13 }
  0x70   : > { %v364_v17 = vld [vmem:[%s2975_s14 + $0x168] sm:$0xff]  ;;  %1228 = vmatprep.subr.mxu1 %v496_v14  ;;  %v363_v19 = vld [vmem:[%s2975_s14 + $0x160] sm:$0xff]  ;;  %1158 = vmatpush1.msra.mxu0 %v367_v15 }
  0x71   : > { %v492_v18 = vld [vmem:[%s2975_s14 + $0x568] sm:$0xff]  ;;  %v491_v20 = vld [vmem:[%s2975_s14 + $0x560] sm:$0xff]  ;;  %1229 = vmatpush1.msra.mxu1 %v495_v16  ;;  %1159 = vmatprep.subr.mxu0 %v364_v17 }
  0x72   : > { %v360_v21 = vld [vmem:[%s2975_s14 + $0x148] sm:$0xff]  ;;  %1230 = vmatprep.subr.mxu1 %v492_v18  ;;  %v359_v23 = vld [vmem:[%s2975_s14 + $0x140] sm:$0xff]  ;;  %1160 = vmatpush1.msra.mxu0 %v363_v19 }
  0x73   : > { %v488_v22 = vld [vmem:[%s2975_s14 + $0x548] sm:$0xff]  ;;  %v487_v24 = vld [vmem:[%s2975_s14 + $0x540] sm:$0xff]  ;;  %1231 = vmatpush1.msra.mxu1 %v491_v20  ;;  %1161 = vmatprep.subr.mxu0 %v360_v21 }
  0x74   : > { %v356_v25 = vld [vmem:[%s2975_s14 + $0x128] sm:$0xff]  ;;  %1232 = vmatprep.subr.mxu1 %v488_v22  ;;  %v355_v27 = vld [vmem:[%s2975_s14 + $0x120] sm:$0xff]  ;;  %1162 = vmatpush1.msra.mxu0 %v359_v23 }
  0x75   : > { %v484_v26 = vld [vmem:[%s2975_s14 + $0x528] sm:$0xff]  ;;  %v483_v28 = vld [vmem:[%s2975_s14 + $0x520] sm:$0xff]  ;;  %1233 = vmatpush1.msra.mxu1 %v487_v24  ;;  %1163 = vmatprep.subr.mxu0 %v356_v25 }
  0x76   : > { %v352_v29 = vld [vmem:[%s2975_s14 + $0x108] sm:$0xff]  ;;  %1234 = vmatprep.subr.mxu1 %v484_v26  ;;  %v351_v31 = vld [vmem:[%s2975_s14 + $0x100] sm:$0xff]  ;;  %1164 = vmatpush1.msra.mxu0 %v355_v27 }
  0x77   : > { %v480_v30 = vld [vmem:[%s2975_s14 + $0x508] sm:$0xff]  ;;  %v479_v32 = vld [vmem:[%s2975_s14 + $0x500] sm:$0xff]  ;;  %1235 = vmatpush1.msra.mxu1 %v483_v28  ;;  %1165 = vmatprep.subr.mxu0 %v352_v29 }
  0x78   : > { %v348_v33 = vld [vmem:[%s2975_s14 + $0xe8] sm:$0xff]  ;;  %1236 = vmatprep.subr.mxu1 %v480_v30  ;;  %v347_v35 = vld [vmem:[%s2975_s14 + $0xe0] sm:$0xff]  ;;  %1166 = vmatpush1.msra.mxu0 %v351_v31 }
  0x79   : > { %v476_v34 = vld [vmem:[%s2975_s14 + $0x4e8] sm:$0xff]  ;;  %v475_v36 = vld [vmem:[%s2975_s14 + $0x4e0] sm:$0xff]  ;;  %1237 = vmatpush1.msra.mxu1 %v479_v32  ;;  %1167 = vmatprep.subr.mxu0 %v348_v33 }
  0x7a   : > { %v344_v37 = vld [vmem:[%s2975_s14 + $0xc8] sm:$0xff]  ;;  %1238 = vmatprep.subr.mxu1 %v476_v34  ;;  %v343_v39 = vld [vmem:[%s2975_s14 + $0xc0] sm:$0xff]  ;;  %1168 = vmatpush1.msra.mxu0 %v347_v35 }
  0x7b   : > { %v472_v38 = vld [vmem:[%s2975_s14 + $0x4c8] sm:$0xff]  ;;  %v471_v40 = vld [vmem:[%s2975_s14 + $0x4c0] sm:$0xff]  ;;  %1239 = vmatpush1.msra.mxu1 %v475_v36  ;;  %1169 = vmatprep.subr.mxu0 %v344_v37 }
  0x7c   : > { %v340_v41 = vld [vmem:[%s2975_s14 + $0xa8] sm:$0xff]  ;;  %1240 = vmatprep.subr.mxu1 %v472_v38  ;;  %v339_v43 = vld [vmem:[%s2975_s14 + $0xa0] sm:$0xff]  ;;  %1170 = vmatpush1.msra.mxu0 %v343_v39 }
  0x7d   : > { %v468_v42 = vld [vmem:[%s2975_s14 + $0x4a8] sm:$0xff]  ;;  %v467_v44 = vld [vmem:[%s2975_s14 + $0x4a0] sm:$0xff]  ;;  %1241 = vmatpush1.msra.mxu1 %v471_v40  ;;  %1171 = vmatprep.subr.mxu0 %v340_v41 }
  0x7e   : > { %v336_v45 = vld [vmem:[%s2975_s14 + $0x88] sm:$0xff]  ;;  %1242 = vmatprep.subr.mxu1 %v468_v42  ;;  %v335_v47 = vld [vmem:[%s2975_s14 + $0x80] sm:$0xff]  ;;  %1172 = vmatpush1.msra.mxu0 %v339_v43 }
  0x7f   : > { %v464_v46 = vld [vmem:[%s2975_s14 + $0x488] sm:$0xff]  ;;  %v463_v48 = vld [vmem:[%s2975_s14 + $0x480] sm:$0xff]  ;;  %1243 = vmatpush1.msra.mxu1 %v467_v44  ;;  %1173 = vmatprep.subr.mxu0 %v336_v45 }
  0x80   : > { %v332_v49 = vld [vmem:[%s2975_s14 + $0x68] sm:$0xff]  ;;  %1244 = vmatprep.subr.mxu1 %v464_v46  ;;  %v331_v51 = vld [vmem:[%s2975_s14 + $0x60] sm:$0xff]  ;;  %1174 = vmatpush1.msra.mxu0 %v335_v47 }
  0x81   : > { %v460_v50 = vld [vmem:[%s2975_s14 + $0x468] sm:$0xff]  ;;  %v459_v52 = vld [vmem:[%s2975_s14 + $0x460] sm:$0xff]  ;;  %1245 = vmatpush1.msra.mxu1 %v463_v48  ;;  %1175 = vmatprep.subr.mxu0 %v332_v49 }
  0x82   : > { %v328_v53 = vld [vmem:[%s2975_s14 + $0x48] sm:$0xff]  ;;  %1246 = vmatprep.subr.mxu1 %v460_v50  ;;  %v327_v55 = vld [vmem:[%s2975_s14 + $0x40] sm:$0xff]  ;;  %1176 = vmatpush1.msra.mxu0 %v331_v51 }
  0x83   : > { %v456_v54 = vld [vmem:[%s2975_s14 + $0x448] sm:$0xff]  ;;  %v455_v56 = vld [vmem:[%s2975_s14 + $0x440] sm:$0xff]  ;;  %1247 = vmatpush1.msra.mxu1 %v459_v52  ;;  %1177 = vmatprep.subr.mxu0 %v328_v53 }
  0x84   : > { %v324_v57 = vld [vmem:[%s2975_s14 + $0x28] sm:$0xff]  ;;  %1248 = vmatprep.subr.mxu1 %v456_v54  ;;  %v323_v59 = vld [vmem:[%s2975_s14 + $0x20] sm:$0xff]  ;;  %1178 = vmatpush1.msra.mxu0 %v327_v55 }
  0x85   : > { %v452_v58 = vld [vmem:[%s2975_s14 + $0x428] sm:$0xff]  ;;  %v451_v60 = vld [vmem:[%s2975_s14 + $0x420] sm:$0xff]  ;;  %1249 = vmatpush1.msra.mxu1 %v455_v56  ;;  %1179 = vmatprep.subr.mxu0 %v324_v57 }
  0x86   : > { %v320_v61 = vld [vmem:[%s2975_s14 + $0x8] sm:$0xff]  ;;  %1250 = vmatprep.subr.mxu1 %v452_v58  ;;  %v319_v63 = vld [vmem:[%s2975_s14] sm:$0xff]  ;;  %1180 = vmatpush1.msra.mxu0 %v323_v59 }
  0x87   : > { %v448_v62 = vld [vmem:[%s2975_s14 + $0x408] sm:$0xff]  ;;  %v447_v0 = vld [vmem:[%s2975_s14 + $0x400] sm:$0xff]  ;;  %1251 = vmatpush1.msra.mxu1 %v451_v60  ;;  %1181 = vmatprep.subr.mxu0 %v320_v61 }
  0x88   : > { %v444_v1 = vld [vmem:[%s2975_s14 + $0x3e8] sm:$0xff]  ;;  %1252 = vmatprep.subr.mxu1 %v448_v62  ;;  %v443_v3 = vld [vmem:[%s2975_s14 + $0x3e0] sm:$0xff]  ;;  %1182 = vmatpush1.msra.mxu0 %v319_v63 }
  0x89   : > { %v572_v2 = vld [vmem:[%s2975_s14 + $0x7e8] sm:$0xff]  ;;  %v571_v4 = vld [vmem:[%s2975_s14 + $0x7e0] sm:$0xff]  ;;  %1253 = vmatpush1.msra.mxu1 %v447_v0  ;;  %1183 = vmatprep.subr.mxu0 %v444_v1 }
  0x8a   : > { %v440_v5 = vld [vmem:[%s2975_s14 + $0x3c8] sm:$0xff]  ;;  %1254 = vmatprep.subr.mxu1 %v572_v2  ;;  %v439_v7 = vld [vmem:[%s2975_s14 + $0x3c0] sm:$0xff]  ;;  %1184 = vmatpush2.msra.mxu0 %v443_v3  ;;  %v309_v2 = vld [vmem:[%s2993_s12 + $0x18] sm:$0xff] }
  0x8b   : > { %v568_v6 = vld [vmem:[%s2975_s14 + $0x7c8] sm:$0xff]  ;;  %v567_v8 = vld [vmem:[%s2975_s14 + $0x7c0] sm:$0xff]  ;;  %1255 = vmatpush2.msra.mxu1 %v571_v4  ;;  %1185 = vmatprep.subr.mxu0 %v440_v5  ;;  %v308_v4 = vld [vmem:[%s2993_s12 + $0x10] sm:$0xff] }
  0x8c   : > { %v436_v9 = vld [vmem:[%s2975_s14 + $0x3a8] sm:$0xff]  ;;  %1256 = vmatprep.subr.mxu1 %v568_v6  ;;  %v435_v11 = vld [vmem:[%s2975_s14 + $0x3a0] sm:$0xff]  ;;  %1186 = vmatpush2.msra.mxu0 %v439_v7 }
  0x8d   : > { %v564_v10 = vld [vmem:[%s2975_s14 + $0x7a8] sm:$0xff]  ;;  %v563_v12 = vld [vmem:[%s2975_s14 + $0x7a0] sm:$0xff]  ;;  %1257 = vmatpush2.msra.mxu1 %v567_v8  ;;  %1187 = vmatprep.subr.mxu0 %v436_v9 }
  0x8e   : > { %v432_v13 = vld [vmem:[%s2975_s14 + $0x388] sm:$0xff]  ;;  %1258 = vmatprep.subr.mxu1 %v564_v10  ;;  %v431_v15 = vld [vmem:[%s2975_s14 + $0x380] sm:$0xff]  ;;  %1188 = vmatpush2.msra.mxu0 %v435_v11 }
  0x8f   : > { %v560_v14 = vld [vmem:[%s2975_s14 + $0x788] sm:$0xff]  ;;  %v559_v16 = vld [vmem:[%s2975_s14 + $0x780] sm:$0xff]  ;;  %1259 = vmatpush2.msra.mxu1 %v563_v12  ;;  %1189 = vmatprep.subr.mxu0 %v432_v13 }
  0x90   : > { %v428_v17 = vld [vmem:[%s2975_s14 + $0x368] sm:$0xff]  ;;  %1260 = vmatprep.subr.mxu1 %v560_v14  ;;  %v427_v19 = vld [vmem:[%s2975_s14 + $0x360] sm:$0xff]  ;;  %1190 = vmatpush2.msra.mxu0 %v431_v15 }
  0x91   : > { %v556_v18 = vld [vmem:[%s2975_s14 + $0x768] sm:$0xff]  ;;  %v555_v20 = vld [vmem:[%s2975_s14 + $0x760] sm:$0xff]  ;;  %1261 = vmatpush2.msra.mxu1 %v559_v16  ;;  %1191 = vmatprep.subr.mxu0 %v428_v17 }
  0x92   : > { %v424_v21 = vld [vmem:[%s2975_s14 + $0x348] sm:$0xff]  ;;  %1262 = vmatprep.subr.mxu1 %v556_v18  ;;  %v423_v23 = vld [vmem:[%s2975_s14 + $0x340] sm:$0xff]  ;;  %1192 = vmatpush2.msra.mxu0 %v427_v19 }
  0x93   : > { %v552_v22 = vld [vmem:[%s2975_s14 + $0x748] sm:$0xff]  ;;  %v551_v24 = vld [vmem:[%s2975_s14 + $0x740] sm:$0xff]  ;;  %1263 = vmatpush2.msra.mxu1 %v555_v20  ;;  %1193 = vmatprep.subr.mxu0 %v424_v21 }
  0x94   : > { %v420_v25 = vld [vmem:[%s2975_s14 + $0x328] sm:$0xff]  ;;  %1264 = vmatprep.subr.mxu1 %v552_v22  ;;  %v419_v27 = vld [vmem:[%s2975_s14 + $0x320] sm:$0xff]  ;;  %1194 = vmatpush2.msra.mxu0 %v423_v23 }
  0x95   : > { %v548_v26 = vld [vmem:[%s2975_s14 + $0x728] sm:$0xff]  ;;  %v547_v28 = vld [vmem:[%s2975_s14 + $0x720] sm:$0xff]  ;;  %1265 = vmatpush2.msra.mxu1 %v551_v24  ;;  %1195 = vmatprep.subr.mxu0 %v420_v25 }
  0x96   : > { %v416_v29 = vld [vmem:[%s2975_s14 + $0x308] sm:$0xff]  ;;  %1266 = vmatprep.subr.mxu1 %v548_v26  ;;  %v415_v31 = vld [vmem:[%s2975_s14 + $0x300] sm:$0xff]  ;;  %1196 = vmatpush2.msra.mxu0 %v419_v27 }
  0x97   : > { %v544_v30 = vld [vmem:[%s2975_s14 + $0x708] sm:$0xff]  ;;  %v543_v32 = vld [vmem:[%s2975_s14 + $0x700] sm:$0xff]  ;;  %1267 = vmatpush2.msra.mxu1 %v547_v28  ;;  %1197 = vmatprep.subr.mxu0 %v416_v29 }
  0x98   : > { %v412_v33 = vld [vmem:[%s2975_s14 + $0x2e8] sm:$0xff]  ;;  %1268 = vmatprep.subr.mxu1 %v544_v30  ;;  %v411_v35 = vld [vmem:[%s2975_s14 + $0x2e0] sm:$0xff]  ;;  %1198 = vmatpush2.msra.mxu0 %v415_v31 }
  0x99   : > { %v540_v34 = vld [vmem:[%s2975_s14 + $0x6e8] sm:$0xff]  ;;  %v539_v36 = vld [vmem:[%s2975_s14 + $0x6e0] sm:$0xff]  ;;  %1269 = vmatpush2.msra.mxu1 %v543_v32  ;;  %1199 = vmatprep.subr.mxu0 %v412_v33 }
  0x9a   : > { %v408_v37 = vld [vmem:[%s2975_s14 + $0x2c8] sm:$0xff]  ;;  %1270 = vmatprep.subr.mxu1 %v540_v34  ;;  %v407_v39 = vld [vmem:[%s2975_s14 + $0x2c0] sm:$0xff]  ;;  %1200 = vmatpush2.msra.mxu0 %v411_v35 }
  0x9b   : > { %v536_v38 = vld [vmem:[%s2975_s14 + $0x6c8] sm:$0xff]  ;;  %v535_v40 = vld [vmem:[%s2975_s14 + $0x6c0] sm:$0xff]  ;;  %1271 = vmatpush2.msra.mxu1 %v539_v36  ;;  %1201 = vmatprep.subr.mxu0 %v408_v37 }
  0x9c   : > { %v404_v41 = vld [vmem:[%s2975_s14 + $0x2a8] sm:$0xff]  ;;  %1272 = vmatprep.subr.mxu1 %v536_v38  ;;  %v403_v43 = vld [vmem:[%s2975_s14 + $0x2a0] sm:$0xff]  ;;  %1202 = vmatpush2.msra.mxu0 %v407_v39 }
  0x9d   : > { %v532_v42 = vld [vmem:[%s2975_s14 + $0x6a8] sm:$0xff]  ;;  %v531_v44 = vld [vmem:[%s2975_s14 + $0x6a0] sm:$0xff]  ;;  %1273 = vmatpush2.msra.mxu1 %v535_v40  ;;  %1203 = vmatprep.subr.mxu0 %v404_v41 }
  0x9e   : > { %v400_v45 = vld [vmem:[%s2975_s14 + $0x288] sm:$0xff]  ;;  %1274 = vmatprep.subr.mxu1 %v532_v42  ;;  %v399_v47 = vld [vmem:[%s2975_s14 + $0x280] sm:$0xff]  ;;  %1204 = vmatpush2.msra.mxu0 %v403_v43 }
  0x9f   : > { %v528_v46 = vld [vmem:[%s2975_s14 + $0x688] sm:$0xff]  ;;  %v527_v48 = vld [vmem:[%s2975_s14 + $0x680] sm:$0xff]  ;;  %1275 = vmatpush2.msra.mxu1 %v531_v44  ;;  %1205 = vmatprep.subr.mxu0 %v400_v45 }
  0xa0   : > { %v396_v49 = vld [vmem:[%s2975_s14 + $0x268] sm:$0xff]  ;;  %1276 = vmatprep.subr.mxu1 %v528_v46  ;;  %v395_v51 = vld [vmem:[%s2975_s14 + $0x260] sm:$0xff]  ;;  %1206 = vmatpush2.msra.mxu0 %v399_v47 }
  0xa1   : > { %v524_v50 = vld [vmem:[%s2975_s14 + $0x668] sm:$0xff]  ;;  %v523_v52 = vld [vmem:[%s2975_s14 + $0x660] sm:$0xff]  ;;  %1277 = vmatpush2.msra.mxu1 %v527_v48  ;;  %1207 = vmatprep.subr.mxu0 %v396_v49 }
  0xa2   : > { %v392_v53 = vld [vmem:[%s2975_s14 + $0x248] sm:$0xff]  ;;  %1278 = vmatprep.subr.mxu1 %v524_v50  ;;  %v391_v55 = vld [vmem:[%s2975_s14 + $0x240] sm:$0xff]  ;;  %1208 = vmatpush2.msra.mxu0 %v395_v51 }
  0xa3   : > { %v520_v54 = vld [vmem:[%s2975_s14 + $0x648] sm:$0xff]  ;;  %v519_v56 = vld [vmem:[%s2975_s14 + $0x640] sm:$0xff]  ;;  %1279 = vmatpush2.msra.mxu1 %v523_v52  ;;  %1209 = vmatprep.subr.mxu0 %v392_v53 }
  0xa4   : > { %v388_v57 = vld [vmem:[%s2975_s14 + $0x228] sm:$0xff]  ;;  %1280 = vmatprep.subr.mxu1 %v520_v54  ;;  %v387_v59 = vld [vmem:[%s2975_s14 + $0x220] sm:$0xff]  ;;  %1210 = vmatpush2.msra.mxu0 %v391_v55 }
  0xa5   : > { %v516_v58 = vld [vmem:[%s2975_s14 + $0x628] sm:$0xff]  ;;  %v515_v60 = vld [vmem:[%s2975_s14 + $0x620] sm:$0xff]  ;;  %1281 = vmatpush2.msra.mxu1 %v519_v56  ;;  %1211 = vmatprep.subr.mxu0 %v388_v57 }
  0xa6   : > { %v384_v61 = vld [vmem:[%s2975_s14 + $0x208] sm:$0xff]  ;;  %1282 = vmatprep.subr.mxu1 %v516_v58  ;;  %v383_v63 = vld [vmem:[%s2975_s14 + $0x200] sm:$0xff]  ;;  %1212 = vmatpush2.msra.mxu0 %v387_v59 }
  0xa7   : > { %v512_v62 = vld [vmem:[%s2975_s14 + $0x608] sm:$0xff]  ;;  %1283 = vmatpush2.msra.mxu1 %v515_v60  ;;  %v511_v1 = vld [vmem:[%s2975_s14 + $0x600] sm:$0xff]  ;;  %1213 = vmatprep.subr.mxu0 %v384_v61 }
  0xa8   : > { %v307_v0 = vld [vmem:[%s2993_s12 + $0x8] sm:$0xff]  ;;  %1284 = vmatprep.subr.mxu1 %v512_v62  ;;  %v306_v3 = vld [vmem:[%s2993_s12] sm:$0xff]  ;;  %1214 = vmatpush2.msra.mxu0 %v383_v63 }
  0xa9   : > { %1215 = vmatprep.mubr.f32.mxu0 %v307_v0  ;;  %v636_v5 = vld [vmem:[%s2975_s14 + $0x9e8] sm:$0xff]  ;;  %1285 = vmatpush2.msra.mxu1 %v511_v1  ;;  %v635_v7 = vld [vmem:[%s2975_s14 + $0x9e0] sm:$0xff] }
  0xaa   : > { %v764_v6 = vld [vmem:[%s2975_s14 + $0xde8] sm:$0xff]  ;;  %1286 = vmatprep.mubr.f32.mxu1 %v309_v2  ;;  %v763_v8 = vld [vmem:[%s2975_s14 + $0xde0] sm:$0xff]  ;;  %1216 = vmatmul.mubr.f32.vlgmr.msra.gmra.mxu0 %v306_v3 }
  0xab   : > { %1287 = vmatmul.mubr.f32.vlgmr.msra.gmra.mxu1 %v308_v4  ;;  %v632_v9 = vld [vmem:[%s2975_s14 + $0x9c8] sm:$0xff]  ;;  %1293 = vmatprep.subr.mxu0 %v636_v5  ;;  %v631_v11 = vld [vmem:[%s2975_s14 + $0x9c0] sm:$0xff] }
  0xac   : > { %v760_v10 = vld [vmem:[%s2975_s14 + $0xdc8] sm:$0xff]  ;;  %1364 = vmatprep.subr.mxu1 %v764_v6  ;;  %v759_v12 = vld [vmem:[%s2975_s14 + $0xdc0] sm:$0xff]  ;;  %1294 = vmatpush1.msra.mxu0 %v635_v7 }
  0xad   : > { %1365 = vmatpush1.msra.mxu1 %v763_v8  ;;  %v628_v13 = vld [vmem:[%s2975_s14 + $0x9a8] sm:$0xff]  ;;  %1295 = vmatprep.subr.mxu0 %v632_v9  ;;  %v627_v15 = vld [vmem:[%s2975_s14 + $0x9a0] sm:$0xff] }
  0xae   : > { %v756_v14 = vld [vmem:[%s2975_s14 + $0xda8] sm:$0xff]  ;;  %1366 = vmatprep.subr.mxu1 %v760_v10  ;;  %v755_v16 = vld [vmem:[%s2975_s14 + $0xda0] sm:$0xff]  ;;  %1296 = vmatpush1.msra.mxu0 %v631_v11 }
  0xaf   : > { %1367 = vmatpush1.msra.mxu1 %v759_v12  ;;  %v624_v17 = vld [vmem:[%s2975_s14 + $0x988] sm:$0xff]  ;;  %1297 = vmatprep.subr.mxu0 %v628_v13  ;;  %v623_v19 = vld [vmem:[%s2975_s14 + $0x980] sm:$0xff] }
  0xb0   : > { %v752_v18 = vld [vmem:[%s2975_s14 + $0xd88] sm:$0xff]  ;;  %1368 = vmatprep.subr.mxu1 %v756_v14  ;;  %v751_v20 = vld [vmem:[%s2975_s14 + $0xd80] sm:$0xff]  ;;  %1298 = vmatpush1.msra.mxu0 %v627_v15 }
  0xb1   : > { %1369 = vmatpush1.msra.mxu1 %v755_v16  ;;  %v620_v21 = vld [vmem:[%s2975_s14 + $0x968] sm:$0xff]  ;;  %1299 = vmatprep.subr.mxu0 %v624_v17  ;;  %v619_v23 = vld [vmem:[%s2975_s14 + $0x960] sm:$0xff] }
  0xb2   : > { %v748_v22 = vld [vmem:[%s2975_s14 + $0xd68] sm:$0xff]  ;;  %1370 = vmatprep.subr.mxu1 %v752_v18  ;;  %v747_v24 = vld [vmem:[%s2975_s14 + $0xd60] sm:$0xff]  ;;  %1300 = vmatpush1.msra.mxu0 %v623_v19 }
  0xb3   : > { %1371 = vmatpush1.msra.mxu1 %v751_v20  ;;  %v616_v25 = vld [vmem:[%s2975_s14 + $0x948] sm:$0xff]  ;;  %1301 = vmatprep.subr.mxu0 %v620_v21  ;;  %v615_v27 = vld [vmem:[%s2975_s14 + $0x940] sm:$0xff] }
  0xb4   : > { %v744_v26 = vld [vmem:[%s2975_s14 + $0xd48] sm:$0xff]  ;;  %1372 = vmatprep.subr.mxu1 %v748_v22  ;;  %v743_v28 = vld [vmem:[%s2975_s14 + $0xd40] sm:$0xff]  ;;  %1302 = vmatpush1.msra.mxu0 %v619_v23 }
  0xb5   : > { %1373 = vmatpush1.msra.mxu1 %v747_v24  ;;  %v612_v29 = vld [vmem:[%s2975_s14 + $0x928] sm:$0xff]  ;;  %1303 = vmatprep.subr.mxu0 %v616_v25  ;;  %v611_v31 = vld [vmem:[%s2975_s14 + $0x920] sm:$0xff] }
  0xb6   : > { %v740_v30 = vld [vmem:[%s2975_s14 + $0xd28] sm:$0xff]  ;;  %1374 = vmatprep.subr.mxu1 %v744_v26  ;;  %v739_v32 = vld [vmem:[%s2975_s14 + $0xd20] sm:$0xff]  ;;  %1304 = vmatpush1.msra.mxu0 %v615_v27 }
  0xb7   : > { %1375 = vmatpush1.msra.mxu1 %v743_v28  ;;  %v608_v33 = vld [vmem:[%s2975_s14 + $0x908] sm:$0xff]  ;;  %1305 = vmatprep.subr.mxu0 %v612_v29  ;;  %v607_v35 = vld [vmem:[%s2975_s14 + $0x900] sm:$0xff] }
  0xb8   : > { %v736_v34 = vld [vmem:[%s2975_s14 + $0xd08] sm:$0xff]  ;;  %1376 = vmatprep.subr.mxu1 %v740_v30  ;;  %v735_v36 = vld [vmem:[%s2975_s14 + $0xd00] sm:$0xff]  ;;  %1306 = vmatpush1.msra.mxu0 %v611_v31 }
  0xb9   : > { %1377 = vmatpush1.msra.mxu1 %v739_v32  ;;  %v604_v37 = vld [vmem:[%s2975_s14 + $0x8e8] sm:$0xff]  ;;  %1307 = vmatprep.subr.mxu0 %v608_v33  ;;  %v603_v39 = vld [vmem:[%s2975_s14 + $0x8e0] sm:$0xff] }
  0xba   : > { %v732_v38 = vld [vmem:[%s2975_s14 + $0xce8] sm:$0xff]  ;;  %1378 = vmatprep.subr.mxu1 %v736_v34  ;;  %v731_v40 = vld [vmem:[%s2975_s14 + $0xce0] sm:$0xff]  ;;  %1308 = vmatpush1.msra.mxu0 %v607_v35 }
  0xbb   : > { %1379 = vmatpush1.msra.mxu1 %v735_v36  ;;  %v600_v41 = vld [vmem:[%s2975_s14 + $0x8c8] sm:$0xff]  ;;  %1309 = vmatprep.subr.mxu0 %v604_v37  ;;  %v599_v43 = vld [vmem:[%s2975_s14 + $0x8c0] sm:$0xff] }
  0xbc   : > { %v728_v42 = vld [vmem:[%s2975_s14 + $0xcc8] sm:$0xff]  ;;  %1380 = vmatprep.subr.mxu1 %v732_v38  ;;  %v727_v44 = vld [vmem:[%s2975_s14 + $0xcc0] sm:$0xff]  ;;  %1310 = vmatpush1.msra.mxu0 %v603_v39 }
  0xbd   : > { %1381 = vmatpush1.msra.mxu1 %v731_v40  ;;  %v596_v45 = vld [vmem:[%s2975_s14 + $0x8a8] sm:$0xff]  ;;  %1311 = vmatprep.subr.mxu0 %v600_v41  ;;  %v595_v47 = vld [vmem:[%s2975_s14 + $0x8a0] sm:$0xff] }
  0xbe   : > { %v724_v46 = vld [vmem:[%s2975_s14 + $0xca8] sm:$0xff]  ;;  %1382 = vmatprep.subr.mxu1 %v728_v42  ;;  %v723_v48 = vld [vmem:[%s2975_s14 + $0xca0] sm:$0xff]  ;;  %1312 = vmatpush1.msra.mxu0 %v599_v43 }
  0xbf   : > { %1383 = vmatpush1.msra.mxu1 %v727_v44  ;;  %v592_v49 = vld [vmem:[%s2975_s14 + $0x888] sm:$0xff]  ;;  %1313 = vmatprep.subr.mxu0 %v596_v45  ;;  %v591_v51 = vld [vmem:[%s2975_s14 + $0x880] sm:$0xff] }
  0xc0   : > { %v720_v50 = vld [vmem:[%s2975_s14 + $0xc88] sm:$0xff]  ;;  %1384 = vmatprep.subr.mxu1 %v724_v46  ;;  %v719_v52 = vld [vmem:[%s2975_s14 + $0xc80] sm:$0xff]  ;;  %1314 = vmatpush1.msra.mxu0 %v595_v47 }
  0xc1   : > { %1385 = vmatpush1.msra.mxu1 %v723_v48  ;;  %v588_v53 = vld [vmem:[%s2975_s14 + $0x868] sm:$0xff]  ;;  %1315 = vmatprep.subr.mxu0 %v592_v49  ;;  %v587_v55 = vld [vmem:[%s2975_s14 + $0x860] sm:$0xff] }
  0xc2   : > { %v716_v54 = vld [vmem:[%s2975_s14 + $0xc68] sm:$0xff]  ;;  %1386 = vmatprep.subr.mxu1 %v720_v50  ;;  %v715_v56 = vld [vmem:[%s2975_s14 + $0xc60] sm:$0xff]  ;;  %1316 = vmatpush1.msra.mxu0 %v591_v51 }
  0xc3   : > { %1387 = vmatpush1.msra.mxu1 %v719_v52  ;;  %v584_v57 = vld [vmem:[%s2975_s14 + $0x848] sm:$0xff]  ;;  %1317 = vmatprep.subr.mxu0 %v588_v53  ;;  %v583_v59 = vld [vmem:[%s2975_s14 + $0x840] sm:$0xff] }
  0xc4   : > { %v712_v58 = vld [vmem:[%s2975_s14 + $0xc48] sm:$0xff]  ;;  %1388 = vmatprep.subr.mxu1 %v716_v54  ;;  %v711_v60 = vld [vmem:[%s2975_s14 + $0xc40] sm:$0xff]  ;;  %1318 = vmatpush1.msra.mxu0 %v587_v55 }
  0xc5   : > { %1389 = vmatpush1.msra.mxu1 %v715_v56  ;;  %v580_v61 = vld [vmem:[%s2975_s14 + $0x828] sm:$0xff]  ;;  %1319 = vmatprep.subr.mxu0 %v584_v57  ;;  %v579_v63 = vld [vmem:[%s2975_s14 + $0x820] sm:$0xff] }
  0xc6   : > { %v708_v62 = vld [vmem:[%s2975_s14 + $0xc28] sm:$0xff]  ;;  %1390 = vmatprep.subr.mxu1 %v712_v58  ;;  %v707_v0 = vld [vmem:[%s2975_s14 + $0xc20] sm:$0xff]  ;;  %1320 = vmatpush1.msra.mxu0 %v583_v59 }
  0xc7   : > { %1391 = vmatpush1.msra.mxu1 %v711_v60  ;;  %v576_v1 = vld [vmem:[%s2975_s14 + $0x808] sm:$0xff]  ;;  %1321 = vmatprep.subr.mxu0 %v580_v61  ;;  %v575_v3 = vld [vmem:[%s2975_s14 + $0x800] sm:$0xff] }
  0xc8   : > { %v704_v2 = vld [vmem:[%s2975_s14 + $0xc08] sm:$0xff]  ;;  %1392 = vmatprep.subr.mxu1 %v708_v62  ;;  %v703_v4 = vld [vmem:[%s2975_s14 + $0xc00] sm:$0xff]  ;;  %1322 = vmatpush1.msra.mxu0 %v579_v63 }
  0xc9   : > { %1393 = vmatpush1.msra.mxu1 %v707_v0  ;;  %v700_v5 = vld [vmem:[%s2975_s14 + $0xbe8] sm:$0xff]  ;;  %1323 = vmatprep.subr.mxu0 %v576_v1  ;;  %v699_v7 = vld [vmem:[%s2975_s14 + $0xbe0] sm:$0xff] }
  0xca   : > { %v828_v6 = vld [vmem:[%s2975_s14 + $0xfe8] sm:$0xff]  ;;  %1394 = vmatprep.subr.mxu1 %v704_v2  ;;  %v827_v8 = vld [vmem:[%s2975_s14 + $0xfe0] sm:$0xff]  ;;  %1324 = vmatpush1.msra.mxu0 %v575_v3 }
  0xcb   : > { %1395 = vmatpush1.msra.mxu1 %v703_v4  ;;  %v696_v9 = vld [vmem:[%s2975_s14 + $0xbc8] sm:$0xff]  ;;  %1325 = vmatprep.subr.mxu0 %v700_v5  ;;  %v695_v11 = vld [vmem:[%s2975_s14 + $0xbc0] sm:$0xff] }
  0xcc   : > { %v824_v10 = vld [vmem:[%s2975_s14 + $0xfc8] sm:$0xff]  ;;  %1396 = vmatprep.subr.mxu1 %v828_v6  ;;  %v823_v12 = vld [vmem:[%s2975_s14 + $0xfc0] sm:$0xff]  ;;  %1326 = vmatpush2.msra.mxu0 %v699_v7  ;;  %v313_v7 = vld [vmem:[%s2993_s12 + $0x38] sm:$0xff] }
  0xcd   : > { %1397 = vmatpush2.msra.mxu1 %v827_v8  ;;  %v692_v13 = vld [vmem:[%s2975_s14 + $0xba8] sm:$0xff]  ;;  %1327 = vmatprep.subr.mxu0 %v696_v9  ;;  %v691_v15 = vld [vmem:[%s2975_s14 + $0xba0] sm:$0xff] }
  0xce   : > { %v820_v14 = vld [vmem:[%s2975_s14 + $0xfa8] sm:$0xff]  ;;  %1398 = vmatprep.subr.mxu1 %v824_v10  ;;  %v819_v16 = vld [vmem:[%s2975_s14 + $0xfa0] sm:$0xff]  ;;  %1328 = vmatpush2.msra.mxu0 %v695_v11  ;;  %v312_v10 = vld [vmem:[%s2993_s12 + $0x30] sm:$0xff] }
  0xcf   : > { %1399 = vmatpush2.msra.mxu1 %v823_v12  ;;  %v688_v17 = vld [vmem:[%s2975_s14 + $0xb88] sm:$0xff]  ;;  %1329 = vmatprep.subr.mxu0 %v692_v13  ;;  %v687_v19 = vld [vmem:[%s2975_s14 + $0xb80] sm:$0xff] }
  0xd0   : > { %v816_v18 = vld [vmem:[%s2975_s14 + $0xf88] sm:$0xff]  ;;  %1400 = vmatprep.subr.mxu1 %v820_v14  ;;  %v815_v20 = vld [vmem:[%s2975_s14 + $0xf80] sm:$0xff]  ;;  %1330 = vmatpush2.msra.mxu0 %v691_v15 }
  0xd1   : > { %1401 = vmatpush2.msra.mxu1 %v819_v16  ;;  %v684_v21 = vld [vmem:[%s2975_s14 + $0xb68] sm:$0xff]  ;;  %1331 = vmatprep.subr.mxu0 %v688_v17  ;;  %v683_v23 = vld [vmem:[%s2975_s14 + $0xb60] sm:$0xff] }
  0xd2   : > { %v812_v22 = vld [vmem:[%s2975_s14 + $0xf68] sm:$0xff]  ;;  %1402 = vmatprep.subr.mxu1 %v816_v18  ;;  %v811_v24 = vld [vmem:[%s2975_s14 + $0xf60] sm:$0xff]  ;;  %1332 = vmatpush2.msra.mxu0 %v687_v19 }
  0xd3   : > { %1403 = vmatpush2.msra.mxu1 %v815_v20  ;;  %v680_v25 = vld [vmem:[%s2975_s14 + $0xb48] sm:$0xff]  ;;  %1333 = vmatprep.subr.mxu0 %v684_v21  ;;  %v679_v27 = vld [vmem:[%s2975_s14 + $0xb40] sm:$0xff] }
  0xd4   : > { %v808_v26 = vld [vmem:[%s2975_s14 + $0xf48] sm:$0xff]  ;;  %1404 = vmatprep.subr.mxu1 %v812_v22  ;;  %v807_v28 = vld [vmem:[%s2975_s14 + $0xf40] sm:$0xff]  ;;  %1334 = vmatpush2.msra.mxu0 %v683_v23 }
  0xd5   : > { %1405 = vmatpush2.msra.mxu1 %v811_v24  ;;  %v676_v29 = vld [vmem:[%s2975_s14 + $0xb28] sm:$0xff]  ;;  %1335 = vmatprep.subr.mxu0 %v680_v25  ;;  %v675_v31 = vld [vmem:[%s2975_s14 + $0xb20] sm:$0xff] }
  0xd6   : > { %v804_v30 = vld [vmem:[%s2975_s14 + $0xf28] sm:$0xff]  ;;  %1406 = vmatprep.subr.mxu1 %v808_v26  ;;  %v803_v32 = vld [vmem:[%s2975_s14 + $0xf20] sm:$0xff]  ;;  %1336 = vmatpush2.msra.mxu0 %v679_v27 }
  0xd7   : > { %1407 = vmatpush2.msra.mxu1 %v807_v28  ;;  %v672_v33 = vld [vmem:[%s2975_s14 + $0xb08] sm:$0xff]  ;;  %1337 = vmatprep.subr.mxu0 %v676_v29  ;;  %v671_v35 = vld [vmem:[%s2975_s14 + $0xb00] sm:$0xff] }
  0xd8   : > { %v800_v34 = vld [vmem:[%s2975_s14 + $0xf08] sm:$0xff]  ;;  %1408 = vmatprep.subr.mxu1 %v804_v30  ;;  %v799_v36 = vld [vmem:[%s2975_s14 + $0xf00] sm:$0xff]  ;;  %1338 = vmatpush2.msra.mxu0 %v675_v31 }
  0xd9   : > { %1409 = vmatpush2.msra.mxu1 %v803_v32  ;;  %v668_v37 = vld [vmem:[%s2975_s14 + $0xae8] sm:$0xff]  ;;  %1339 = vmatprep.subr.mxu0 %v672_v33  ;;  %v667_v39 = vld [vmem:[%s2975_s14 + $0xae0] sm:$0xff] }
  0xda   : > { %v796_v38 = vld [vmem:[%s2975_s14 + $0xee8] sm:$0xff]  ;;  %1410 = vmatprep.subr.mxu1 %v800_v34  ;;  %v795_v40 = vld [vmem:[%s2975_s14 + $0xee0] sm:$0xff]  ;;  %1340 = vmatpush2.msra.mxu0 %v671_v35 }
  0xdb   : > { %1411 = vmatpush2.msra.mxu1 %v799_v36  ;;  %v664_v41 = vld [vmem:[%s2975_s14 + $0xac8] sm:$0xff]  ;;  %1341 = vmatprep.subr.mxu0 %v668_v37  ;;  %v663_v43 = vld [vmem:[%s2975_s14 + $0xac0] sm:$0xff] }
  0xdc   : > { %v792_v42 = vld [vmem:[%s2975_s14 + $0xec8] sm:$0xff]  ;;  %1412 = vmatprep.subr.mxu1 %v796_v38  ;;  %v791_v44 = vld [vmem:[%s2975_s14 + $0xec0] sm:$0xff]  ;;  %1342 = vmatpush2.msra.mxu0 %v667_v39 }
  0xdd   : > { %1413 = vmatpush2.msra.mxu1 %v795_v40  ;;  %v660_v45 = vld [vmem:[%s2975_s14 + $0xaa8] sm:$0xff]  ;;  %1343 = vmatprep.subr.mxu0 %v664_v41  ;;  %v659_v47 = vld [vmem:[%s2975_s14 + $0xaa0] sm:$0xff] }
  0xde   : > { %v788_v46 = vld [vmem:[%s2975_s14 + $0xea8] sm:$0xff]  ;;  %1414 = vmatprep.subr.mxu1 %v792_v42  ;;  %v787_v48 = vld [vmem:[%s2975_s14 + $0xea0] sm:$0xff]  ;;  %1344 = vmatpush2.msra.mxu0 %v663_v43 }
  0xdf   : > { %1415 = vmatpush2.msra.mxu1 %v791_v44  ;;  %v656_v49 = vld [vmem:[%s2975_s14 + $0xa88] sm:$0xff]  ;;  %1345 = vmatprep.subr.mxu0 %v660_v45  ;;  %v655_v51 = vld [vmem:[%s2975_s14 + $0xa80] sm:$0xff] }
  0xe0   : > { %v784_v50 = vld [vmem:[%s2975_s14 + $0xe88] sm:$0xff]  ;;  %1416 = vmatprep.subr.mxu1 %v788_v46  ;;  %v783_v52 = vld [vmem:[%s2975_s14 + $0xe80] sm:$0xff]  ;;  %1346 = vmatpush2.msra.mxu0 %v659_v47 }
  0xe1   : > { %1417 = vmatpush2.msra.mxu1 %v787_v48  ;;  %v652_v53 = vld [vmem:[%s2975_s14 + $0xa68] sm:$0xff]  ;;  %1347 = vmatprep.subr.mxu0 %v656_v49  ;;  %v651_v55 = vld [vmem:[%s2975_s14 + $0xa60] sm:$0xff] }
  0xe2   : > { %v780_v54 = vld [vmem:[%s2975_s14 + $0xe68] sm:$0xff]  ;;  %1418 = vmatprep.subr.mxu1 %v784_v50  ;;  %v779_v56 = vld [vmem:[%s2975_s14 + $0xe60] sm:$0xff]  ;;  %1348 = vmatpush2.msra.mxu0 %v655_v51 }
  0xe3   : > { %1419 = vmatpush2.msra.mxu1 %v783_v52  ;;  %v648_v57 = vld [vmem:[%s2975_s14 + $0xa48] sm:$0xff]  ;;  %1349 = vmatprep.subr.mxu0 %v652_v53  ;;  %v647_v59 = vld [vmem:[%s2975_s14 + $0xa40] sm:$0xff] }
  0xe4   : > { %v776_v58 = vld [vmem:[%s2975_s14 + $0xe48] sm:$0xff]  ;;  %1420 = vmatprep.subr.mxu1 %v780_v54  ;;  %v775_v60 = vld [vmem:[%s2975_s14 + $0xe40] sm:$0xff]  ;;  %1350 = vmatpush2.msra.mxu0 %v651_v55 }
  0xe5   : > { %1421 = vmatpush2.msra.mxu1 %v779_v56  ;;  %v644_v61 = vld [vmem:[%s2975_s14 + $0xa28] sm:$0xff]  ;;  %1351 = vmatprep.subr.mxu0 %v648_v57  ;;  %v643_v63 = vld [vmem:[%s2975_s14 + $0xa20] sm:$0xff] }
  0xe6   : > { %v772_v62 = vld [vmem:[%s2975_s14 + $0xe28] sm:$0xff]  ;;  %1422 = vmatprep.subr.mxu1 %v776_v58  ;;  %v771_v0 = vld [vmem:[%s2975_s14 + $0xe20] sm:$0xff]  ;;  %1352 = vmatpush2.msra.mxu0 %v647_v59 }
  0xe7   : > { %1423 = vmatpush2.msra.mxu1 %v775_v60  ;;  %v640_v1 = vld [vmem:[%s2975_s14 + $0xa08] sm:$0xff]  ;;  %1353 = vmatprep.subr.mxu0 %v644_v61  ;;  %v639_v3 = vld [vmem:[%s2975_s14 + $0xa00] sm:$0xff] }
  0xe8   : > { %v768_v2 = vld [vmem:[%s2975_s14 + $0xe08] sm:$0xff]  ;;  %1424 = vmatprep.subr.mxu1 %v772_v62  ;;  %1354 = vmatpush2.msra.mxu0 %v643_v63  ;;  %v767_v5 = vld [vmem:[%s2975_s14 + $0xe00] sm:$0xff] }
  0xe9   : > { %v311_v4 = vld [vmem:[%s2993_s12 + $0x28] sm:$0xff]  ;;  %1425 = vmatpush2.msra.mxu1 %v771_v0  ;;  %v310_v6 = vld [vmem:[%s2993_s12 + $0x20] sm:$0xff]  ;;  %1355 = vmatprep.subr.mxu0 %v640_v1 }
  0xea   : > { %1426 = vmatprep.subr.mxu1 %v768_v2  ;;  %v892_v8 = vld [vmem:[%s2975_s14 + $0x11e8] sm:$0xff]  ;;  %1356 = vmatpush2.msra.mxu0 %v639_v3  ;;  %v891_v11 = vld [vmem:[%s2975_s14 + $0x11e0] sm:$0xff] }
  0xeb   : > { %1357 = vmatprep.mubr.f32.mxu0 %v311_v4  ;;  %v1020_v9 = vld [vmem:[%s2975_s14 + $0x15e8] sm:$0xff]  ;;  %1427 = vmatpush2.msra.mxu1 %v767_v5  ;;  %v1019_v12 = vld [vmem:[%s2975_s14 + $0x15e0] sm:$0xff] }
  0xec   : > { %1358 = vmatmul.mubr.f32.vlgmr.msra.gmra.mxu0 %v310_v6  ;;  %1428 = vmatprep.mubr.f32.mxu1 %v313_v7  ;;  %v888_v13 = vld [vmem:[%s2975_s14 + $0x11c8] sm:$0xff]  ;;  %v887_v15 = vld [vmem:[%s2975_s14 + $0x11c0] sm:$0xff] }
  0xed   : > { %1435 = vmatprep.subr.mxu0 %v892_v8  ;;  %v1016_v14 = vld [vmem:[%s2975_s14 + $0x15c8] sm:$0xff]  ;;  %1506 = vmatprep.subr.mxu1 %v1020_v9  ;;  %v1015_v16 = vld [vmem:[%s2975_s14 + $0x15c0] sm:$0xff] }
  0xee   : > { %1429 = vmatmul.mubr.f32.vlgmr.msra.gmra.mxu1 %v312_v10  ;;  %1436 = vmatpush1.msra.mxu0 %v891_v11  ;;  %v884_v17 = vld [vmem:[%s2975_s14 + $0x11a8] sm:$0xff]  ;;  %v883_v19 = vld [vmem:[%s2975_s14 + $0x11a0] sm:$0xff] }
  0xef   : > { %1507 = vmatpush1.msra.mxu1 %v1019_v12  ;;  %v1012_v18 = vld [vmem:[%s2975_s14 + $0x15a8] sm:$0xff]  ;;  %1437 = vmatprep.subr.mxu0 %v888_v13  ;;  %v1011_v20 = vld [vmem:[%s2975_s14 + $0x15a0] sm:$0xff] }
  0xf0   : > { %1508 = vmatprep.subr.mxu1 %v1016_v14  ;;  %1438 = vmatpush1.msra.mxu0 %v887_v15  ;;  %v880_v21 = vld [vmem:[%s2975_s14 + $0x1188] sm:$0xff]  ;;  %v879_v23 = vld [vmem:[%s2975_s14 + $0x1180] sm:$0xff] }
  0xf1   : > { %1509 = vmatpush1.msra.mxu1 %v1015_v16  ;;  %v1008_v22 = vld [vmem:[%s2975_s14 + $0x1588] sm:$0xff]  ;;  %1439 = vmatprep.subr.mxu0 %v884_v17  ;;  %v1007_v24 = vld [vmem:[%s2975_s14 + $0x1580] sm:$0xff] }
  0xf2   : > { %1510 = vmatprep.subr.mxu1 %v1012_v18  ;;  %1440 = vmatpush1.msra.mxu0 %v883_v19  ;;  %v876_v25 = vld [vmem:[%s2975_s14 + $0x1168] sm:$0xff]  ;;  %v875_v27 = vld [vmem:[%s2975_s14 + $0x1160] sm:$0xff] }
  0xf3   : > { %1511 = vmatpush1.msra.mxu1 %v1011_v20  ;;  %v1004_v26 = vld [vmem:[%s2975_s14 + $0x1568] sm:$0xff]  ;;  %1441 = vmatprep.subr.mxu0 %v880_v21  ;;  %v1003_v28 = vld [vmem:[%s2975_s14 + $0x1560] sm:$0xff] }
  0xf4   : > { %1512 = vmatprep.subr.mxu1 %v1008_v22  ;;  %1442 = vmatpush1.msra.mxu0 %v879_v23  ;;  %v872_v29 = vld [vmem:[%s2975_s14 + $0x1148] sm:$0xff]  ;;  %v871_v31 = vld [vmem:[%s2975_s14 + $0x1140] sm:$0xff] }
  0xf5   : > { %1513 = vmatpush1.msra.mxu1 %v1007_v24  ;;  %v1000_v30 = vld [vmem:[%s2975_s14 + $0x1548] sm:$0xff]  ;;  %1443 = vmatprep.subr.mxu0 %v876_v25  ;;  %v999_v32 = vld [vmem:[%s2975_s14 + $0x1540] sm:$0xff] }
  0xf6   : > { %1514 = vmatprep.subr.mxu1 %v1004_v26  ;;  %1444 = vmatpush1.msra.mxu0 %v875_v27  ;;  %v868_v33 = vld [vmem:[%s2975_s14 + $0x1128] sm:$0xff]  ;;  %v867_v35 = vld [vmem:[%s2975_s14 + $0x1120] sm:$0xff] }
  0xf7   : > { %1515 = vmatpush1.msra.mxu1 %v1003_v28  ;;  %v996_v34 = vld [vmem:[%s2975_s14 + $0x1528] sm:$0xff]  ;;  %1445 = vmatprep.subr.mxu0 %v872_v29  ;;  %v995_v36 = vld [vmem:[%s2975_s14 + $0x1520] sm:$0xff] }
  0xf8   : > { %1516 = vmatprep.subr.mxu1 %v1000_v30  ;;  %1446 = vmatpush1.msra.mxu0 %v871_v31  ;;  %v864_v37 = vld [vmem:[%s2975_s14 + $0x1108] sm:$0xff]  ;;  %v863_v39 = vld [vmem:[%s2975_s14 + $0x1100] sm:$0xff] }
  0xf9   : > { %1517 = vmatpush1.msra.mxu1 %v999_v32  ;;  %v992_v38 = vld [vmem:[%s2975_s14 + $0x1508] sm:$0xff]  ;;  %1447 = vmatprep.subr.mxu0 %v868_v33  ;;  %v991_v40 = vld [vmem:[%s2975_s14 + $0x1500] sm:$0xff] }
  0xfa   : > { %1518 = vmatprep.subr.mxu1 %v996_v34  ;;  %1448 = vmatpush1.msra.mxu0 %v867_v35  ;;  %v860_v41 = vld [vmem:[%s2975_s14 + $0x10e8] sm:$0xff]  ;;  %v859_v43 = vld [vmem:[%s2975_s14 + $0x10e0] sm:$0xff] }
  0xfb   : > { %1519 = vmatpush1.msra.mxu1 %v995_v36  ;;  %v988_v42 = vld [vmem:[%s2975_s14 + $0x14e8] sm:$0xff]  ;;  %1449 = vmatprep.subr.mxu0 %v864_v37  ;;  %v987_v44 = vld [vmem:[%s2975_s14 + $0x14e0] sm:$0xff] }
  0xfc   : > { %1520 = vmatprep.subr.mxu1 %v992_v38  ;;  %1450 = vmatpush1.msra.mxu0 %v863_v39  ;;  %v856_v45 = vld [vmem:[%s2975_s14 + $0x10c8] sm:$0xff]  ;;  %v855_v47 = vld [vmem:[%s2975_s14 + $0x10c0] sm:$0xff] }
  0xfd   : > { %1521 = vmatpush1.msra.mxu1 %v991_v40  ;;  %v984_v46 = vld [vmem:[%s2975_s14 + $0x14c8] sm:$0xff]  ;;  %1451 = vmatprep.subr.mxu0 %v860_v41  ;;  %v983_v48 = vld [vmem:[%s2975_s14 + $0x14c0] sm:$0xff] }
  0xfe   : > { %1522 = vmatprep.subr.mxu1 %v988_v42  ;;  %1452 = vmatpush1.msra.mxu0 %v859_v43  ;;  %v852_v49 = vld [vmem:[%s2975_s14 + $0x10a8] sm:$0xff]  ;;  %v851_v51 = vld [vmem:[%s2975_s14 + $0x10a0] sm:$0xff] }
  0xff   : > { %1523 = vmatpush1.msra.mxu1 %v987_v44  ;;  %v980_v50 = vld [vmem:[%s2975_s14 + $0x14a8] sm:$0xff]  ;;  %1453 = vmatprep.subr.mxu0 %v856_v45  ;;  %v979_v52 = vld [vmem:[%s2975_s14 + $0x14a0] sm:$0xff] }
 0x100   : > { %1524 = vmatprep.subr.mxu1 %v984_v46  ;;  %1454 = vmatpush1.msra.mxu0 %v855_v47  ;;  %v848_v53 = vld [vmem:[%s2975_s14 + $0x1088] sm:$0xff]  ;;  %v847_v55 = vld [vmem:[%s2975_s14 + $0x1080] sm:$0xff] }
 0x101   : > { %1525 = vmatpush1.msra.mxu1 %v983_v48  ;;  %v976_v54 = vld [vmem:[%s2975_s14 + $0x1488] sm:$0xff]  ;;  %1455 = vmatprep.subr.mxu0 %v852_v49  ;;  %v975_v56 = vld [vmem:[%s2975_s14 + $0x1480] sm:$0xff] }
 0x102   : > { %1526 = vmatprep.subr.mxu1 %v980_v50  ;;  %1456 = vmatpush1.msra.mxu0 %v851_v51  ;;  %v844_v57 = vld [vmem:[%s2975_s14 + $0x1068] sm:$0xff]  ;;  %v843_v59 = vld [vmem:[%s2975_s14 + $0x1060] sm:$0xff] }
 0x103   : > { %1527 = vmatpush1.msra.mxu1 %v979_v52  ;;  %v972_v58 = vld [vmem:[%s2975_s14 + $0x1468] sm:$0xff]  ;;  %1457 = vmatprep.subr.mxu0 %v848_v53  ;;  %v971_v60 = vld [vmem:[%s2975_s14 + $0x1460] sm:$0xff] }
 0x104   : > { %1528 = vmatprep.subr.mxu1 %v976_v54  ;;  %1458 = vmatpush1.msra.mxu0 %v847_v55  ;;  %v840_v61 = vld [vmem:[%s2975_s14 + $0x1048] sm:$0xff]  ;;  %v839_v63 = vld [vmem:[%s2975_s14 + $0x1040] sm:$0xff] }
 0x105   : > { %1529 = vmatpush1.msra.mxu1 %v975_v56  ;;  %v968_v62 = vld [vmem:[%s2975_s14 + $0x1448] sm:$0xff]  ;;  %1459 = vmatprep.subr.mxu0 %v844_v57  ;;  %v967_v0 = vld [vmem:[%s2975_s14 + $0x1440] sm:$0xff] }
 0x106   : > { %1530 = vmatprep.subr.mxu1 %v972_v58  ;;  %1460 = vmatpush1.msra.mxu0 %v843_v59  ;;  %v836_v1 = vld [vmem:[%s2975_s14 + $0x1028] sm:$0xff]  ;;  %v835_v3 = vld [vmem:[%s2975_s14 + $0x1020] sm:$0xff] }
 0x107   : > { %1531 = vmatpush1.msra.mxu1 %v971_v60  ;;  %v964_v2 = vld [vmem:[%s2975_s14 + $0x1428] sm:$0xff]  ;;  %1461 = vmatprep.subr.mxu0 %v840_v61  ;;  %v963_v4 = vld [vmem:[%s2975_s14 + $0x1420] sm:$0xff] }
 0x108   : > { %1532 = vmatprep.subr.mxu1 %v968_v62  ;;  %1462 = vmatpush1.msra.mxu0 %v839_v63  ;;  %v832_v5 = vld [vmem:[%s2975_s14 + $0x1008] sm:$0xff]  ;;  %v831_v7 = vld [vmem:[%s2975_s14 + $0x1000] sm:$0xff] }
 0x109   : > { %1533 = vmatpush1.msra.mxu1 %v967_v0  ;;  %v960_v6 = vld [vmem:[%s2975_s14 + $0x1408] sm:$0xff]  ;;  %1463 = vmatprep.subr.mxu0 %v836_v1  ;;  %v959_v8 = vld [vmem:[%s2975_s14 + $0x1400] sm:$0xff] }
 0x10a   : > { %1534 = vmatprep.subr.mxu1 %v964_v2  ;;  %1464 = vmatpush1.msra.mxu0 %v835_v3  ;;  %v956_v9 = vld [vmem:[%s2975_s14 + $0x13e8] sm:$0xff]  ;;  %v955_v11 = vld [vmem:[%s2975_s14 + $0x13e0] sm:$0xff] }
 0x10b   : > { %1535 = vmatpush1.msra.mxu1 %v963_v4  ;;  %v1084_v10 = vld [vmem:[%s2975_s14 + $0x17e8] sm:$0xff]  ;;  %1465 = vmatprep.subr.mxu0 %v832_v5  ;;  %v1083_v12 = vld [vmem:[%s2975_s14 + $0x17e0] sm:$0xff] }
 0x10c   : > { %1536 = vmatprep.subr.mxu1 %v960_v6  ;;  %1466 = vmatpush1.msra.mxu0 %v831_v7  ;;  %v952_v13 = vld [vmem:[%s2975_s14 + $0x13c8] sm:$0xff]  ;;  %v951_v15 = vld [vmem:[%s2975_s14 + $0x13c0] sm:$0xff] }
 0x10d   : > { %1537 = vmatpush1.msra.mxu1 %v959_v8  ;;  %v1080_v14 = vld [vmem:[%s2975_s14 + $0x17c8] sm:$0xff]  ;;  %1467 = vmatprep.subr.mxu0 %v956_v9  ;;  %v1079_v16 = vld [vmem:[%s2975_s14 + $0x17c0] sm:$0xff] }
 0x10e   : > { %1538 = vmatprep.subr.mxu1 %v1084_v10  ;;  %1468 = vmatpush2.msra.mxu0 %v955_v11  ;;  %v948_v17 = vld [vmem:[%s2975_s14 + $0x13a8] sm:$0xff]  ;;  %v947_v19 = vld [vmem:[%s2975_s14 + $0x13a0] sm:$0xff]  ;;  %v317_v11 = vld [vmem:[%s2993_s12 + $0x58] sm:$0xff] }
 0x10f   : > { %1539 = vmatpush2.msra.mxu1 %v1083_v12  ;;  %v1076_v18 = vld [vmem:[%s2975_s14 + $0x17a8] sm:$0xff]  ;;  %1469 = vmatprep.subr.mxu0 %v952_v13  ;;  %v1075_v20 = vld [vmem:[%s2975_s14 + $0x17a0] sm:$0xff]  ;;  %v382_v13 = vld [vmem:[%s2975_s14 + $0x1f8] sm:$0xff] }
 0x110   : > { %1540 = vmatprep.subr.mxu1 %v1080_v14  ;;  %1470 = vmatpush2.msra.mxu0 %v951_v15  ;;  %v944_v21 = vld [vmem:[%s2975_s14 + $0x1388] sm:$0xff]  ;;  %v943_v23 = vld [vmem:[%s2975_s14 + $0x1380] sm:$0xff]  ;;  %v316_v14 = vld [vmem:[%s2993_s12 + $0x50] sm:$0xff] }
 0x111   : > { %1541 = vmatpush2.msra.mxu1 %v1079_v16  ;;  %v1072_v22 = vld [vmem:[%s2975_s14 + $0x1788] sm:$0xff]  ;;  %1471 = vmatprep.subr.mxu0 %v948_v17  ;;  %v1071_v24 = vld [vmem:[%s2975_s14 + $0x1780] sm:$0xff]  ;;  %v381_v16 = vld [vmem:[%s2975_s14 + $0x1f0] sm:$0xff] }
 0x112   : > { %1542 = vmatprep.subr.mxu1 %v1076_v18  ;;  %1472 = vmatpush2.msra.mxu0 %v947_v19  ;;  %v940_v25 = vld [vmem:[%s2975_s14 + $0x1368] sm:$0xff]  ;;  %v939_v27 = vld [vmem:[%s2975_s14 + $0x1360] sm:$0xff]  ;;  %v378_v18 = vld [vmem:[%s2975_s14 + $0x1d8] sm:$0xff] }
 0x113   : > { %1543 = vmatpush2.msra.mxu1 %v1075_v20  ;;  %v1068_v26 = vld [vmem:[%s2975_s14 + $0x1768] sm:$0xff]  ;;  %1473 = vmatprep.subr.mxu0 %v944_v21  ;;  %v1067_v28 = vld [vmem:[%s2975_s14 + $0x1760] sm:$0xff]  ;;  %v377_v20 = vld [vmem:[%s2975_s14 + $0x1d0] sm:$0xff] }
 0x114   : > { %1544 = vmatprep.subr.mxu1 %v1072_v22  ;;  %1474 = vmatpush2.msra.mxu0 %v943_v23  ;;  %v936_v29 = vld [vmem:[%s2975_s14 + $0x1348] sm:$0xff]  ;;  %v935_v31 = vld [vmem:[%s2975_s14 + $0x1340] sm:$0xff]  ;;  %v374_v22 = vld [vmem:[%s2975_s14 + $0x1b8] sm:$0xff] }
 0x115   : > { %1545 = vmatpush2.msra.mxu1 %v1071_v24  ;;  %v1064_v30 = vld [vmem:[%s2975_s14 + $0x1748] sm:$0xff]  ;;  %1475 = vmatprep.subr.mxu0 %v940_v25  ;;  %v1063_v32 = vld [vmem:[%s2975_s14 + $0x1740] sm:$0xff]  ;;  %v373_v24 = vld [vmem:[%s2975_s14 + $0x1b0] sm:$0xff] }
 0x116   : > { %1546 = vmatprep.subr.mxu1 %v1068_v26  ;;  %1476 = vmatpush2.msra.mxu0 %v939_v27  ;;  %v932_v33 = vld [vmem:[%s2975_s14 + $0x1328] sm:$0xff]  ;;  %v931_v35 = vld [vmem:[%s2975_s14 + $0x1320] sm:$0xff]  ;;  %v370_v26 = vld [vmem:[%s2975_s14 + $0x198] sm:$0xff] }
 0x117   : > { %1547 = vmatpush2.msra.mxu1 %v1067_v28  ;;  %v1060_v34 = vld [vmem:[%s2975_s14 + $0x1728] sm:$0xff]  ;;  %1477 = vmatprep.subr.mxu0 %v936_v29  ;;  %v1059_v36 = vld [vmem:[%s2975_s14 + $0x1720] sm:$0xff]  ;;  %v369_v28 = vld [vmem:[%s2975_s14 + $0x190] sm:$0xff] }
 0x118   : > { %1548 = vmatprep.subr.mxu1 %v1064_v30  ;;  %1478 = vmatpush2.msra.mxu0 %v935_v31  ;;  %v928_v37 = vld [vmem:[%s2975_s14 + $0x1308] sm:$0xff]  ;;  %v927_v39 = vld [vmem:[%s2975_s14 + $0x1300] sm:$0xff]  ;;  %v366_v30 = vld [vmem:[%s2975_s14 + $0x178] sm:$0xff] }
 0x119   : > { %1549 = vmatpush2.msra.mxu1 %v1063_v32  ;;  %v1056_v38 = vld [vmem:[%s2975_s14 + $0x1708] sm:$0xff]  ;;  %1479 = vmatprep.subr.mxu0 %v932_v33  ;;  %v1055_v40 = vld [vmem:[%s2975_s14 + $0x1700] sm:$0xff]  ;;  %v365_v32 = vld [vmem:[%s2975_s14 + $0x170] sm:$0xff] }
 0x11a   : > { %1550 = vmatprep.subr.mxu1 %v1060_v34  ;;  %1480 = vmatpush2.msra.mxu0 %v931_v35  ;;  %v924_v41 = vld [vmem:[%s2975_s14 + $0x12e8] sm:$0xff]  ;;  %v923_v43 = vld [vmem:[%s2975_s14 + $0x12e0] sm:$0xff]  ;;  %v362_v34 = vld [vmem:[%s2975_s14 + $0x158] sm:$0xff] }
 0x11b   : > { %1551 = vmatpush2.msra.mxu1 %v1059_v36  ;;  %v1052_v42 = vld [vmem:[%s2975_s14 + $0x16e8] sm:$0xff]  ;;  %1481 = vmatprep.subr.mxu0 %v928_v37  ;;  %v1051_v44 = vld [vmem:[%s2975_s14 + $0x16e0] sm:$0xff]  ;;  %v361_v36 = vld [vmem:[%s2975_s14 + $0x150] sm:$0xff] }
 0x11c   : > { %1552 = vmatprep.subr.mxu1 %v1056_v38  ;;  %1482 = vmatpush2.msra.mxu0 %v927_v39  ;;  %v920_v45 = vld [vmem:[%s2975_s14 + $0x12c8] sm:$0xff]  ;;  %v919_v47 = vld [vmem:[%s2975_s14 + $0x12c0] sm:$0xff]  ;;  %v358_v38 = vld [vmem:[%s2975_s14 + $0x138] sm:$0xff] }
 0x11d   : > { %1553 = vmatpush2.msra.mxu1 %v1055_v40  ;;  %v1048_v46 = vld [vmem:[%s2975_s14 + $0x16c8] sm:$0xff]  ;;  %1483 = vmatprep.subr.mxu0 %v924_v41  ;;  %v1047_v48 = vld [vmem:[%s2975_s14 + $0x16c0] sm:$0xff]  ;;  %v357_v40 = vld [vmem:[%s2975_s14 + $0x130] sm:$0xff] }
 0x11e   : > { %1554 = vmatprep.subr.mxu1 %v1052_v42  ;;  %1484 = vmatpush2.msra.mxu0 %v923_v43  ;;  %v916_v49 = vld [vmem:[%s2975_s14 + $0x12a8] sm:$0xff]  ;;  %v915_v51 = vld [vmem:[%s2975_s14 + $0x12a0] sm:$0xff]  ;;  %v354_v42 = vld [vmem:[%s2975_s14 + $0x118] sm:$0xff] }
 0x11f   : > { %1555 = vmatpush2.msra.mxu1 %v1051_v44  ;;  %v1044_v50 = vld [vmem:[%s2975_s14 + $0x16a8] sm:$0xff]  ;;  %1485 = vmatprep.subr.mxu0 %v920_v45  ;;  %v1043_v52 = vld [vmem:[%s2975_s14 + $0x16a0] sm:$0xff]  ;;  %v353_v44 = vld [vmem:[%s2975_s14 + $0x110] sm:$0xff] }
 0x120   : > { %1556 = vmatprep.subr.mxu1 %v1048_v46  ;;  %1486 = vmatpush2.msra.mxu0 %v919_v47  ;;  %v912_v53 = vld [vmem:[%s2975_s14 + $0x1288] sm:$0xff]  ;;  %v911_v55 = vld [vmem:[%s2975_s14 + $0x1280] sm:$0xff]  ;;  %v350_v46 = vld [vmem:[%s2975_s14 + $0xf8] sm:$0xff] }
 0x121   : > { %1557 = vmatpush2.msra.mxu1 %v1047_v48  ;;  %v1040_v54 = vld [vmem:[%s2975_s14 + $0x1688] sm:$0xff]  ;;  %1487 = vmatprep.subr.mxu0 %v916_v49  ;;  %v1039_v56 = vld [vmem:[%s2975_s14 + $0x1680] sm:$0xff]  ;;  %v349_v48 = vld [vmem:[%s2975_s14 + $0xf0] sm:$0xff] }
 0x122   : > { %1558 = vmatprep.subr.mxu1 %v1044_v50  ;;  %1488 = vmatpush2.msra.mxu0 %v915_v51  ;;  %v908_v57 = vld [vmem:[%s2975_s14 + $0x1268] sm:$0xff]  ;;  %v907_v59 = vld [vmem:[%s2975_s14 + $0x1260] sm:$0xff]  ;;  %v346_v50 = vld [vmem:[%s2975_s14 + $0xd8] sm:$0xff] }
 0x123   : > { %1559 = vmatpush2.msra.mxu1 %v1043_v52  ;;  %v1036_v58 = vld [vmem:[%s2975_s14 + $0x1668] sm:$0xff]  ;;  %1489 = vmatprep.subr.mxu0 %v912_v53  ;;  %v1035_v60 = vld [vmem:[%s2975_s14 + $0x1660] sm:$0xff]  ;;  %v345_v52 = vld [vmem:[%s2975_s14 + $0xd0] sm:$0xff] }
 0x124   : > { %1560 = vmatprep.subr.mxu1 %v1040_v54  ;;  %1490 = vmatpush2.msra.mxu0 %v911_v55  ;;  %v904_v61 = vld [vmem:[%s2975_s14 + $0x1248] sm:$0xff]  ;;  %v903_v63 = vld [vmem:[%s2975_s14 + $0x1240] sm:$0xff]  ;;  %v342_v54 = vld [vmem:[%s2975_s14 + $0xb8] sm:$0xff] }
 0x125   : > { %1561 = vmatpush2.msra.mxu1 %v1039_v56  ;;  %v1032_v62 = vld [vmem:[%s2975_s14 + $0x1648] sm:$0xff]  ;;  %1491 = vmatprep.subr.mxu0 %v908_v57  ;;  %v1031_v0 = vld [vmem:[%s2975_s14 + $0x1640] sm:$0xff]  ;;  %v341_v56 = vld [vmem:[%s2975_s14 + $0xb0] sm:$0xff] }
 0x126   : > { %1562 = vmatprep.subr.mxu1 %v1036_v58  ;;  %1492 = vmatpush2.msra.mxu0 %v907_v59  ;;  %v900_v1 = vld [vmem:[%s2975_s14 + $0x1228] sm:$0xff]  ;;  %v899_v3 = vld [vmem:[%s2975_s14 + $0x1220] sm:$0xff]  ;;  %v338_v58 = vld [vmem:[%s2975_s14 + $0x98] sm:$0xff] }
 0x127   : > { %1563 = vmatpush2.msra.mxu1 %v1035_v60  ;;  %v1028_v2 = vld [vmem:[%s2975_s14 + $0x1628] sm:$0xff]  ;;  %1493 = vmatprep.subr.mxu0 %v904_v61  ;;  %v1027_v4 = vld [vmem:[%s2975_s14 + $0x1620] sm:$0xff]  ;;  %v337_v60 = vld [vmem:[%s2975_s14 + $0x90] sm:$0xff] }
 0x128   : > { %1564 = vmatprep.subr.mxu1 %v1032_v62  ;;  %1494 = vmatpush2.msra.mxu0 %v903_v63  ;;  %v896_v5 = vld [vmem:[%s2975_s14 + $0x1208] sm:$0xff]  ;;  %v895_v7 = vld [vmem:[%s2975_s14 + $0x1200] sm:$0xff]  ;;  %v334_v62 = vld [vmem:[%s2975_s14 + $0x78] sm:$0xff] }
 0x129   : > { %1565 = vmatpush2.msra.mxu1 %v1031_v0  ;;  %v1024_v6 = vld [vmem:[%s2975_s14 + $0x1608] sm:$0xff]  ;;  %1495 = vmatprep.subr.mxu0 %v900_v1  ;;  %v1023_v9 = vld [vmem:[%s2975_s14 + $0x1600] sm:$0xff]  ;;  %v333_v0 = vld [vmem:[%s2975_s14 + $0x70] sm:$0xff] }
 0x12a   : > { %1566 = vmatprep.subr.mxu1 %v1028_v2  ;;  %v315_v8 = vld [vmem:[%s2993_s12 + $0x48] sm:$0xff]  ;;  %1496 = vmatpush2.msra.mxu0 %v899_v3  ;;  %v314_v10 = vld [vmem:[%s2993_s12 + $0x40] sm:$0xff]  ;;  %v330_v2 = vld [vmem:[%s2975_s14 + $0x58] sm:$0xff] }
 0x12b   : > { %1567 = vmatpush2.msra.mxu1 %v1027_v4  ;;  %1497 = vmatprep.subr.mxu0 %v896_v5  ;;  %v1148_v12 = vld [vmem:[%s2975_s14 + $0x19e8] sm:$0xff]  ;;  %v1147_v15 = vld [vmem:[%s2975_s14 + $0x19e0] sm:$0xff]  ;;  %v329_v4 = vld [vmem:[%s2975_s14 + $0x50] sm:$0xff] }
 0x12c   : > { %1568 = vmatprep.subr.mxu1 %v1024_v6  ;;  %1498 = vmatpush2.msra.mxu0 %v895_v7  ;;  %v1144_v17 = vld [vmem:[%s2975_s14 + $0x19c8] sm:$0xff]  ;;  %v1143_v19 = vld [vmem:[%s2975_s14 + $0x19c0] sm:$0xff]  ;;  %v326_v6 = vld [vmem:[%s2975_s14 + $0x38] sm:$0xff] }
 0x12d   : > { %1499 = vmatprep.mubr.f32.mxu0 %v315_v8  ;;  %1569 = vmatpush2.msra.mxu1 %v1023_v9  ;;  %v1140_v21 = vld [vmem:[%s2975_s14 + $0x19a8] sm:$0xff]  ;;  %v1139_v23 = vld [vmem:[%s2975_s14 + $0x19a0] sm:$0xff]  ;;  %v325_v8 = vld [vmem:[%s2975_s14 + $0x30] sm:$0xff] }
 0x12e   : > { %1500 = vmatmul.mubr.f32.vlgmr.msra.gmra.mxu0 %v314_v10  ;;  %1570 = vmatprep.mubr.f32.mxu1 %v317_v11  ;;  %v1136_v25 = vld [vmem:[%s2975_s14 + $0x1988] sm:$0xff]  ;;  %v1135_v27 = vld [vmem:[%s2975_s14 + $0x1980] sm:$0xff]  ;;  %v322_v10 = vld [vmem:[%s2975_s14 + $0x18] sm:$0xff] }
 0x12f   : > { %1577 = vmatprep.subr.mxu0 %v1148_v12  ;;  %1648 = vmatprep.subr.mxu1 %v382_v13  ;;  %v1132_v29 = vld [vmem:[%s2975_s14 + $0x1968] sm:$0xff]  ;;  %v1131_v31 = vld [vmem:[%s2975_s14 + $0x1960] sm:$0xff]  ;;  %v321_v12 = vld [vmem:[%s2975_s14 + $0x10] sm:$0xff] }
 0x130   : > { %1571 = vmatmul.mubr.f32.vlgmr.msra.gmra.mxu1 %v316_v14  ;;  %1578 = vmatpush1.msra.mxu0 %v1147_v15  ;;  %v1128_v33 = vld [vmem:[%s2975_s14 + $0x1948] sm:$0xff]  ;;  %v1127_v35 = vld [vmem:[%s2975_s14 + $0x1940] sm:$0xff]  ;;  %v446_v14 = vld [vmem:[%s2975_s14 + $0x3f8] sm:$0xff] }
 0x131   : > { %1649 = vmatpush1.msra.mxu1 %v381_v16  ;;  %1579 = vmatprep.subr.mxu0 %v1144_v17  ;;  %v1124_v37 = vld [vmem:[%s2975_s14 + $0x1928] sm:$0xff]  ;;  %v1123_v39 = vld [vmem:[%s2975_s14 + $0x1920] sm:$0xff]  ;;  %v510_v15 = vld [vmem:[%s2975_s14 + $0x5f8] sm:$0xff]  ;;  %v2824_v16 = vmov 0.0  }
 0x132   : > { %1650 = vmatprep.subr.mxu1 %v378_v18  ;;  %1580 = vmatpush1.msra.mxu0 %v1143_v19  ;;  %v1120_v41 = vld [vmem:[%s2975_s14 + $0x1908] sm:$0xff]  ;;  %v1119_v43 = vld [vmem:[%s2975_s14 + $0x1900] sm:$0xff]  ;;  %v445_v17 = vld [vmem:[%s2975_s14 + $0x3f0] sm:$0xff] }
 0x133   : > { %1651 = vmatpush1.msra.mxu1 %v377_v20  ;;  %1581 = vmatprep.subr.mxu0 %v1140_v21  ;;  %v1116_v45 = vld [vmem:[%s2975_s14 + $0x18e8] sm:$0xff]  ;;  %v1115_v47 = vld [vmem:[%s2975_s14 + $0x18e0] sm:$0xff]  ;;  %v509_v18 = vld [vmem:[%s2975_s14 + $0x5f0] sm:$0xff] }
 0x134   : > { %1652 = vmatprep.subr.mxu1 %v374_v22  ;;  %1582 = vmatpush1.msra.mxu0 %v1139_v23  ;;  %v1112_v49 = vld [vmem:[%s2975_s14 + $0x18c8] sm:$0xff]  ;;  %v1111_v51 = vld [vmem:[%s2975_s14 + $0x18c0] sm:$0xff]  ;;  %v442_v19 = vld [vmem:[%s2975_s14 + $0x3d8] sm:$0xff] }
 0x135   : > { %1653 = vmatpush1.msra.mxu1 %v373_v24  ;;  %1583 = vmatprep.subr.mxu0 %v1136_v25  ;;  %v1108_v53 = vld [vmem:[%s2975_s14 + $0x18a8] sm:$0xff]  ;;  %v1107_v55 = vld [vmem:[%s2975_s14 + $0x18a0] sm:$0xff]  ;;  %v506_v20 = vld [vmem:[%s2975_s14 + $0x5d8] sm:$0xff] }
 0x136   : > { %1654 = vmatprep.subr.mxu1 %v370_v26  ;;  %1584 = vmatpush1.msra.mxu0 %v1135_v27  ;;  %v1104_v57 = vld [vmem:[%s2975_s14 + $0x1888] sm:$0xff]  ;;  %v1103_v59 = vld [vmem:[%s2975_s14 + $0x1880] sm:$0xff]  ;;  %v441_v21 = vld [vmem:[%s2975_s14 + $0x3d0] sm:$0xff] }
 0x137   : > { %1655 = vmatpush1.msra.mxu1 %v369_v28  ;;  %1585 = vmatprep.subr.mxu0 %v1132_v29  ;;  %v1100_v61 = vld [vmem:[%s2975_s14 + $0x1868] sm:$0xff]  ;;  %v1099_v63 = vld [vmem:[%s2975_s14 + $0x1860] sm:$0xff]  ;;  %v505_v22 = vld [vmem:[%s2975_s14 + $0x5d0] sm:$0xff] }
 0x138   : > { %1656 = vmatprep.subr.mxu1 %v366_v30  ;;  %1586 = vmatpush1.msra.mxu0 %v1131_v31  ;;  %v1096_v1 = vld [vmem:[%s2975_s14 + $0x1848] sm:$0xff]  ;;  %v1095_v3 = vld [vmem:[%s2975_s14 + $0x1840] sm:$0xff]  ;;  %v438_v23 = vld [vmem:[%s2975_s14 + $0x3b8] sm:$0xff] }
 0x139   : > { %1657 = vmatpush1.msra.mxu1 %v365_v32  ;;  %1587 = vmatprep.subr.mxu0 %v1128_v33  ;;  %v1092_v5 = vld [vmem:[%s2975_s14 + $0x1828] sm:$0xff]  ;;  %v1091_v7 = vld [vmem:[%s2975_s14 + $0x1820] sm:$0xff]  ;;  %v502_v24 = vld [vmem:[%s2975_s14 + $0x5b8] sm:$0xff] }
 0x13a   : > { %1658 = vmatprep.subr.mxu1 %v362_v34  ;;  %1588 = vmatpush1.msra.mxu0 %v1127_v35  ;;  %v1088_v9 = vld [vmem:[%s2975_s14 + $0x1808] sm:$0xff]  ;;  %v1087_v11 = vld [vmem:[%s2975_s14 + $0x1800] sm:$0xff]  ;;  %v437_v25 = vld [vmem:[%s2975_s14 + $0x3b0] sm:$0xff] }
 0x13b   : > { %1659 = vmatpush1.msra.mxu1 %v361_v36  ;;  %1589 = vmatprep.subr.mxu0 %v1124_v37  ;;  %v318_v13 = vld [vmem:[%s2993_s12 + $0x60] sm:$0xff]  ;;  %v501_v26 = vld [vmem:[%s2975_s14 + $0x5b0] sm:$0xff]  ;;  %v434_v27 = vld [vmem:[%s2975_s14 + $0x398] sm:$0xff] }
 0x13c   : > { %1660 = vmatprep.subr.mxu1 %v358_v38  ;;  %1590 = vmatpush1.msra.mxu0 %v1123_v39  ;;  %v498_v28 = vld [vmem:[%s2975_s14 + $0x598] sm:$0xff]  ;;  %v433_v29 = vld [vmem:[%s2975_s14 + $0x390] sm:$0xff] }
 0x13d   : > { %1661 = vmatpush1.msra.mxu1 %v357_v40  ;;  %1591 = vmatprep.subr.mxu0 %v1120_v41  ;;  %v497_v30 = vld [vmem:[%s2975_s14 + $0x590] sm:$0xff]  ;;  %v430_v31 = vld [vmem:[%s2975_s14 + $0x378] sm:$0xff] }
 0x13e   : > { %1662 = vmatprep.subr.mxu1 %v354_v42  ;;  %1592 = vmatpush1.msra.mxu0 %v1119_v43  ;;  %v494_v32 = vld [vmem:[%s2975_s14 + $0x578] sm:$0xff]  ;;  %v429_v33 = vld [vmem:[%s2975_s14 + $0x370] sm:$0xff] }
 0x13f   : > { %1663 = vmatpush1.msra.mxu1 %v353_v44  ;;  %1593 = vmatprep.subr.mxu0 %v1116_v45  ;;  %v493_v34 = vld [vmem:[%s2975_s14 + $0x570] sm:$0xff]  ;;  %v426_v35 = vld [vmem:[%s2975_s14 + $0x358] sm:$0xff] }
 0x140   : > { %1664 = vmatprep.subr.mxu1 %v350_v46  ;;  %1594 = vmatpush1.msra.mxu0 %v1115_v47  ;;  %v490_v36 = vld [vmem:[%s2975_s14 + $0x558] sm:$0xff]  ;;  %v425_v37 = vld [vmem:[%s2975_s14 + $0x350] sm:$0xff] }
 0x141   : > { %1665 = vmatpush1.msra.mxu1 %v349_v48  ;;  %1595 = vmatprep.subr.mxu0 %v1112_v49  ;;  %v489_v38 = vld [vmem:[%s2975_s14 + $0x550] sm:$0xff]  ;;  %v422_v39 = vld [vmem:[%s2975_s14 + $0x338] sm:$0xff] }
 0x142   : > { %1666 = vmatprep.subr.mxu1 %v346_v50  ;;  %1596 = vmatpush1.msra.mxu0 %v1111_v51  ;;  %v486_v40 = vld [vmem:[%s2975_s14 + $0x538] sm:$0xff]  ;;  %v421_v41 = vld [vmem:[%s2975_s14 + $0x330] sm:$0xff] }
 0x143   : > { %1667 = vmatpush1.msra.mxu1 %v345_v52  ;;  %1597 = vmatprep.subr.mxu0 %v1108_v53  ;;  %v485_v42 = vld [vmem:[%s2975_s14 + $0x530] sm:$0xff]  ;;  %v418_v43 = vld [vmem:[%s2975_s14 + $0x318] sm:$0xff] }
 0x144   : > { %1668 = vmatprep.subr.mxu1 %v342_v54  ;;  %1598 = vmatpush1.msra.mxu0 %v1107_v55  ;;  %v482_v44 = vld [vmem:[%s2975_s14 + $0x518] sm:$0xff]  ;;  %v417_v45 = vld [vmem:[%s2975_s14 + $0x310] sm:$0xff] }
 0x145   : > { %1669 = vmatpush1.msra.mxu1 %v341_v56  ;;  %1599 = vmatprep.subr.mxu0 %v1104_v57  ;;  %v481_v46 = vld [vmem:[%s2975_s14 + $0x510] sm:$0xff]  ;;  %v414_v47 = vld [vmem:[%s2975_s14 + $0x2f8] sm:$0xff] }
 0x146   : > { %1670 = vmatprep.subr.mxu1 %v338_v58  ;;  %1600 = vmatpush1.msra.mxu0 %v1103_v59  ;;  %v478_v48 = vld [vmem:[%s2975_s14 + $0x4f8] sm:$0xff]  ;;  %v413_v49 = vld [vmem:[%s2975_s14 + $0x2f0] sm:$0xff] }
 0x147   : > { %1671 = vmatpush1.msra.mxu1 %v337_v60  ;;  %1601 = vmatprep.subr.mxu0 %v1100_v61  ;;  %v477_v50 = vld [vmem:[%s2975_s14 + $0x4f0] sm:$0xff]  ;;  %v410_v51 = vld [vmem:[%s2975_s14 + $0x2d8] sm:$0xff] }
 0x148   : > { %1672 = vmatprep.subr.mxu1 %v334_v62  ;;  %1602 = vmatpush1.msra.mxu0 %v1099_v63  ;;  %v474_v52 = vld [vmem:[%s2975_s14 + $0x4d8] sm:$0xff]  ;;  %v409_v53 = vld [vmem:[%s2975_s14 + $0x2d0] sm:$0xff] }
 0x149   : > { %1673 = vmatpush1.msra.mxu1 %v333_v0  ;;  %1603 = vmatprep.subr.mxu0 %v1096_v1  ;;  %v473_v54 = vld [vmem:[%s2975_s14 + $0x4d0] sm:$0xff]  ;;  %v406_v55 = vld [vmem:[%s2975_s14 + $0x2b8] sm:$0xff] }
 0x14a   : > { %1674 = vmatprep.subr.mxu1 %v330_v2  ;;  %1604 = vmatpush1.msra.mxu0 %v1095_v3  ;;  %v470_v56 = vld [vmem:[%s2975_s14 + $0x4b8] sm:$0xff]  ;;  %v405_v57 = vld [vmem:[%s2975_s14 + $0x2b0] sm:$0xff] }
 0x14b   : > { %1675 = vmatpush1.msra.mxu1 %v329_v4  ;;  %1605 = vmatprep.subr.mxu0 %v1092_v5  ;;  %v469_v58 = vld [vmem:[%s2975_s14 + $0x4b0] sm:$0xff]  ;;  %v402_v59 = vld [vmem:[%s2975_s14 + $0x298] sm:$0xff] }
 0x14c   : > { %1676 = vmatprep.subr.mxu1 %v326_v6  ;;  %1606 = vmatpush1.msra.mxu0 %v1091_v7  ;;  %v466_v60 = vld [vmem:[%s2975_s14 + $0x498] sm:$0xff]  ;;  %v401_v61 = vld [vmem:[%s2975_s14 + $0x290] sm:$0xff] }
 0x14d   : > { %1677 = vmatpush1.msra.mxu1 %v325_v8  ;;  %1607 = vmatprep.subr.mxu0 %v1088_v9  ;;  %v465_v62 = vld [vmem:[%s2975_s14 + $0x490] sm:$0xff]  ;;  %v398_v63 = vld [vmem:[%s2975_s14 + $0x278] sm:$0xff] }
 0x14e   : > { %1678 = vmatprep.subr.mxu1 %v322_v10  ;;  %1608 = vmatpush1.msra.mxu0 %v1087_v11  ;;  %v462_v0 = vld [vmem:[%s2975_s14 + $0x478] sm:$0xff]  ;;  %v397_v1 = vld [vmem:[%s2975_s14 + $0x270] sm:$0xff] }
 0x14f   : > { %1641 = vmatprep.mubr.f32.mxu0 %v2824_v16  ;;  %1679 = vmatpush1.msra.mxu1 %v321_v12  ;;  %v461_v2 = vld [vmem:[%s2975_s14 + $0x470] sm:$0xff]  ;;  %v394_v3 = vld [vmem:[%s2975_s14 + $0x258] sm:$0xff] }
 0x150   : > { %1642 = vmatmul.mubr.f32.vlgmr.msra.gmra.mxu0 %v318_v13  ;;  %1680 = vmatprep.subr.mxu1 %v446_v14  ;;  %v458_v4 = vld [vmem:[%s2975_s14 + $0x458] sm:$0xff]  ;;  %v393_v5 = vld [vmem:[%s2975_s14 + $0x250] sm:$0xff] }
 0x151   : > { %1719 = vmatprep.subr.mxu0 %v510_v15  ;;  %1681 = vmatpush2.msra.mxu1 %v445_v17  ;;  %v457_v6 = vld [vmem:[%s2975_s14 + $0x450] sm:$0xff]  ;;  %v390_v7 = vld [vmem:[%s2975_s14 + $0x238] sm:$0xff] }
 0x152   : > { %1720 = vmatpush1.msra.mxu0 %v509_v18  ;;  %1682 = vmatprep.subr.mxu1 %v442_v19  ;;  %v454_v8 = vld [vmem:[%s2975_s14 + $0x438] sm:$0xff]  ;;  %v389_v9 = vld [vmem:[%s2975_s14 + $0x230] sm:$0xff] }
 0x153   : > { %1721 = vmatprep.subr.mxu0 %v506_v20  ;;  %1683 = vmatpush2.msra.mxu1 %v441_v21  ;;  %v453_v10 = vld [vmem:[%s2975_s14 + $0x430] sm:$0xff]  ;;  %v386_v11 = vld [vmem:[%s2975_s14 + $0x218] sm:$0xff]  ;;  %v2652_v20 = vld [vmem:[%s2993_s12 + $0x8] sm:$0xff] }
 0x154   : > { %1722 = vmatpush1.msra.mxu0 %v505_v22  ;;  %1684 = vmatprep.subr.mxu1 %v438_v23  ;;  %v450_v12 = vld [vmem:[%s2975_s14 + $0x418] sm:$0xff]  ;;  %v385_v13 = vld [vmem:[%s2975_s14 + $0x210] sm:$0xff]  ;;  %v2653_v23 = vld [vmem:[%s2993_s12] sm:$0xff] }
 0x155   : > { %1723 = vmatprep.subr.mxu0 %v502_v24  ;;  %1685 = vmatpush2.msra.mxu1 %v437_v25  ;;  %v449_v14 = vld [vmem:[%s2975_s14 + $0x410] sm:$0xff]  ;;  %v574_v15 = vld [vmem:[%s2975_s14 + $0x7f8] sm:$0xff] }
 0x156   : > { %1724 = vmatpush1.msra.mxu0 %v501_v26  ;;  %1686 = vmatprep.subr.mxu1 %v434_v27  ;;  %v638_v17 = vld [vmem:[%s2975_s14 + $0x9f8] sm:$0xff]  ;;  %v573_v18 = vld [vmem:[%s2975_s14 + $0x7f0] sm:$0xff] }
 0x157   : > { %1725 = vmatprep.subr.mxu0 %v498_v28  ;;  %1687 = vmatpush2.msra.mxu1 %v433_v29  ;;  %v637_v19 = vld [vmem:[%s2975_s14 + $0x9f0] sm:$0xff]  ;;  %v570_v21 = vld [vmem:[%s2975_s14 + $0x7d8] sm:$0xff] }
 0x158   : > { %1726 = vmatpush1.msra.mxu0 %v497_v30  ;;  %1688 = vmatprep.subr.mxu1 %v430_v31  ;;  %v634_v22 = vld [vmem:[%s2975_s14 + $0x9d8] sm:$0xff]  ;;  %v569_v24 = vld [vmem:[%s2975_s14 + $0x7d0] sm:$0xff] }
 0x159   : > { %1727 = vmatprep.subr.mxu0 %v494_v32  ;;  %1689 = vmatpush2.msra.mxu1 %v429_v33  ;;  %v633_v25 = vld [vmem:[%s2975_s14 + $0x9d0] sm:$0xff]  ;;  %v566_v26 = vld [vmem:[%s2975_s14 + $0x7b8] sm:$0xff] }
 0x15a   : > { %1728 = vmatpush1.msra.mxu0 %v493_v34  ;;  %1690 = vmatprep.subr.mxu1 %v426_v35  ;;  %v630_v27 = vld [vmem:[%s2975_s14 + $0x9b8] sm:$0xff]  ;;  %v565_v28 = vld [vmem:[%s2975_s14 + $0x7b0] sm:$0xff] }
 0x15b   : > { %1729 = vmatprep.subr.mxu0 %v490_v36  ;;  %1691 = vmatpush2.msra.mxu1 %v425_v37  ;;  %v629_v29 = vld [vmem:[%s2975_s14 + $0x9b0] sm:$0xff]  ;;  %v562_v30 = vld [vmem:[%s2975_s14 + $0x798] sm:$0xff] }
 0x15c   : > { %1730 = vmatpush1.msra.mxu0 %v489_v38  ;;  %1692 = vmatprep.subr.mxu1 %v422_v39  ;;  %v626_v31 = vld [vmem:[%s2975_s14 + $0x998] sm:$0xff]  ;;  %v561_v32 = vld [vmem:[%s2975_s14 + $0x790] sm:$0xff] }
 0x15d   : > { %1731 = vmatprep.subr.mxu0 %v486_v40  ;;  %1693 = vmatpush2.msra.mxu1 %v421_v41  ;;  %v625_v33 = vld [vmem:[%s2975_s14 + $0x990] sm:$0xff]  ;;  %v558_v34 = vld [vmem:[%s2975_s14 + $0x778] sm:$0xff] }
 0x15e   : > { %1732 = vmatpush1.msra.mxu0 %v485_v42  ;;  %1694 = vmatprep.subr.mxu1 %v418_v43  ;;  %v622_v35 = vld [vmem:[%s2975_s14 + $0x978] sm:$0xff]  ;;  %v557_v36 = vld [vmem:[%s2975_s14 + $0x770] sm:$0xff] }
 0x15f   : > { %1733 = vmatprep.subr.mxu0 %v482_v44  ;;  %1695 = vmatpush2.msra.mxu1 %v417_v45  ;;  %v621_v37 = vld [vmem:[%s2975_s14 + $0x970] sm:$0xff]  ;;  %v554_v38 = vld [vmem:[%s2975_s14 + $0x758] sm:$0xff] }
 0x160   : > { %1734 = vmatpush1.msra.mxu0 %v481_v46  ;;  %1696 = vmatprep.subr.mxu1 %v414_v47  ;;  %v618_v39 = vld [vmem:[%s2975_s14 + $0x958] sm:$0xff]  ;;  %v553_v40 = vld [vmem:[%s2975_s14 + $0x750] sm:$0xff] }
 0x161   : > { %1735 = vmatprep.subr.mxu0 %v478_v48  ;;  %1697 = vmatpush2.msra.mxu1 %v413_v49  ;;  %v617_v41 = vld [vmem:[%s2975_s14 + $0x950] sm:$0xff]  ;;  %v550_v42 = vld [vmem:[%s2975_s14 + $0x738] sm:$0xff] }
 0x162   : > { %1736 = vmatpush1.msra.mxu0 %v477_v50  ;;  %1698 = vmatprep.subr.mxu1 %v410_v51  ;;  %v614_v43 = vld [vmem:[%s2975_s14 + $0x938] sm:$0xff]  ;;  %v549_v44 = vld [vmem:[%s2975_s14 + $0x730] sm:$0xff] }
 0x163   : > { %1737 = vmatprep.subr.mxu0 %v474_v52  ;;  %1699 = vmatpush2.msra.mxu1 %v409_v53  ;;  %v613_v45 = vld [vmem:[%s2975_s14 + $0x930] sm:$0xff]  ;;  %v546_v46 = vld [vmem:[%s2975_s14 + $0x718] sm:$0xff] }
 0x164   : > { %1738 = vmatpush1.msra.mxu0 %v473_v54  ;;  %1700 = vmatprep.subr.mxu1 %v406_v55  ;;  %v610_v47 = vld [vmem:[%s2975_s14 + $0x918] sm:$0xff]  ;;  %v545_v48 = vld [vmem:[%s2975_s14 + $0x710] sm:$0xff] }
 0x165   : > { %1739 = vmatprep.subr.mxu0 %v470_v56  ;;  %1701 = vmatpush2.msra.mxu1 %v405_v57  ;;  %v609_v49 = vld [vmem:[%s2975_s14 + $0x910] sm:$0xff]  ;;  %v542_v50 = vld [vmem:[%s2975_s14 + $0x6f8] sm:$0xff] }
 0x166   : > { %1740 = vmatpush1.msra.mxu0 %v469_v58  ;;  %1702 = vmatprep.subr.mxu1 %v402_v59  ;;  %v606_v51 = vld [vmem:[%s2975_s14 + $0x8f8] sm:$0xff]  ;;  %v541_v52 = vld [vmem:[%s2975_s14 + $0x6f0] sm:$0xff] }
 0x167   : > { %1741 = vmatprep.subr.mxu0 %v466_v60  ;;  %1703 = vmatpush2.msra.mxu1 %v401_v61  ;;  %v605_v53 = vld [vmem:[%s2975_s14 + $0x8f0] sm:$0xff]  ;;  %v538_v54 = vld [vmem:[%s2975_s14 + $0x6d8] sm:$0xff] }
 0x168   : > { %1742 = vmatpush1.msra.mxu0 %v465_v62  ;;  %1704 = vmatprep.subr.mxu1 %v398_v63  ;;  %v602_v55 = vld [vmem:[%s2975_s14 + $0x8d8] sm:$0xff]  ;;  %v537_v56 = vld [vmem:[%s2975_s14 + $0x6d0] sm:$0xff] }
 0x169   : > { %1743 = vmatprep.subr.mxu0 %v462_v0  ;;  %1705 = vmatpush2.msra.mxu1 %v397_v1  ;;  %v601_v57 = vld [vmem:[%s2975_s14 + $0x8d0] sm:$0xff]  ;;  %v534_v58 = vld [vmem:[%s2975_s14 + $0x6b8] sm:$0xff] }
 0x16a   : > { %1744 = vmatpush1.msra.mxu0 %v461_v2  ;;  %1706 = vmatprep.subr.mxu1 %v394_v3  ;;  %v598_v59 = vld [vmem:[%s2975_s14 + $0x8b8] sm:$0xff]  ;;  %v533_v60 = vld [vmem:[%s2975_s14 + $0x6b0] sm:$0xff] }
 0x16b   : > { %1745 = vmatprep.subr.mxu0 %v458_v4  ;;  %1707 = vmatpush2.msra.mxu1 %v393_v5  ;;  %v597_v61 = vld [vmem:[%s2975_s14 + $0x8b0] sm:$0xff]  ;;  %v530_v62 = vld [vmem:[%s2975_s14 + $0x698] sm:$0xff] }
 0x16c   : > { %1746 = vmatpush1.msra.mxu0 %v457_v6  ;;  %1708 = vmatprep.subr.mxu1 %v390_v7  ;;  %v594_v63 = vld [vmem:[%s2975_s14 + $0x898] sm:$0xff]  ;;  %v529_v0 = vld [vmem:[%s2975_s14 + $0x690] sm:$0xff] }
 0x16d   : > { %1747 = vmatprep.subr.mxu0 %v454_v8  ;;  %1709 = vmatpush2.msra.mxu1 %v389_v9  ;;  %v593_v1 = vld [vmem:[%s2975_s14 + $0x890] sm:$0xff]  ;;  %v526_v2 = vld [vmem:[%s2975_s14 + $0x678] sm:$0xff] }
 0x16e   : > { %1748 = vmatpush1.msra.mxu0 %v453_v10  ;;  %1710 = vmatprep.subr.mxu1 %v386_v11  ;;  %v590_v3 = vld [vmem:[%s2975_s14 + $0x878] sm:$0xff]  ;;  %v525_v4 = vld [vmem:[%s2975_s14 + $0x670] sm:$0xff] }
 0x16f   : > { %1749 = vmatprep.subr.mxu0 %v450_v12  ;;  %1711 = vmatpush2.msra.mxu1 %v385_v13  ;;  %v589_v5 = vld [vmem:[%s2975_s14 + $0x870] sm:$0xff]  ;;  %v522_v6 = vld [vmem:[%s2975_s14 + $0x658] sm:$0xff] }
 0x170   : > { %1750 = vmatpush1.msra.mxu0 %v449_v14  ;;  %1712 = vmatprep.mubr.f32.mxu1 %v2652_v20  ;;  %v586_v7 = vld [vmem:[%s2975_s14 + $0x858] sm:$0xff]  ;;  %v521_v8 = vld [vmem:[%s2975_s14 + $0x650] sm:$0xff] }
 0x171   : > { %1751 = vmatprep.subr.mxu0 %v574_v15  ;;  %1790 = vmatprep.subr.mxu1 %v638_v17  ;;  %v585_v9 = vld [vmem:[%s2975_s14 + $0x850] sm:$0xff]  ;;  %v518_v10 = vld [vmem:[%s2975_s14 + $0x638] sm:$0xff] }
 0x172   : > { %1713 = vmatmul.mubr.f32.vlgmr.msra.gmra.mxu1 %v2653_v23  ;;  %1752 = vmatpush2.msra.mxu0 %v573_v18  ;;  %v582_v11 = vld [vmem:[%s2975_s14 + $0x838] sm:$0xff]  ;;  %v517_v12 = vld [vmem:[%s2975_s14 + $0x630] sm:$0xff] }
 0x173   : > { %1791 = vmatpush1.msra.mxu1 %v637_v19  ;;  %1753 = vmatprep.subr.mxu0 %v570_v21  ;;  %v581_v13 = vld [vmem:[%s2975_s14 + $0x830] sm:$0xff]  ;;  %v514_v14 = vld [vmem:[%s2975_s14 + $0x618] sm:$0xff] }
 0x174   : > { %1792 = vmatprep.subr.mxu1 %v634_v22  ;;  %1754 = vmatpush2.msra.mxu0 %v569_v24  ;;  %v578_v15 = vld [vmem:[%s2975_s14 + $0x818] sm:$0xff]  ;;  %v513_v17 = vld [vmem:[%s2975_s14 + $0x610] sm:$0xff] }
 0x175   : > { %1793 = vmatpush1.msra.mxu1 %v633_v25  ;;  %1755 = vmatprep.subr.mxu0 %v566_v26  ;;  %v577_v18 = vld [vmem:[%s2975_s14 + $0x810] sm:$0xff]  ;;  %v702_v19 = vld [vmem:[%s2975_s14 + $0xbf8] sm:$0xff] }
 0x176   : > { %1794 = vmatprep.subr.mxu1 %v630_v27  ;;  %1756 = vmatpush2.msra.mxu0 %v565_v28  ;;  %v766_v20 = vld [vmem:[%s2975_s14 + $0xdf8] sm:$0xff]  ;;  %v701_v22 = vld [vmem:[%s2975_s14 + $0xbf0] sm:$0xff] }
 0x177   : > { %1795 = vmatpush1.msra.mxu1 %v629_v29  ;;  %1757 = vmatprep.subr.mxu0 %v562_v30  ;;  %v2654_v21 = vld [vmem:[%s2993_s12 + $0x18] sm:$0xff]  ;;  %v765_v23 = vld [vmem:[%s2975_s14 + $0xdf0] sm:$0xff] }
 0x178   : > { %1796 = vmatprep.subr.mxu1 %v626_v31  ;;  %1758 = vmatpush2.msra.mxu0 %v561_v32  ;;  %v2655_v24 = vld [vmem:[%s2993_s12 + $0x10] sm:$0xff]  ;;  %v698_v25 = vld [vmem:[%s2975_s14 + $0xbd8] sm:$0xff] }
 0x179   : > { %1797 = vmatpush1.msra.mxu1 %v625_v33  ;;  %1759 = vmatprep.subr.mxu0 %v558_v34  ;;  %v762_v26 = vld [vmem:[%s2975_s14 + $0xdd8] sm:$0xff]  ;;  %v697_v27 = vld [vmem:[%s2975_s14 + $0xbd0] sm:$0xff] }
 0x17a   : > { %1798 = vmatprep.subr.mxu1 %v622_v35  ;;  %1760 = vmatpush2.msra.mxu0 %v557_v36  ;;  %v761_v28 = vld [vmem:[%s2975_s14 + $0xdd0] sm:$0xff]  ;;  %v694_v29 = vld [vmem:[%s2975_s14 + $0xbb8] sm:$0xff] }
 0x17b   : > { %1799 = vmatpush1.msra.mxu1 %v621_v37  ;;  %1761 = vmatprep.subr.mxu0 %v554_v38  ;;  %v758_v30 = vld [vmem:[%s2975_s14 + $0xdb8] sm:$0xff]  ;;  %v693_v31 = vld [vmem:[%s2975_s14 + $0xbb0] sm:$0xff] }
 0x17c   : > { %1800 = vmatprep.subr.mxu1 %v618_v39  ;;  %1762 = vmatpush2.msra.mxu0 %v553_v40  ;;  %v757_v32 = vld [vmem:[%s2975_s14 + $0xdb0] sm:$0xff]  ;;  %v690_v33 = vld [vmem:[%s2975_s14 + $0xb98] sm:$0xff] }
 0x17d   : > { %1801 = vmatpush1.msra.mxu1 %v617_v41  ;;  %1763 = vmatprep.subr.mxu0 %v550_v42  ;;  %v754_v34 = vld [vmem:[%s2975_s14 + $0xd98] sm:$0xff]  ;;  %v689_v35 = vld [vmem:[%s2975_s14 + $0xb90] sm:$0xff] }
 0x17e   : > { %1802 = vmatprep.subr.mxu1 %v614_v43  ;;  %1764 = vmatpush2.msra.mxu0 %v549_v44  ;;  %v753_v36 = vld [vmem:[%s2975_s14 + $0xd90] sm:$0xff]  ;;  %v686_v37 = vld [vmem:[%s2975_s14 + $0xb78] sm:$0xff] }
 0x17f   : > { %1803 = vmatpush1.msra.mxu1 %v613_v45  ;;  %1765 = vmatprep.subr.mxu0 %v546_v46  ;;  %v750_v38 = vld [vmem:[%s2975_s14 + $0xd78] sm:$0xff]  ;;  %v685_v39 = vld [vmem:[%s2975_s14 + $0xb70] sm:$0xff] }
 0x180   : > { %1804 = vmatprep.subr.mxu1 %v610_v47  ;;  %1766 = vmatpush2.msra.mxu0 %v545_v48  ;;  %v749_v40 = vld [vmem:[%s2975_s14 + $0xd70] sm:$0xff]  ;;  %v682_v41 = vld [vmem:[%s2975_s14 + $0xb58] sm:$0xff] }
 0x181   : > { %1805 = vmatpush1.msra.mxu1 %v609_v49  ;;  %1767 = vmatprep.subr.mxu0 %v542_v50  ;;  %v746_v42 = vld [vmem:[%s2975_s14 + $0xd58] sm:$0xff]  ;;  %v681_v43 = vld [vmem:[%s2975_s14 + $0xb50] sm:$0xff] }
 0x182   : > { %1806 = vmatprep.subr.mxu1 %v606_v51  ;;  %1768 = vmatpush2.msra.mxu0 %v541_v52  ;;  %v745_v44 = vld [vmem:[%s2975_s14 + $0xd50] sm:$0xff]  ;;  %v678_v45 = vld [vmem:[%s2975_s14 + $0xb38] sm:$0xff] }
 0x183   : > { %1807 = vmatpush1.msra.mxu1 %v605_v53  ;;  %1769 = vmatprep.subr.mxu0 %v538_v54  ;;  %v742_v46 = vld [vmem:[%s2975_s14 + $0xd38] sm:$0xff]  ;;  %v677_v47 = vld [vmem:[%s2975_s14 + $0xb30] sm:$0xff] }
 0x184   : > { %1808 = vmatprep.subr.mxu1 %v602_v55  ;;  %1770 = vmatpush2.msra.mxu0 %v537_v56  ;;  %v741_v48 = vld [vmem:[%s2975_s14 + $0xd30] sm:$0xff]  ;;  %v674_v49 = vld [vmem:[%s2975_s14 + $0xb18] sm:$0xff] }
 0x185   : > { %1809 = vmatpush1.msra.mxu1 %v601_v57  ;;  %1771 = vmatprep.subr.mxu0 %v534_v58  ;;  %v738_v50 = vld [vmem:[%s2975_s14 + $0xd18] sm:$0xff]  ;;  %v673_v51 = vld [vmem:[%s2975_s14 + $0xb10] sm:$0xff] }
 0x186   : > { %1810 = vmatprep.subr.mxu1 %v598_v59  ;;  %1772 = vmatpush2.msra.mxu0 %v533_v60  ;;  %v737_v52 = vld [vmem:[%s2975_s14 + $0xd10] sm:$0xff]  ;;  %v670_v53 = vld [vmem:[%s2975_s14 + $0xaf8] sm:$0xff] }
 0x187   : > { %1811 = vmatpush1.msra.mxu1 %v597_v61  ;;  %1773 = vmatprep.subr.mxu0 %v530_v62  ;;  %v734_v54 = vld [vmem:[%s2975_s14 + $0xcf8] sm:$0xff]  ;;  %v669_v55 = vld [vmem:[%s2975_s14 + $0xaf0] sm:$0xff] }
 0x188   : > { %1812 = vmatprep.subr.mxu1 %v594_v63  ;;  %1774 = vmatpush2.msra.mxu0 %v529_v0  ;;  %v733_v56 = vld [vmem:[%s2975_s14 + $0xcf0] sm:$0xff]  ;;  %v666_v57 = vld [vmem:[%s2975_s14 + $0xad8] sm:$0xff] }
 0x189   : > { %1813 = vmatpush1.msra.mxu1 %v593_v1  ;;  %1775 = vmatprep.subr.mxu0 %v526_v2  ;;  %v730_v58 = vld [vmem:[%s2975_s14 + $0xcd8] sm:$0xff]  ;;  %v665_v59 = vld [vmem:[%s2975_s14 + $0xad0] sm:$0xff] }
 0x18a   : > { %1814 = vmatprep.subr.mxu1 %v590_v3  ;;  %1776 = vmatpush2.msra.mxu0 %v525_v4  ;;  %v729_v60 = vld [vmem:[%s2975_s14 + $0xcd0] sm:$0xff]  ;;  %v662_v61 = vld [vmem:[%s2975_s14 + $0xab8] sm:$0xff] }
 0x18b   : > { %1815 = vmatpush1.msra.mxu1 %v589_v5  ;;  %1777 = vmatprep.subr.mxu0 %v522_v6  ;;  %v726_v62 = vld [vmem:[%s2975_s14 + $0xcb8] sm:$0xff]  ;;  %v661_v63 = vld [vmem:[%s2975_s14 + $0xab0] sm:$0xff] }
 0x18c   : > { %1816 = vmatprep.subr.mxu1 %v586_v7  ;;  %1778 = vmatpush2.msra.mxu0 %v521_v8  ;;  %v725_v0 = vld [vmem:[%s2975_s14 + $0xcb0] sm:$0xff]  ;;  %v658_v1 = vld [vmem:[%s2975_s14 + $0xa98] sm:$0xff] }
 0x18d   : > { %1817 = vmatpush1.msra.mxu1 %v585_v9  ;;  %1779 = vmatprep.subr.mxu0 %v518_v10  ;;  %v722_v2 = vld [vmem:[%s2975_s14 + $0xc98] sm:$0xff]  ;;  %v657_v3 = vld [vmem:[%s2975_s14 + $0xa90] sm:$0xff] }
 0x18e   : > { %1818 = vmatprep.subr.mxu1 %v582_v11  ;;  %1780 = vmatpush2.msra.mxu0 %v517_v12  ;;  %v721_v4 = vld [vmem:[%s2975_s14 + $0xc90] sm:$0xff]  ;;  %v654_v5 = vld [vmem:[%s2975_s14 + $0xa78] sm:$0xff] }
 0x18f   : > { %1819 = vmatpush1.msra.mxu1 %v581_v13  ;;  %1781 = vmatprep.subr.mxu0 %v514_v14  ;;  %v718_v6 = vld [vmem:[%s2975_s14 + $0xc78] sm:$0xff]  ;;  %v653_v7 = vld [vmem:[%s2975_s14 + $0xa70] sm:$0xff] }
 0x190   : > { %1820 = vmatprep.subr.mxu1 %v578_v15  ;;  %1782 = vmatpush2.msra.mxu0 %v513_v17  ;;  %v717_v8 = vld [vmem:[%s2975_s14 + $0xc70] sm:$0xff]  ;;  %v650_v9 = vld [vmem:[%s2975_s14 + $0xa58] sm:$0xff] }
 0x191   : > { %1783 = vmatprep.mubr.f32.mxu0 %v2654_v21  ;;  %1821 = vmatpush1.msra.mxu1 %v577_v18  ;;  %v714_v10 = vld [vmem:[%s2975_s14 + $0xc58] sm:$0xff]  ;;  %v649_v11 = vld [vmem:[%s2975_s14 + $0xa50] sm:$0xff] }
 0x192   : > { %1784 = vmatmul.mubr.f32.vlgmr.msra.gmra.mxu0 %v2655_v24  ;;  %1822 = vmatprep.subr.mxu1 %v702_v19  ;;  %v713_v12 = vld [vmem:[%s2975_s14 + $0xc50] sm:$0xff]  ;;  %v646_v13 = vld [vmem:[%s2975_s14 + $0xa38] sm:$0xff]  ;;  %v2656_v24 = vld [vmem:[%s2993_s12 + $0x28] sm:$0xff] }
 0x193   : > { %1861 = vmatprep.subr.mxu0 %v766_v20  ;;  %1823 = vmatpush2.msra.mxu1 %v701_v22  ;;  %v710_v14 = vld [vmem:[%s2975_s14 + $0xc38] sm:$0xff]  ;;  %v645_v15 = vld [vmem:[%s2975_s14 + $0xa30] sm:$0xff] }
 0x194   : > { %1862 = vmatpush1.msra.mxu0 %v765_v23  ;;  %1824 = vmatprep.subr.mxu1 %v698_v25  ;;  %v709_v17 = vld [vmem:[%s2975_s14 + $0xc30] sm:$0xff]  ;;  %v642_v18 = vld [vmem:[%s2975_s14 + $0xa18] sm:$0xff] }
 0x195   : > { %1863 = vmatprep.subr.mxu0 %v762_v26  ;;  %1825 = vmatpush2.msra.mxu1 %v697_v27  ;;  %v706_v19 = vld [vmem:[%s2975_s14 + $0xc18] sm:$0xff]  ;;  %v641_v20 = vld [vmem:[%s2975_s14 + $0xa10] sm:$0xff]  ;;  %v2657_v27 = vld [vmem:[%s2993_s12 + $0x20] sm:$0xff] }
 0x196   : > { %1864 = vmatpush1.msra.mxu0 %v761_v28  ;;  %1826 = vmatprep.subr.mxu1 %v694_v29  ;;  %v705_v21 = vld [vmem:[%s2975_s14 + $0xc10] sm:$0xff]  ;;  %v830_v22 = vld [vmem:[%s2975_s14 + $0xff8] sm:$0xff] }
 0x197   : > { %1865 = vmatprep.subr.mxu0 %v758_v30  ;;  %1827 = vmatpush2.msra.mxu1 %v693_v31  ;;  %v894_v23 = vld [vmem:[%s2975_s14 + $0x11f8] sm:$0xff]  ;;  %v829_v25 = vld [vmem:[%s2975_s14 + $0xff0] sm:$0xff] }
 0x198   : > { %1866 = vmatpush1.msra.mxu0 %v757_v32  ;;  %1828 = vmatprep.subr.mxu1 %v690_v33  ;;  %v893_v26 = vld [vmem:[%s2975_s14 + $0x11f0] sm:$0xff]  ;;  %v826_v28 = vld [vmem:[%s2975_s14 + $0xfd8] sm:$0xff] }
 0x199   : > { %1867 = vmatprep.subr.mxu0 %v754_v34  ;;  %1829 = vmatpush2.msra.mxu1 %v689_v35  ;;  %v890_v29 = vld [vmem:[%s2975_s14 + $0x11d8] sm:$0xff]  ;;  %v825_v30 = vld [vmem:[%s2975_s14 + $0xfd0] sm:$0xff] }
 0x19a   : > { %1868 = vmatpush1.msra.mxu0 %v753_v36  ;;  %1830 = vmatprep.subr.mxu1 %v686_v37  ;;  %v889_v31 = vld [vmem:[%s2975_s14 + $0x11d0] sm:$0xff]  ;;  %v822_v32 = vld [vmem:[%s2975_s14 + $0xfb8] sm:$0xff] }
 0x19b   : > { %1869 = vmatprep.subr.mxu0 %v750_v38  ;;  %1831 = vmatpush2.msra.mxu1 %v685_v39  ;;  %v886_v33 = vld [vmem:[%s2975_s14 + $0x11b8] sm:$0xff]  ;;  %v821_v34 = vld [vmem:[%s2975_s14 + $0xfb0] sm:$0xff] }
 0x19c   : > { %1870 = vmatpush1.msra.mxu0 %v749_v40  ;;  %1832 = vmatprep.subr.mxu1 %v682_v41  ;;  %v885_v35 = vld [vmem:[%s2975_s14 + $0x11b0] sm:$0xff]  ;;  %v818_v36 = vld [vmem:[%s2975_s14 + $0xf98] sm:$0xff] }
 0x19d   : > { %1871 = vmatprep.subr.mxu0 %v746_v42  ;;  %1833 = vmatpush2.msra.mxu1 %v681_v43  ;;  %v882_v37 = vld [vmem:[%s2975_s14 + $0x1198] sm:$0xff]  ;;  %v817_v38 = vld [vmem:[%s2975_s14 + $0xf90] sm:$0xff] }
 0x19e   : > { %1872 = vmatpush1.msra.mxu0 %v745_v44  ;;  %1834 = vmatprep.subr.mxu1 %v678_v45  ;;  %v881_v39 = vld [vmem:[%s2975_s14 + $0x1190] sm:$0xff]  ;;  %v814_v40 = vld [vmem:[%s2975_s14 + $0xf78] sm:$0xff] }
 0x19f   : > { %1873 = vmatprep.subr.mxu0 %v742_v46  ;;  %1835 = vmatpush2.msra.mxu1 %v677_v47  ;;  %v878_v41 = vld [vmem:[%s2975_s14 + $0x1178] sm:$0xff]  ;;  %v813_v42 = vld [vmem:[%s2975_s14 + $0xf70] sm:$0xff] }
 0x1a0   : > { %1874 = vmatpush1.msra.mxu0 %v741_v48  ;;  %1836 = vmatprep.subr.mxu1 %v674_v49  ;;  %v877_v43 = vld [vmem:[%s2975_s14 + $0x1170] sm:$0xff]  ;;  %v810_v44 = vld [vmem:[%s2975_s14 + $0xf58] sm:$0xff] }
 0x1a1   : > { %1875 = vmatprep.subr.mxu0 %v738_v50  ;;  %1837 = vmatpush2.msra.mxu1 %v673_v51  ;;  %v874_v45 = vld [vmem:[%s2975_s14 + $0x1158] sm:$0xff]  ;;  %v809_v46 = vld [vmem:[%s2975_s14 + $0xf50] sm:$0xff] }
 0x1a2   : > { %1876 = vmatpush1.msra.mxu0 %v737_v52  ;;  %1838 = vmatprep.subr.mxu1 %v670_v53  ;;  %v873_v47 = vld [vmem:[%s2975_s14 + $0x1150] sm:$0xff]  ;;  %v806_v48 = vld [vmem:[%s2975_s14 + $0xf38] sm:$0xff] }
 0x1a3   : > { %1877 = vmatprep.subr.mxu0 %v734_v54  ;;  %1839 = vmatpush2.msra.mxu1 %v669_v55  ;;  %v870_v49 = vld [vmem:[%s2975_s14 + $0x1138] sm:$0xff]  ;;  %v805_v50 = vld [vmem:[%s2975_s14 + $0xf30] sm:$0xff] }
 0x1a4   : > { %1878 = vmatpush1.msra.mxu0 %v733_v56  ;;  %1840 = vmatprep.subr.mxu1 %v666_v57  ;;  %v869_v51 = vld [vmem:[%s2975_s14 + $0x1130] sm:$0xff]  ;;  %v802_v52 = vld [vmem:[%s2975_s14 + $0xf18] sm:$0xff] }
 0x1a5   : > { %1879 = vmatprep.subr.mxu0 %v730_v58  ;;  %1841 = vmatpush2.msra.mxu1 %v665_v59  ;;  %v866_v53 = vld [vmem:[%s2975_s14 + $0x1118] sm:$0xff]  ;;  %v801_v54 = vld [vmem:[%s2975_s14 + $0xf10] sm:$0xff] }
 0x1a6   : > { %1880 = vmatpush1.msra.mxu0 %v729_v60  ;;  %1842 = vmatprep.subr.mxu1 %v662_v61  ;;  %v865_v55 = vld [vmem:[%s2975_s14 + $0x1110] sm:$0xff]  ;;  %v798_v56 = vld [vmem:[%s2975_s14 + $0xef8] sm:$0xff] }
 0x1a7   : > { %1881 = vmatprep.subr.mxu0 %v726_v62  ;;  %1843 = vmatpush2.msra.mxu1 %v661_v63  ;;  %v862_v57 = vld [vmem:[%s2975_s14 + $0x10f8] sm:$0xff]  ;;  %v797_v58 = vld [vmem:[%s2975_s14 + $0xef0] sm:$0xff] }
 0x1a8   : > { %1882 = vmatpush1.msra.mxu0 %v725_v0  ;;  %1844 = vmatprep.subr.mxu1 %v658_v1  ;;  %v861_v59 = vld [vmem:[%s2975_s14 + $0x10f0] sm:$0xff]  ;;  %v794_v60 = vld [vmem:[%s2975_s14 + $0xed8] sm:$0xff] }
 0x1a9   : > { %1883 = vmatprep.subr.mxu0 %v722_v2  ;;  %1845 = vmatpush2.msra.mxu1 %v657_v3  ;;  %v858_v61 = vld [vmem:[%s2975_s14 + $0x10d8] sm:$0xff]  ;;  %v793_v62 = vld [vmem:[%s2975_s14 + $0xed0] sm:$0xff] }
 0x1aa   : > { %1884 = vmatpush1.msra.mxu0 %v721_v4  ;;  %1846 = vmatprep.subr.mxu1 %v654_v5  ;;  %v857_v63 = vld [vmem:[%s2975_s14 + $0x10d0] sm:$0xff]  ;;  %v790_v0 = vld [vmem:[%s2975_s14 + $0xeb8] sm:$0xff] }
 0x1ab   : > { %1885 = vmatprep.subr.mxu0 %v718_v6  ;;  %1847 = vmatpush2.msra.mxu1 %v653_v7  ;;  %v854_v1 = vld [vmem:[%s2975_s14 + $0x10b8] sm:$0xff]  ;;  %v789_v2 = vld [vmem:[%s2975_s14 + $0xeb0] sm:$0xff] }
 0x1ac   : > { %1886 = vmatpush1.msra.mxu0 %v717_v8  ;;  %1848 = vmatprep.subr.mxu1 %v650_v9  ;;  %v853_v3 = vld [vmem:[%s2975_s14 + $0x10b0] sm:$0xff]  ;;  %v786_v4 = vld [vmem:[%s2975_s14 + $0xe98] sm:$0xff] }
 0x1ad   : > { %1887 = vmatprep.subr.mxu0 %v714_v10  ;;  %1849 = vmatpush2.msra.mxu1 %v649_v11  ;;  %v850_v5 = vld [vmem:[%s2975_s14 + $0x1098] sm:$0xff]  ;;  %v785_v6 = vld [vmem:[%s2975_s14 + $0xe90] sm:$0xff] }
 0x1ae   : > { %1888 = vmatpush1.msra.mxu0 %v713_v12  ;;  %1850 = vmatprep.subr.mxu1 %v646_v13  ;;  %v849_v7 = vld [vmem:[%s2975_s14 + $0x1090] sm:$0xff]  ;;  %v782_v8 = vld [vmem:[%s2975_s14 + $0xe78] sm:$0xff] }
 0x1af   : > { %1889 = vmatprep.subr.mxu0 %v710_v14  ;;  %1851 = vmatpush2.msra.mxu1 %v645_v15  ;;  %v846_v9 = vld [vmem:[%s2975_s14 + $0x1078] sm:$0xff]  ;;  %v781_v10 = vld [vmem:[%s2975_s14 + $0xe70] sm:$0xff] }
 0x1b0   : > { %1890 = vmatpush1.msra.mxu0 %v709_v17  ;;  %1852 = vmatprep.subr.mxu1 %v642_v18  ;;  %v845_v11 = vld [vmem:[%s2975_s14 + $0x1070] sm:$0xff]  ;;  %v778_v12 = vld [vmem:[%s2975_s14 + $0xe58] sm:$0xff] }
 0x1b1   : > { %1891 = vmatprep.subr.mxu0 %v706_v19  ;;  %1853 = vmatpush2.msra.mxu1 %v641_v20  ;;  %v842_v13 = vld [vmem:[%s2975_s14 + $0x1058] sm:$0xff]  ;;  %v777_v14 = vld [vmem:[%s2975_s14 + $0xe50] sm:$0xff] }
 0x1b2   : > { %1854 = vmatprep.mubr.f32.mxu1 %v2656_v24  ;;  %1892 = vmatpush1.msra.mxu0 %v705_v21  ;;  %v841_v15 = vld [vmem:[%s2975_s14 + $0x1050] sm:$0xff]  ;;  %v774_v17 = vld [vmem:[%s2975_s14 + $0xe38] sm:$0xff] }
 0x1b3   : > { %1855 = vmatmul.mubr.f32.vlgmr.msra.gmra.mxu1 %v2657_v27  ;;  %1893 = vmatprep.subr.mxu0 %v830_v22  ;;  %v838_v18 = vld [vmem:[%s2975_s14 + $0x1038] sm:$0xff]  ;;  %v773_v19 = vld [vmem:[%s2975_s14 + $0xe30] sm:$0xff] }
 0x1b4   : > { %1932 = vmatprep.subr.mxu1 %v894_v23  ;;  %1894 = vmatpush2.msra.mxu0 %v829_v25  ;;  %v837_v20 = vld [vmem:[%s2975_s14 + $0x1030] sm:$0xff]  ;;  %v770_v21 = vld [vmem:[%s2975_s14 + $0xe18] sm:$0xff] }
 0x1b5   : > { %1933 = vmatpush1.msra.mxu1 %v893_v26  ;;  %1895 = vmatprep.subr.mxu0 %v826_v28  ;;  %v834_v22 = vld [vmem:[%s2975_s14 + $0x1018] sm:$0xff]  ;;  %v769_v23 = vld [vmem:[%s2975_s14 + $0xe10] sm:$0xff] }
 0x1b6   : > { %1934 = vmatprep.subr.mxu1 %v890_v29  ;;  %1896 = vmatpush2.msra.mxu0 %v825_v30  ;;  %v833_v24 = vld [vmem:[%s2975_s14 + $0x1010] sm:$0xff]  ;;  %v958_v25 = vld [vmem:[%s2975_s14 + $0x13f8] sm:$0xff] }
 0x1b7   : > { %1935 = vmatpush1.msra.mxu1 %v889_v31  ;;  %1897 = vmatprep.subr.mxu0 %v822_v32  ;;  %v1022_v26 = vld [vmem:[%s2975_s14 + $0x15f8] sm:$0xff]  ;;  %v957_v28 = vld [vmem:[%s2975_s14 + $0x13f0] sm:$0xff] }
 0x1b8   : > { %1936 = vmatprep.subr.mxu1 %v886_v33  ;;  %1898 = vmatpush2.msra.mxu0 %v821_v34  ;;  %v2658_v27 = vld [vmem:[%s2993_s12 + $0x38] sm:$0xff]  ;;  %v1021_v29 = vld [vmem:[%s2975_s14 + $0x15f0] sm:$0xff] }
 0x1b9   : > { %1937 = vmatpush1.msra.mxu1 %v885_v35  ;;  %1899 = vmatprep.subr.mxu0 %v818_v36  ;;  %v2659_v30 = vld [vmem:[%s2993_s12 + $0x30] sm:$0xff]  ;;  %v954_v31 = vld [vmem:[%s2975_s14 + $0x13d8] sm:$0xff] }
 0x1ba   : > { %1938 = vmatprep.subr.mxu1 %v882_v37  ;;  %1900 = vmatpush2.msra.mxu0 %v817_v38  ;;  %v1018_v32 = vld [vmem:[%s2975_s14 + $0x15d8] sm:$0xff]  ;;  %v953_v33 = vld [vmem:[%s2975_s14 + $0x13d0] sm:$0xff] }
 0x1bb   : > { %1939 = vmatpush1.msra.mxu1 %v881_v39  ;;  %1901 = vmatprep.subr.mxu0 %v814_v40  ;;  %v1017_v34 = vld [vmem:[%s2975_s14 + $0x15d0] sm:$0xff]  ;;  %v950_v35 = vld [vmem:[%s2975_s14 + $0x13b8] sm:$0xff] }
 0x1bc   : > { %1940 = vmatprep.subr.mxu1 %v878_v41  ;;  %1902 = vmatpush2.msra.mxu0 %v813_v42  ;;  %v1014_v36 = vld [vmem:[%s2975_s14 + $0x15b8] sm:$0xff]  ;;  %v949_v37 = vld [vmem:[%s2975_s14 + $0x13b0] sm:$0xff] }
 0x1bd   : > { %1941 = vmatpush1.msra.mxu1 %v877_v43  ;;  %1903 = vmatprep.subr.mxu0 %v810_v44  ;;  %v1013_v38 = vld [vmem:[%s2975_s14 + $0x15b0] sm:$0xff]  ;;  %v946_v39 = vld [vmem:[%s2975_s14 + $0x1398] sm:$0xff] }
 0x1be   : > { %1942 = vmatprep.subr.mxu1 %v874_v45  ;;  %1904 = vmatpush2.msra.mxu0 %v809_v46  ;;  %v1010_v40 = vld [vmem:[%s2975_s14 + $0x1598] sm:$0xff]  ;;  %v945_v41 = vld [vmem:[%s2975_s14 + $0x1390] sm:$0xff] }
 0x1bf   : > { %1943 = vmatpush1.msra.mxu1 %v873_v47  ;;  %1905 = vmatprep.subr.mxu0 %v806_v48  ;;  %v1009_v42 = vld [vmem:[%s2975_s14 + $0x1590] sm:$0xff]  ;;  %v942_v43 = vld [vmem:[%s2975_s14 + $0x1378] sm:$0xff] }
 0x1c0   : > { %1944 = vmatprep.subr.mxu1 %v870_v49  ;;  %1906 = vmatpush2.msra.mxu0 %v805_v50  ;;  %v1006_v44 = vld [vmem:[%s2975_s14 + $0x1578] sm:$0xff]  ;;  %v941_v45 = vld [vmem:[%s2975_s14 + $0x1370] sm:$0xff] }
 0x1c1   : > { %1945 = vmatpush1.msra.mxu1 %v869_v51  ;;  %1907 = vmatprep.subr.mxu0 %v802_v52  ;;  %v1005_v46 = vld [vmem:[%s2975_s14 + $0x1570] sm:$0xff]  ;;  %v938_v47 = vld [vmem:[%s2975_s14 + $0x1358] sm:$0xff] }
 0x1c2   : > { %1946 = vmatprep.subr.mxu1 %v866_v53  ;;  %1908 = vmatpush2.msra.mxu0 %v801_v54  ;;  %v1002_v48 = vld [vmem:[%s2975_s14 + $0x1558] sm:$0xff]  ;;  %v937_v49 = vld [vmem:[%s2975_s14 + $0x1350] sm:$0xff] }
 0x1c3   : > { %1947 = vmatpush1.msra.mxu1 %v865_v55  ;;  %1909 = vmatprep.subr.mxu0 %v798_v56  ;;  %v1001_v50 = vld [vmem:[%s2975_s14 + $0x1550] sm:$0xff]  ;;  %v934_v51 = vld [vmem:[%s2975_s14 + $0x1338] sm:$0xff] }
 0x1c4   : > { %1948 = vmatprep.subr.mxu1 %v862_v57  ;;  %1910 = vmatpush2.msra.mxu0 %v797_v58  ;;  %v998_v52 = vld [vmem:[%s2975_s14 + $0x1538] sm:$0xff]  ;;  %v933_v53 = vld [vmem:[%s2975_s14 + $0x1330] sm:$0xff] }
 0x1c5   : > { %1949 = vmatpush1.msra.mxu1 %v861_v59  ;;  %1911 = vmatprep.subr.mxu0 %v794_v60  ;;  %v997_v54 = vld [vmem:[%s2975_s14 + $0x1530] sm:$0xff]  ;;  %v930_v55 = vld [vmem:[%s2975_s14 + $0x1318] sm:$0xff] }
 0x1c6   : > { %1950 = vmatprep.subr.mxu1 %v858_v61  ;;  %1912 = vmatpush2.msra.mxu0 %v793_v62  ;;  %v994_v56 = vld [vmem:[%s2975_s14 + $0x1518] sm:$0xff]  ;;  %v929_v57 = vld [vmem:[%s2975_s14 + $0x1310] sm:$0xff] }
 0x1c7   : > { %1951 = vmatpush1.msra.mxu1 %v857_v63  ;;  %1913 = vmatprep.subr.mxu0 %v790_v0  ;;  %v993_v58 = vld [vmem:[%s2975_s14 + $0x1510] sm:$0xff]  ;;  %v926_v59 = vld [vmem:[%s2975_s14 + $0x12f8] sm:$0xff] }
 0x1c8   : > { %1952 = vmatprep.subr.mxu1 %v854_v1  ;;  %1914 = vmatpush2.msra.mxu0 %v789_v2  ;;  %v990_v60 = vld [vmem:[%s2975_s14 + $0x14f8] sm:$0xff]  ;;  %v925_v61 = vld [vmem:[%s2975_s14 + $0x12f0] sm:$0xff] }
 0x1c9   : > { %1953 = vmatpush1.msra.mxu1 %v853_v3  ;;  %1915 = vmatprep.subr.mxu0 %v786_v4  ;;  %v989_v62 = vld [vmem:[%s2975_s14 + $0x14f0] sm:$0xff]  ;;  %v922_v63 = vld [vmem:[%s2975_s14 + $0x12d8] sm:$0xff] }
 0x1ca   : > { %1954 = vmatprep.subr.mxu1 %v850_v5  ;;  %1916 = vmatpush2.msra.mxu0 %v785_v6  ;;  %v986_v0 = vld [vmem:[%s2975_s14 + $0x14d8] sm:$0xff]  ;;  %v921_v1 = vld [vmem:[%s2975_s14 + $0x12d0] sm:$0xff] }
 0x1cb   : > { %1955 = vmatpush1.msra.mxu1 %v849_v7  ;;  %1917 = vmatprep.subr.mxu0 %v782_v8  ;;  %v985_v2 = vld [vmem:[%s2975_s14 + $0x14d0] sm:$0xff]  ;;  %v918_v3 = vld [vmem:[%s2975_s14 + $0x12b8] sm:$0xff] }
 0x1cc   : > { %1956 = vmatprep.subr.mxu1 %v846_v9  ;;  %1918 = vmatpush2.msra.mxu0 %v781_v10  ;;  %v982_v4 = vld [vmem:[%s2975_s14 + $0x14b8] sm:$0xff]  ;;  %v917_v5 = vld [vmem:[%s2975_s14 + $0x12b0] sm:$0xff] }
 0x1cd   : > { %1957 = vmatpush1.msra.mxu1 %v845_v11  ;;  %1919 = vmatprep.subr.mxu0 %v778_v12  ;;  %v981_v6 = vld [vmem:[%s2975_s14 + $0x14b0] sm:$0xff]  ;;  %v914_v7 = vld [vmem:[%s2975_s14 + $0x1298] sm:$0xff] }
 0x1ce   : > { %1958 = vmatprep.subr.mxu1 %v842_v13  ;;  %1920 = vmatpush2.msra.mxu0 %v777_v14  ;;  %v978_v8 = vld [vmem:[%s2975_s14 + $0x1498] sm:$0xff]  ;;  %v913_v9 = vld [vmem:[%s2975_s14 + $0x1290] sm:$0xff] }
 0x1cf   : > { %1959 = vmatpush1.msra.mxu1 %v841_v15  ;;  %1921 = vmatprep.subr.mxu0 %v774_v17  ;;  %v977_v10 = vld [vmem:[%s2975_s14 + $0x1490] sm:$0xff]  ;;  %v910_v11 = vld [vmem:[%s2975_s14 + $0x1278] sm:$0xff] }
 0x1d0   : > { %1960 = vmatprep.subr.mxu1 %v838_v18  ;;  %1922 = vmatpush2.msra.mxu0 %v773_v19  ;;  %v974_v12 = vld [vmem:[%s2975_s14 + $0x1478] sm:$0xff]  ;;  %v909_v13 = vld [vmem:[%s2975_s14 + $0x1270] sm:$0xff] }
 0x1d1   : > { %1961 = vmatpush1.msra.mxu1 %v837_v20  ;;  %1923 = vmatprep.subr.mxu0 %v770_v21  ;;  %v973_v14 = vld [vmem:[%s2975_s14 + $0x1470] sm:$0xff]  ;;  %v906_v15 = vld [vmem:[%s2975_s14 + $0x1258] sm:$0xff] }
 0x1d2   : > { %1962 = vmatprep.subr.mxu1 %v834_v22  ;;  %1924 = vmatpush2.msra.mxu0 %v769_v23  ;;  %v970_v17 = vld [vmem:[%s2975_s14 + $0x1458] sm:$0xff]  ;;  %v905_v18 = vld [vmem:[%s2975_s14 + $0x1250] sm:$0xff] }
 0x1d3   : > { %1925 = vmatprep.mubr.f32.mxu0 %v2658_v27  ;;  %1963 = vmatpush1.msra.mxu1 %v833_v24  ;;  %v969_v19 = vld [vmem:[%s2975_s14 + $0x1450] sm:$0xff]  ;;  %v902_v20 = vld [vmem:[%s2975_s14 + $0x1238] sm:$0xff] }
 0x1d4   : > { %1926 = vmatmul.mubr.f32.vlgmr.msra.gmra.mxu0 %v2659_v30  ;;  %1964 = vmatprep.subr.mxu1 %v958_v25  ;;  %v966_v21 = vld [vmem:[%s2975_s14 + $0x1438] sm:$0xff]  ;;  %v901_v22 = vld [vmem:[%s2975_s14 + $0x1230] sm:$0xff]  ;;  %v2660_v30 = vld [vmem:[%s2993_s12 + $0x48] sm:$0xff] }
 0x1d5   : > { %2003 = vmatprep.subr.mxu0 %v1022_v26  ;;  %1965 = vmatpush2.msra.mxu1 %v957_v28  ;;  %v965_v23 = vld [vmem:[%s2975_s14 + $0x1430] sm:$0xff]  ;;  %v898_v24 = vld [vmem:[%s2975_s14 + $0x1218] sm:$0xff] }
 0x1d6   : > { %2004 = vmatpush1.msra.mxu0 %v1021_v29  ;;  %1966 = vmatprep.subr.mxu1 %v954_v31  ;;  %v962_v25 = vld [vmem:[%s2975_s14 + $0x1418] sm:$0xff]  ;;  %v897_v26 = vld [vmem:[%s2975_s14 + $0x1210] sm:$0xff] }
 0x1d7   : > { %2005 = vmatprep.subr.mxu0 %v1018_v32  ;;  %1967 = vmatpush2.msra.mxu1 %v953_v33  ;;  %v961_v27 = vld [vmem:[%s2975_s14 + $0x1410] sm:$0xff]  ;;  %v1086_v28 = vld [vmem:[%s2975_s14 + $0x17f8] sm:$0xff]  ;;  %v2661_v33 = vld [vmem:[%s2993_s12 + $0x40] sm:$0xff] }
 0x1d8   : > { %2006 = vmatpush1.msra.mxu0 %v1017_v34  ;;  %1968 = vmatprep.subr.mxu1 %v950_v35  ;;  %v1150_v29 = vld [vmem:[%s2975_s14 + $0x19f8] sm:$0xff]  ;;  %v1085_v31 = vld [vmem:[%s2975_s14 + $0x17f0] sm:$0xff] }
 0x1d9   : > { %2007 = vmatprep.subr.mxu0 %v1014_v36  ;;  %1969 = vmatpush2.msra.mxu1 %v949_v37  ;;  %v1149_v32 = vld [vmem:[%s2975_s14 + $0x19f0] sm:$0xff]  ;;  %v1082_v34 = vld [vmem:[%s2975_s14 + $0x17d8] sm:$0xff] }
 0x1da   : > { %2008 = vmatpush1.msra.mxu0 %v1013_v38  ;;  %1970 = vmatprep.subr.mxu1 %v946_v39  ;;  %v1146_v35 = vld [vmem:[%s2975_s14 + $0x19d8] sm:$0xff]  ;;  %v1081_v36 = vld [vmem:[%s2975_s14 + $0x17d0] sm:$0xff] }
 0x1db   : > { %2009 = vmatprep.subr.mxu0 %v1010_v40  ;;  %1971 = vmatpush2.msra.mxu1 %v945_v41  ;;  %v1145_v37 = vld [vmem:[%s2975_s14 + $0x19d0] sm:$0xff]  ;;  %v1078_v38 = vld [vmem:[%s2975_s14 + $0x17b8] sm:$0xff] }
 0x1dc   : > { %2010 = vmatpush1.msra.mxu0 %v1009_v42  ;;  %1972 = vmatprep.subr.mxu1 %v942_v43  ;;  %v1142_v39 = vld [vmem:[%s2975_s14 + $0x19b8] sm:$0xff]  ;;  %v1077_v40 = vld [vmem:[%s2975_s14 + $0x17b0] sm:$0xff] }
 0x1dd   : > { %2011 = vmatprep.subr.mxu0 %v1006_v44  ;;  %1973 = vmatpush2.msra.mxu1 %v941_v45  ;;  %v1141_v41 = vld [vmem:[%s2975_s14 + $0x19b0] sm:$0xff]  ;;  %v1074_v42 = vld [vmem:[%s2975_s14 + $0x1798] sm:$0xff]  ;;  %v1217_v44 = vpop.f32.mrf.mxu0 }
 0x1de   : > { %2012 = vmatpush1.msra.mxu0 %v1005_v46  ;;  %1974 = vmatprep.subr.mxu1 %v938_v47  ;;  %v1138_v43 = vld [vmem:[%s2975_s14 + $0x1998] sm:$0xff]  ;;  %v1073_v45 = vld [vmem:[%s2975_s14 + $0x1790] sm:$0xff] }
 0x1df   : > { %2013 = vmatprep.subr.mxu0 %v1002_v48  ;;  %1975 = vmatpush2.msra.mxu1 %v937_v49  ;;  %v1137_v46 = vld [vmem:[%s2975_s14 + $0x1990] sm:$0xff]  ;;  %v1070_v47 = vld [vmem:[%s2975_s14 + $0x1778] sm:$0xff] }
 0x1e0   : > { %2014 = vmatpush1.msra.mxu0 %v1001_v50  ;;  %1976 = vmatprep.subr.mxu1 %v934_v51  ;;  %v1134_v48 = vld [vmem:[%s2975_s14 + $0x1978] sm:$0xff]  ;;  %v1069_v49 = vld [vmem:[%s2975_s14 + $0x1770] sm:$0xff] }
 0x1e1   : > { %2015 = vmatprep.subr.mxu0 %v998_v52  ;;  %1977 = vmatpush2.msra.mxu1 %v933_v53  ;;  %v1133_v50 = vld [vmem:[%s2975_s14 + $0x1970] sm:$0xff]  ;;  %v1066_v51 = vld [vmem:[%s2975_s14 + $0x1758] sm:$0xff]  ;;  %v1288_v53 = vpop.f32.mrf.mxu1 }
 0x1e2   : > { %2016 = vmatpush1.msra.mxu0 %v997_v54  ;;  %1978 = vmatprep.subr.mxu1 %v930_v55  ;;  %v1130_v52 = vld [vmem:[%s2975_s14 + $0x1958] sm:$0xff]  ;;  %v1219_v54 = vpop.f32.mrf.mxu0  ;;  %v1065_v55 = vld [vmem:[%s2975_s14 + $0x1750] sm:$0xff] }
 0x1e3   : > { %2017 = vmatprep.subr.mxu0 %v994_v56  ;;  %1979 = vmatpush2.msra.mxu1 %v929_v57  ;;  %v1129_v56 = vld [vmem:[%s2975_s14 + $0x1950] sm:$0xff]  ;;  %v1062_v57 = vld [vmem:[%s2975_s14 + $0x1738] sm:$0xff] }
 0x1e4   : > { %2018 = vmatpush1.msra.mxu0 %v993_v58  ;;  %1980 = vmatprep.subr.mxu1 %v926_v59  ;;  %v1126_v58 = vld [vmem:[%s2975_s14 + $0x1938] sm:$0xff]  ;;  %v1359_v59 = vpop.f32.mrf.mxu0 }
 0x1e5   : > { %2019 = vmatprep.subr.mxu0 %v990_v60  ;;  %1981 = vmatpush2.msra.mxu1 %v925_v61  ;;  %v1061_v60 = vld [vmem:[%s2975_s14 + $0x1730] sm:$0xff] }
 0x1e6   : > { %2020 = vmatpush1.msra.mxu0 %v989_v62  ;;  %1982 = vmatprep.subr.mxu1 %v922_v63  ;;  %v1125_v61 = vld [vmem:[%s2975_s14 + $0x1930] sm:$0xff]  ;;  %v1058_v62 = vld [vmem:[%s2975_s14 + $0x1718] sm:$0xff] }
 0x1e7   : > { %2021 = vmatprep.subr.mxu0 %v986_v0  ;;  %1983 = vmatpush2.msra.mxu1 %v921_v1  ;;  %v1122_v63 = vld [vmem:[%s2975_s14 + $0x1918] sm:$0xff]  ;;  %v1290_v0 = vpop.f32.mrf.mxu1  ;;  %v1057_v1 = vld [vmem:[%s2975_s14 + $0x1710] sm:$0xff] }
 0x1e8   : > { %2022 = vmatpush1.msra.mxu0 %v985_v2  ;;  %1984 = vmatprep.subr.mxu1 %v918_v3  ;;  %v1121_v2 = vld [vmem:[%s2975_s14 + $0x1910] sm:$0xff]  ;;  %v1289_v3 = vadd.f32 %v1288_v53, %v1217_v44  ;;  %v1030_v44 = vld [vmem:[%s2975_s14 + $0x1638] sm:$0xff] }
 0x1e9   : > { %2023 = vmatprep.subr.mxu0 %v982_v4  ;;  %1985 = vmatpush2.msra.mxu1 %v917_v5  ;;  %v1054_v4 = vld [vmem:[%s2975_s14 + $0x16f8] sm:$0xff] }
 0x1ea   : > { %2024 = vmatpush1.msra.mxu0 %v981_v6  ;;  %1986 = vmatprep.subr.mxu1 %v914_v7  ;;  %v1118_v5 = vld [vmem:[%s2975_s14 + $0x18f8] sm:$0xff]  ;;  %v1430_v6 = vpop.f32.mrf.mxu1  ;;  %v1361_v7 = vpop.f32.mrf.mxu0 }
 0x1eb   : > { %2025 = vmatprep.subr.mxu0 %v978_v8  ;;  %1987 = vmatpush2.msra.mxu1 %v913_v9  ;;  %v1053_v8 = vld [vmem:[%s2975_s14 + $0x16f0] sm:$0xff] }
 0x1ec   : > { %2026 = vmatpush1.msra.mxu0 %v977_v10  ;;  %1988 = vmatprep.subr.mxu1 %v910_v11  ;;  %v1117_v9 = vld [vmem:[%s2975_s14 + $0x18f0] sm:$0xff]  ;;  %v1291_v10 = vadd.f32 %v1290_v0, %v1219_v54  ;;  %v1360_v11 = vadd.f32 %v1359_v59, %v1289_v3 }
 0x1ed   : > { %2027 = vmatprep.subr.mxu0 %v974_v12  ;;  %1989 = vmatpush2.msra.mxu1 %v909_v13  ;;  %v1050_v12 = vld [vmem:[%s2975_s14 + $0x16d8] sm:$0xff]  ;;  %v1025_v54 = vld [vmem:[%s2975_s14 + $0x1610] sm:$0xff] }
 0x1ee   : > { %2028 = vmatpush1.msra.mxu0 %v973_v14  ;;  %1990 = vmatprep.subr.mxu1 %v906_v15  ;;  %v1114_v13 = vld [vmem:[%s2975_s14 + $0x18d8] sm:$0xff]  ;;  %v1501_v14 = vpop.f32.mrf.mxu0  ;;  %v1049_v15 = vld [vmem:[%s2975_s14 + $0x16d0] sm:$0xff] }
 0x1ef   : > { %2029 = vmatprep.subr.mxu0 %v970_v17  ;;  %1991 = vmatpush2.msra.mxu1 %v905_v18  ;;  %v1113_v17 = vld [vmem:[%s2975_s14 + $0x18d0] sm:$0xff]  ;;  %v1362_v18 = vadd.f32 %v1361_v7, %v1291_v10 }
 0x1f0   : > { %2030 = vmatpush1.msra.mxu0 %v969_v19  ;;  %1992 = vmatprep.subr.mxu1 %v902_v20  ;;  %v1046_v19 = vld [vmem:[%s2975_s14 + $0x16b8] sm:$0xff] }
 0x1f1   : > { %2031 = vmatprep.subr.mxu0 %v966_v21  ;;  %1993 = vmatpush2.msra.mxu1 %v901_v22  ;;  %v1110_v20 = vld [vmem:[%s2975_s14 + $0x18b8] sm:$0xff]  ;;  %v1432_v21 = vpop.f32.mrf.mxu1  ;;  %v1045_v22 = vld [vmem:[%s2975_s14 + $0x16b0] sm:$0xff] }
 0x1f2   : > { %2032 = vmatpush1.msra.mxu0 %v965_v23  ;;  %1994 = vmatprep.subr.mxu1 %v898_v24  ;;  %v1109_v23 = vld [vmem:[%s2975_s14 + $0x18b0] sm:$0xff]  ;;  %v1431_v24 = vadd.f32 %v1430_v6, %v1360_v11 }
 0x1f3   : > { %2033 = vmatprep.subr.mxu0 %v962_v25  ;;  %1995 = vmatpush2.msra.mxu1 %v897_v26  ;;  %v1042_v25 = vld [vmem:[%s2975_s14 + $0x1698] sm:$0xff] }
 0x1f4   : > { %1996 = vmatprep.mubr.f32.mxu1 %v2660_v30  ;;  %2034 = vmatpush1.msra.mxu0 %v961_v27  ;;  %v1106_v26 = vld [vmem:[%s2975_s14 + $0x1898] sm:$0xff]  ;;  %v1572_v27 = vpop.f32.mrf.mxu1  ;;  %v1105_v30 = vld [vmem:[%s2975_s14 + $0x1890] sm:$0xff] }
 0x1f5   : > { %1997 = vmatmul.mubr.f32.vlgmr.msra.gmra.mxu1 %v2661_v33  ;;  %2035 = vmatprep.subr.mxu0 %v1086_v28  ;;  %v1503_v28 = vpop.f32.mrf.mxu0  ;;  %v1038_v33 = vld [vmem:[%s2975_s14 + $0x1678] sm:$0xff] }
 0x1f6   : > { %2074 = vmatprep.subr.mxu1 %v1150_v29  ;;  %2036 = vmatpush2.msra.mxu0 %v1085_v31  ;;  %v1041_v29 = vld [vmem:[%s2975_s14 + $0x1690] sm:$0xff]  ;;  %v1433_v31 = vadd.f32 %v1432_v21, %v1362_v18  ;;  %v304_v21 = vld [vmem:[#allocation2 + $0x18] sm:$0xff] }
 0x1f7   : > { %2075 = vmatpush1.msra.mxu1 %v1149_v32  ;;  %2037 = vmatprep.subr.mxu0 %v1082_v34  ;;  %v1502_v32 = vadd.f32 %v1501_v14, %v1431_v24  ;;  %v1102_v34 = vld [vmem:[%s2975_s14 + $0x1878] sm:$0xff] }
 0x1f8   : > { %2076 = vmatprep.subr.mxu1 %v1146_v35  ;;  %2038 = vmatpush2.msra.mxu0 %v1081_v36  ;;  %v1037_v35 = vld [vmem:[%s2975_s14 + $0x1670] sm:$0xff] }
 0x1f9   : > { %2077 = vmatpush1.msra.mxu1 %v1145_v37  ;;  %2039 = vmatprep.subr.mxu0 %v1078_v38  ;;  %v1101_v36 = vld [vmem:[%s2975_s14 + $0x1870] sm:$0xff]  ;;  %v1504_v37 = vadd.f32 %v1503_v28, %v1433_v31  ;;  %v1034_v38 = vld [vmem:[%s2975_s14 + $0x1658] sm:$0xff] }
 0x1fa   : > { %2078 = vmatprep.subr.mxu1 %v1142_v39  ;;  %2040 = vmatpush2.msra.mxu0 %v1077_v40  ;;  %v1098_v39 = vld [vmem:[%s2975_s14 + $0x1858] sm:$0xff]  ;;  %v1574_v40 = vpop.f32.mrf.mxu1 }
 0x1fb   : > { %2079 = vmatpush1.msra.mxu1 %v1141_v41  ;;  %2041 = vmatprep.subr.mxu0 %v1074_v42  ;;  %v1033_v41 = vld [vmem:[%s2975_s14 + $0x1650] sm:$0xff] }
 0x1fc   : > { %2080 = vmatprep.subr.mxu1 %v1138_v43  ;;  %2042 = vmatpush2.msra.mxu0 %v1073_v45  ;;  %v1097_v42 = vld [vmem:[%s2975_s14 + $0x1850] sm:$0xff]  ;;  %v1573_v43 = vadd.f32 %v1572_v27, %v1502_v32  ;;  %v1094_v45 = vld [vmem:[%s2975_s14 + $0x1838] sm:$0xff] }
 0x1fd   : > { %2081 = vmatpush1.msra.mxu1 %v1137_v46  ;;  %2043 = vmatprep.subr.mxu0 %v1070_v47  ;;  %v1029_v46 = vld [vmem:[%s2975_s14 + $0x1630] sm:$0xff] }
 0x1fe   : > { %2082 = vmatprep.subr.mxu1 %v1134_v48  ;;  %2044 = vmatpush2.msra.mxu0 %v1069_v49  ;;  %v1093_v47 = vld [vmem:[%s2975_s14 + $0x1830] sm:$0xff] }
 0x1ff   : > { %2083 = vmatpush1.msra.mxu1 %v1133_v50  ;;  %2045 = vmatprep.subr.mxu0 %v1066_v51  ;;  %v302_v48 = vld [vmem:[#allocation2 + $0x10] sm:$0xff]  ;;  %v1575_v50 = vadd.f32 %v1574_v40, %v1504_v37  ;;  %v1026_v51 = vld [vmem:[%s2975_s14 + $0x1618] sm:$0xff] }
 0x200   : > { %2084 = vmatprep.subr.mxu1 %v1130_v52  ;;  %2046 = vmatpush2.msra.mxu0 %v1065_v55  ;;  %v1090_v52 = vld [vmem:[%s2975_s14 + $0x1818] sm:$0xff]  ;;  %v303_v55 = vld [vmem:[#allocation2] sm:$0xff] }
 0x201   : > { %2085 = vmatpush1.msra.mxu1 %v1129_v56  ;;  %2047 = vmatprep.subr.mxu0 %v1062_v57  ;;  %v1089_v57 = vld [vmem:[%s2975_s14 + $0x1810] sm:$0xff] }
 0x202   : > { %2086 = vmatprep.subr.mxu1 %v1126_v58  ;;  %2048 = vmatpush2.msra.mxu0 %v1061_v60  ;;  %v2662_v60 = vld [vmem:[%s2993_s12 + $0x58] sm:$0xff] }
 0x203   : > { %2087 = vmatpush1.msra.mxu1 %v1125_v61  ;;  %2049 = vmatprep.subr.mxu0 %v1058_v62  ;;  %v2663_v62 = vld [vmem:[%s2993_s12 + $0x50] sm:$0xff] }
 0x204   : > { %2088 = vmatprep.subr.mxu1 %v1122_v63  ;;  %2050 = vmatpush2.msra.mxu0 %v1057_v1  ;;  %v2664_v63 = vld [vmem:[%s2993_s12 + $0x60] sm:$0xff] }
 0x205   : > { %2089 = vmatpush1.msra.mxu1 %v1121_v2  ;;  %2051 = vmatprep.subr.mxu0 %v1054_v4 }
 0x206   : > { %2090 = vmatprep.subr.mxu1 %v1118_v5  ;;  %2052 = vmatpush2.msra.mxu0 %v1053_v8 }
 0x207   : > { %2091 = vmatpush1.msra.mxu1 %v1117_v9  ;;  %2053 = vmatprep.subr.mxu0 %v1050_v12 }
 0x208   : > { %2092 = vmatprep.subr.mxu1 %v1114_v13  ;;  %2054 = vmatpush2.msra.mxu0 %v1049_v15 }
 0x209   : > { %2093 = vmatpush1.msra.mxu1 %v1113_v17  ;;  %2055 = vmatprep.subr.mxu0 %v1046_v19 }
 0x20a   : > { %2094 = vmatprep.subr.mxu1 %v1110_v20  ;;  %2056 = vmatpush2.msra.mxu0 %v1045_v22 }
 0x20b   : > { %2095 = vmatpush1.msra.mxu1 %v1109_v23  ;;  %2057 = vmatprep.subr.mxu0 %v1042_v25  ;;  %v305_v25 = vld [vmem:[#allocation2 + $0x8] sm:$0xff] }
 0x20c   : > { %2096 = vmatprep.subr.mxu1 %v1106_v26  ;;  %2058 = vmatpush2.msra.mxu0 %v1041_v29 }
 0x20d   : > { %2097 = vmatpush1.msra.mxu1 %v1105_v30  ;;  %2059 = vmatprep.subr.mxu0 %v1038_v33 }
 0x20e   : > { %2098 = vmatprep.subr.mxu1 %v1102_v34  ;;  %2060 = vmatpush2.msra.mxu0 %v1037_v35 }
 0x20f   : > { %2099 = vmatpush1.msra.mxu1 %v1101_v36  ;;  %2061 = vmatprep.subr.mxu0 %v1034_v38 }
 0x210   : > { %2100 = vmatprep.subr.mxu1 %v1098_v39  ;;  %v1643_v49 = vpop.f32.mrf.mxu0  ;;  %2062 = vmatpush2.msra.mxu0 %v1033_v41 }
 0x211   : > { %2101 = vmatpush1.msra.mxu1 %v1097_v42  ;;  %v1644_v53 = vadd.f32 %v1643_v49, %v1573_v43  ;;  %2063 = vmatprep.subr.mxu0 %v1030_v44 }
 0x212   : > { %2102 = vmatprep.subr.mxu1 %v1094_v45  ;;  %v1645_v56 = vpop.f32.mrf.mxu0  ;;  %2064 = vmatpush2.msra.mxu0 %v1029_v46 }
 0x213   : > { %2103 = vmatpush1.msra.mxu1 %v1093_v47  ;;  %v2145_v58 = vadd.f32 %v1644_v53, %v302_v48  ;;  %v1646_v59 = vadd.f32 %v1645_v56, %v1575_v50  ;;  %2065 = vmatprep.subr.mxu0 %v1026_v51 }
 0x214   : > { %2104 = vmatprep.subr.mxu1 %v1090_v52  ;;  %2066 = vmatpush2.msra.mxu0 %v1025_v54 }
 0x215   : > { %2067 = vmatprep.mubr.f32.mxu0 %v2662_v60  ;;  %2149 = vst [vmem:[#allocation2 + $0x10] sm:$0xff] %v2145_v58  ;;  %v2146_v61 = vadd.f32 %v1646_v59, %v303_v55  ;;  %2105 = vmatpush1.msra.mxu1 %v1089_v57 }
 0x216   : > { %2138 = vmatprep.mubr.f32.mxu1 %v2824_v16  ;;  %2068 = vmatmul.mubr.f32.vlgmr.msra.gmra.mxu0 %v2663_v62 }
 0x217   : > { %2139 = vmatmul.mubr.f32.vlgmr.msra.gmra.mxu1 %v2664_v63  ;;  %2150 = vst [vmem:[#allocation2] sm:$0xff] %v2146_v61 }
 0x232   : > { %v1714_v0 = vpop.f32.mrf.mxu1 }
 0x234   : > { %v1716_v1 = vpop.f32.mrf.mxu1 }
 0x252   : > { %v1785_v2 = vpop.f32.mrf.mxu0 }
 0x253   : > { %v1786_v7 = vadd.f32 %v1785_v2, %v1714_v0 }
 0x254   : > { %v1787_v4 = vpop.f32.mrf.mxu0 }
 0x255   : > { %v1788_v9 = vadd.f32 %v1787_v4, %v1716_v1 }
 0x273   : > { %v1856_v3 = vpop.f32.mrf.mxu1 }
 0x274   : > { %v1857_v10 = vadd.f32 %v1856_v3, %v1786_v7 }
 0x275   : > { %v1858_v5 = vpop.f32.mrf.mxu1 }
 0x276   : > { %v1859_v12 = vadd.f32 %v1858_v5, %v1788_v9 }
 0x294   : > { %v1927_v6 = vpop.f32.mrf.mxu0 }
 0x295   : > { %v1928_v13 = vadd.f32 %v1927_v6, %v1857_v10 }
 0x296   : > { %v1929_v11 = vpop.f32.mrf.mxu0 }
 0x297   : > { %v1930_v14 = vadd.f32 %v1929_v11, %v1859_v12 }
 0x2b5   : > { %v1998_v8 = vpop.f32.mrf.mxu1 }
 0x2b6   : > { %v1999_v15 = vadd.f32 %v1998_v8, %v1928_v13 }
 0x2b7   : > { %v2000_v16 = vpop.f32.mrf.mxu1 }
 0x2b8   : > { %v2001_v19 = vadd.f32 %v2000_v16, %v1930_v14 }
 0x2d6   : > { %v2069_v17 = vpop.f32.mrf.mxu0 }
 0x2d7   : > { %v2140_v18 = vpop.f32.mrf.mxu1  ;;  %v2070_v20 = vadd.f32 %v2069_v17, %v1999_v15 }
 0x2d8   : > { %v2071_v22 = vpop.f32.mrf.mxu0 }
 0x2d9   : > { %v2141_v23 = vadd.f32 %v2140_v18, %v2070_v20  ;;  %v2072_v24 = vadd.f32 %v2071_v22, %v2001_v19  ;;  %v2142_v26 = vpop.f32.mrf.mxu1 }
 0x2db   : > { %v2147_v27 = vadd.f32 %v2141_v23, %v304_v21  ;;  %v2143_v28 = vadd.f32 %v2142_v26, %v2072_v24  ;;  %2156 = sbr.rel (%p2497_p2) target bundleno = 973 (0x3cd), region = 64 }
 0x2dd   : > { %2151 = vst [vmem:[#allocation2 + $0x18] sm:$0xff] %v2147_v27  ;;  %v2148_v29 = vadd.f32 %v2143_v28, %v305_v25 }
 0x2df   : > { %2152 = vst [vmem:[#allocation2 + $0x8] sm:$0xff] %v2148_v29 }
 0x2e0   : > { %v2222_v30 = vld [vmem:[#allocation7 + $0xf8] sm:$0xff]  ;;  %v2221_v34 = vld [vmem:[#allocation7 + $0xf0] sm:$0xff]  ;;  %v2220_v38 = vld [vmem:[#allocation7 + $0xe8] sm:$0xff]  ;;  %v2163_v56 = vlaneseq }
 0x2e1   : > { %v2254_v31 = vld [vmem:[#allocation7 + $0x1f8] sm:$0xff]  ;;  %2504 = vmatprep.subr.mxu0 %v2222_v30  ;;  %v2253_v35 = vld [vmem:[#allocation7 + $0x1f0] sm:$0xff]  ;;  %v2252_v39 = vld [vmem:[#allocation7 + $0x1e8] sm:$0xff] }
 0x2e2   : > { %v2206_v32 = vld [vmem:[#allocation7 + $0x78] sm:$0xff]  ;;  %2539 = vmatprep.subr.mxu1 %v2254_v31  ;;  %v2205_v36 = vld [vmem:[#allocation7 + $0x70] sm:$0xff]  ;;  %v2204_v40 = vld [vmem:[#allocation7 + $0x68] sm:$0xff]  ;;  %v2164_v1 = vshrl.u32 %v2163_v56, 7 }
 0x2e3   : > { %v2238_v33 = vld [vmem:[#allocation7 + $0x178] sm:$0xff]  ;;  %2505 = vmatpush3.msra.mxu0 %v2206_v32  ;;  %v2237_v37 = vld [vmem:[#allocation7 + $0x170] sm:$0xff]  ;;  %v2236_v41 = vld [vmem:[#allocation7 + $0x168] sm:$0xff] }
 0x2e4   : > { %2540 = vmatpush3.msra.mxu1 %v2238_v33  ;;  %2506 = vmatprep.subr.mxu0 %v2221_v34  ;;  %v2219_v42 = vld [vmem:[#allocation7 + $0xe0] sm:$0xff]  ;;  %v2218_v46 = vld [vmem:[#allocation7 + $0xd8] sm:$0xff]  ;;  %v2217_v50 = vld [vmem:[#allocation7 + $0xd0] sm:$0xff]  ;;  %v2169_v10 = vsub.s32 1, %v2164_v1  ;;  %v2177_v11 = vsub.s32 3, %v2164_v1  ;;  %v2165_v12 = vsub.s32 0, %v2164_v1 }
 0x2e5   : > { %2541 = vmatprep.subr.mxu1 %v2253_v35  ;;  %2507 = vmatpush3.msra.mxu0 %v2205_v36  ;;  %v2251_v43 = vld [vmem:[#allocation7 + $0x1e0] sm:$0xff]  ;;  %v2250_v47 = vld [vmem:[#allocation7 + $0x1d8] sm:$0xff]  ;;  %v2249_v51 = vld [vmem:[#allocation7 + $0x1d0] sm:$0xff]  ;;  %v2173_v15 = vsub.s32 2, %v2164_v1 }
 0x2e6   : > { %2542 = vmatpush3.msra.mxu1 %v2237_v37  ;;  %2508 = vmatprep.subr.mxu0 %v2220_v38  ;;  %v2203_v44 = vld [vmem:[#allocation7 + $0x60] sm:$0xff]  ;;  %v2202_v48 = vld [vmem:[#allocation7 + $0x58] sm:$0xff]  ;;  %v2201_v52 = vld [vmem:[#allocation7 + $0x50] sm:$0xff] }
 0x2e7   : > { %2543 = vmatprep.subr.mxu1 %v2252_v39  ;;  %v2235_v45 = vld [vmem:[#allocation7 + $0x160] sm:$0xff]  ;;  %2509 = vmatpush3.msra.mxu0 %v2204_v40  ;;  %v2234_v49 = vld [vmem:[#allocation7 + $0x158] sm:$0xff]  ;;  %v2233_v53 = vld [vmem:[#allocation7 + $0x150] sm:$0xff] }
 0x2e8   : > { %2544 = vmatpush3.msra.mxu1 %v2236_v41  ;;  %2510 = vmatprep.subr.mxu0 %v2219_v42  ;;  %v2216_v54 = vld [vmem:[#allocation7 + $0xc8] sm:$0xff]  ;;  %v2215_v59 = vld [vmem:[#allocation7 + $0xc0] sm:$0xff]  ;;  %v2214_v63 = vld [vmem:[#allocation7 + $0xb8] sm:$0xff] }
 0x2e9   : > { %2545 = vmatprep.subr.mxu1 %v2251_v43  ;;  %2511 = vmatpush3.msra.mxu0 %v2203_v44  ;;  %v2248_v55 = vld [vmem:[#allocation7 + $0x1c8] sm:$0xff]  ;;  %v2247_v60 = vld [vmem:[#allocation7 + $0x1c0] sm:$0xff]  ;;  %v2246_v0 = vld [vmem:[#allocation7 + $0x1b8] sm:$0xff] }
 0x2ea   : > { %2546 = vmatpush3.msra.mxu1 %v2235_v45  ;;  %2512 = vmatprep.subr.mxu0 %v2218_v46  ;;  %v2200_v57 = vld [vmem:[#allocation7 + $0x48] sm:$0xff]  ;;  %v2199_v61 = vld [vmem:[#allocation7 + $0x40] sm:$0xff]  ;;  %v2198_v2 = vld [vmem:[#allocation7 + $0x38] sm:$0xff] }
 0x2eb   : > { %2547 = vmatprep.subr.mxu1 %v2250_v47  ;;  %2513 = vmatpush3.msra.mxu0 %v2202_v48  ;;  %v2232_v58 = vld [vmem:[#allocation7 + $0x148] sm:$0xff]  ;;  %v2231_v62 = vld [vmem:[#allocation7 + $0x140] sm:$0xff]  ;;  %v2230_v3 = vld [vmem:[#allocation7 + $0x138] sm:$0xff] }
 0x2ec   : > { %2548 = vmatpush3.msra.mxu1 %v2234_v49  ;;  %2514 = vmatprep.subr.mxu0 %v2217_v50  ;;  %v2213_v4 = vld [vmem:[#allocation7 + $0xb0] sm:$0xff]  ;;  %v2212_v8 = vld [vmem:[#allocation7 + $0xa8] sm:$0xff]  ;;  %v2211_v14 = vld [vmem:[#allocation7 + $0xa0] sm:$0xff] }
 0x2ed   : > { %2549 = vmatprep.subr.mxu1 %v2249_v51  ;;  %2515 = vmatpush3.msra.mxu0 %v2201_v52  ;;  %v2245_v5 = vld [vmem:[#allocation7 + $0x1b0] sm:$0xff]  ;;  %v2244_v9 = vld [vmem:[#allocation7 + $0x1a8] sm:$0xff]  ;;  %v2243_v17 = vld [vmem:[#allocation7 + $0x1a0] sm:$0xff] }
 0x2ee   : > { %2550 = vmatpush3.msra.mxu1 %v2233_v53  ;;  %2516 = vmatprep.subr.mxu0 %v2216_v54  ;;  %v2197_v6 = vld [vmem:[#allocation7 + $0x30] sm:$0xff]  ;;  %v2196_v13 = vld [vmem:[#allocation7 + $0x28] sm:$0xff]  ;;  %v2195_v18 = vld [vmem:[#allocation7 + $0x20] sm:$0xff] }
 0x2ef   : > { %2551 = vmatprep.subr.mxu1 %v2248_v55  ;;  %2517 = vmatpush3.msra.mxu0 %v2200_v57  ;;  %v2229_v7 = vld [vmem:[#allocation7 + $0x130] sm:$0xff]  ;;  %v2228_v16 = vld [vmem:[#allocation7 + $0x128] sm:$0xff]  ;;  %v2227_v19 = vld [vmem:[#allocation7 + $0x120] sm:$0xff] }
 0x2f0   : > { %2552 = vmatpush3.msra.mxu1 %v2232_v58  ;;  %2518 = vmatprep.subr.mxu0 %v2215_v59  ;;  %v2210_v20 = vld [vmem:[#allocation7 + $0x98] sm:$0xff]  ;;  %v2160_v26 = vld [vmem:[#allocation2 + $0x8] sm:$0xff]  ;;  %v2157_v30 = vld [vmem:[#allocation2 + $0x10] sm:$0xff] }
 0x2f1   : > { %2553 = vmatprep.subr.mxu1 %v2247_v60  ;;  %2519 = vmatpush3.msra.mxu0 %v2199_v61  ;;  %v2158_v21 = vld [vmem:[#allocation2] sm:$0xff]  ;;  %v2159_v31 = vld [vmem:[#allocation2 + $0x18] sm:$0xff]  ;;  %v2208_v39 = vld [vmem:[#allocation7 + $0x88] sm:$0xff] }
 0x2f2   : > { %2554 = vmatpush3.msra.mxu1 %v2231_v62  ;;  %2520 = vmatprep.subr.mxu0 %v2214_v63  ;;  %v2161_v22 = vld [vmem:[#allocation5] sm:$0xf]  ;;  %v2209_v33 = vld [vmem:[#allocation7 + $0x90] sm:$0xff]  ;;  %v2240_v40 = vld [vmem:[#allocation7 + $0x188] sm:$0xff] }
 0x2f3   : > { %2555 = vmatprep.subr.mxu1 %v2246_v0  ;;  %2521 = vmatpush3.msra.mxu0 %v2198_v2  ;;  %v2242_v23 = vld [vmem:[#allocation7 + $0x198] sm:$0xff]  ;;  %v2170_v25 = vrot.slane %v2161_v22, %v2169_v10  ;;  %v2178_v27 = vrot.slane %v2161_v22, %v2177_v11  ;;  %v2166_v28 = vrot.slane %v2161_v22, %v2165_v12  ;;  %v2241_v34 = vld [vmem:[#allocation7 + $0x190] sm:$0xff]  ;;  %v2192_v43 = vld [vmem:[#allocation7 + $0x8] sm:$0xff] }
 0x2f4   : > { %2556 = vmatpush3.msra.mxu1 %v2230_v3  ;;  %2522 = vmatprep.subr.mxu0 %v2213_v4  ;;  %v2194_v24 = vld [vmem:[#allocation7 + $0x18] sm:$0xff]  ;;  %v2174_v32 = vrot.slane %v2161_v22, %v2173_v15  ;;  %v2193_v36 = vld [vmem:[#allocation7 + $0x10] sm:$0xff]  ;;  %v2224_v44 = vld [vmem:[#allocation7 + $0x108] sm:$0xff] }
 0x2f5   : > { %2557 = vmatprep.subr.mxu1 %v2245_v5  ;;  %2523 = vmatpush3.msra.mxu0 %v2197_v6  ;;  %v2226_v29 = vld [vmem:[#allocation7 + $0x118] sm:$0xff]  ;;  %v2184_v35 = vadd.f32 %v2170_v25, %v2158_v21  ;;  %v2225_v37 = vld [vmem:[#allocation7 + $0x110] sm:$0xff]  ;;  %v2186_v38 = vadd.f32 %v2178_v27, %v2160_v26  ;;  %v2183_v41 = vadd.f32 %v2166_v28, %v2157_v30  ;;  %v2207_v45 = vld [vmem:[#allocation7 + $0x80] sm:$0xff] }
 0x2f6   : > { %2558 = vmatpush3.msra.mxu1 %v2229_v7  ;;  %2524 = vmatprep.subr.mxu0 %v2212_v8  ;;  %v2185_v42 = vadd.f32 %v2174_v32, %v2159_v31  ;;  %v2239_v46 = vld [vmem:[#allocation7 + $0x180] sm:$0xff] }
 0x2f7   : > { %2559 = vmatprep.subr.mxu1 %v2244_v9  ;;  %2525 = vmatpush3.msra.mxu0 %v2196_v13  ;;  %v2188_v47 = vmax.f32 %v2184_v35, 0.0  ;;  %v2191_v48 = vld [vmem:[#allocation7] sm:$0xff]  ;;  %v2190_v49 = vmax.f32 %v2186_v38, 0.0  ;;  %v2187_v51 = vmax.f32 %v2183_v41, 0.0 }
 0x2f8   : > { %2560 = vmatpush3.msra.mxu1 %v2228_v16  ;;  %2526 = vmatprep.subr.mxu0 %v2211_v14  ;;  %v2223_v50 = vld [vmem:[#allocation7 + $0x100] sm:$0xff]  ;;  %v2189_v52 = vmax.f32 %v2185_v42, 0.0 }
 0x2f9   : > { %2561 = vmatprep.subr.mxu1 %v2243_v17  ;;  %2527 = vmatpush3.msra.mxu0 %v2195_v18  ;;  %v2498_v55 = vld [vmem:[#allocation8] ss:$0 sm:$0xff] }
 0x2fa   : > { %2562 = vmatpush3.msra.mxu1 %v2227_v19  ;;  %2528 = vmatprep.subr.mxu0 %v2210_v20 }
 0x2fb   : > { %2563 = vmatprep.subr.mxu1 %v2242_v23  ;;  %2529 = vmatpush3.msra.mxu0 %v2194_v24 }
 0x2fc   : > { %2564 = vmatpush3.msra.mxu1 %v2226_v29  ;;  %2530 = vmatprep.subr.mxu0 %v2209_v33 }
 0x2fd   : > { %2565 = vmatprep.subr.mxu1 %v2241_v34  ;;  %2531 = vmatpush3.msra.mxu0 %v2193_v36 }
 0x2fe   : > { %2566 = vmatpush3.msra.mxu1 %v2225_v37  ;;  %2532 = vmatprep.subr.mxu0 %v2208_v39 }
 0x2ff   : > { %2567 = vmatprep.subr.mxu1 %v2240_v40  ;;  %2533 = vmatpush3.msra.mxu0 %v2192_v43 }
 0x300   : > { %2568 = vmatpush3.msra.mxu1 %v2224_v44  ;;  %2534 = vmatprep.subr.mxu0 %v2207_v45 }
 0x301   : > { %2569 = vmatprep.subr.mxu1 %v2239_v46  ;;  %2535 = vmatpush3.msra.mxu0 %v2191_v48 }
 0x302   : > { %2326 = vmatprep.mubr.f32.mxu0 %v2188_v47  ;;  %2570 = vmatpush3.msra.mxu1 %v2223_v50 }
 0x303   : > { %2396 = vmatprep.mubr.f32.mxu1 %v2190_v49  ;;  %2327 = vmatmul.mubr.f32.vlgmr.msra.gmra.mxu0 %v2187_v51 }
 0x304   : > { %2397 = vmatmul.mubr.f32.vlgmr.msra.gmra.mxu1 %v2189_v52 }
 0x3c3   : > { %v2536_v53 = vpop.f32.mrf.mxu0 }
 0x3c4   : > { %v2571_v54 = vpop.f32.mrf.mxu1 }
 0x3c5   : > { %v2537_v56 = vpop.f32.mrf.mxu0 }
 0x3c6   : > { %v2572_v57 = vpop.f32.mrf.mxu1  ;;  %v2538_v58 = vadd.f32 %v2537_v56, %v2536_v53 }
 0x3c7   : > { %v2573_v60 = vadd.f32 %v2572_v57, %v2571_v54 }
 0x3c8   : > { %v2329_v59 = vadd.f32 %v2538_v58, %v2498_v55 }
 0x3ca   : > { %v2399_v61 = vadd.f32 %v2573_v60, %v2329_v59 }
 0x3cc   : > { %2402 = vst [vmem:[%s3879_s5] sm:$0xff] %v2399_v61 }
 0x3cd PF: > { %p17_p3 = scmp.ge.s32.totalorder %s2926_s25, 6   ;;  %s3894_s18 = smov %s2805_s19 }
 0x3ce   : > { %s3895_s19 = smov %s2809_s20  ;;  %s3896_s20 = smov %s2936_s28 }
 0x3cf   : > { %s3897_s21 = smov %s2926_s25  ;;  %19 = sbr.rel (!%p17_p3) target bundleno = 5 (0x5), region = 99 }
 0x3d4   :  { %2414 = vsyncpa [#allocation4], 1 }
 0x3d5   :  { %2416 = vsyncpa [#allocation4 + $0x1], 1 }
 0x3d6   :  { %2417 = vsyncpa [#allocation6], 1 }
 0x3d7   :  { %2418 = vsyncpa [#allocation9], 1 }

</bundles_post_ra>
